<compile_context>
chip_gen: v6e
topology: v6e:2x2x1
jax: 0.10.0
libtpu: 0.0.40
codegen_flags: <defaults>
</compile_context>

<pallas_src>
import functools

import jax
import jax.numpy as jnp
from jax.experimental import pallas as pl
from jax.experimental.pallas import tpu as pltpu

C_HIDDEN = 25              # forced by nn.BatchNorm2d(25) in the reference module
CP = 32                    # channel dim zero-padded to a sublane multiple
BN_EPS = 1e-3
MXU_DTYPE = jnp.bfloat16   # matmul operand dtype (accumulation stays f32)


def _hgru_kernel(K, P, W,
                 x_ref, h_ref, uw_ref, wc_ref, mask_ref, par_ref,
                 out_ref, pat_ref):
    """Whole HGRU cell step in one kernel invocation (all VMEM-resident).

    Activations are (CP, NHW) f32: channels in sublanes (rows >= 25 are zero
    padding and stay harmless — padded weight rows/cols are zero), flattened
    (n, h, w) spatial index in lanes.

    Packed parameter refs:
      uw_ref   (2*CP, CP)      bf16 : rows [0:CP] = u1 1x1 weight, [CP:] = u2
      wc_ref   (2*CP, KK*CP)   bf16 : rows [0:CP] = w_gate_inh,   [CP:] = w_gate_exc
      par_ref  (CP, 16)        f32  : cols 0..6 = alpha,mu,kappa,gamma,w,u1b,u2b
                                      cols 8..11 = BN weights, 12..15 = BN biases
    """
    CPk, NHW = x_ref.shape
    center = P * K + P

    x = x_ref[...]
    h = h_ref[...]

    def col(i):                            # (CP, 1) per-channel column
        return par_ref[:, i:i + 1]

    alpha, mu, kappa, gamma, wpar, u1b, u2b = (col(i) for i in range(7))

    def batchnorm(z, idx):
        # BatchNorm2d, training mode: per-channel (per-row) batch statistics
        # over all N*H*W positions (the lane axis), biased variance, eps=1e-3.
        mean = jnp.mean(z, axis=1, keepdims=True)
        var = jnp.mean(jnp.square(z - mean), axis=1, keepdims=True)
        return ((z - mean) * jax.lax.rsqrt(var + BN_EPS) * col(8 + idx)
                + col(12 + idx))

    def conv_kxk(z, wslot):
        # "same" KxK conv via im2col + one MXU matmul.  Each of the K*K taps
        # is a lane roll (XLU) of the flattened spatial axis, zeroed at image
        # boundaries by a precomputed mask, stored as an aligned (CP, NHW)
        # bf16 block of the patch buffer.
        for i in range(K):
            for j in range(K):
                t = i * K + j
                if t == center:
                    tap = z                                  # zero shift, full mask
                else:
                    s = (i - P) * W + (j - P)                # flat lane shift
                    tap = (pltpu.roll(z, (-s) % NHW, axis=1)
                           * mask_ref[t:t + 1, :])
                pat_ref[t * CPk:(t + 1) * CPk, :] = tap.astype(pat_ref.dtype)
        w_mat = wc_ref[wslot * CPk:(wslot + 1) * CPk, :]
        return jnp.dot(w_mat, pat_ref[...], preferred_element_type=jnp.float32)

    def gate(z, uslot, ub, bn_idx):        # sigmoid(bn(1x1 conv(z) + bias))
        u_mat = uw_ref[uslot * CPk:(uslot + 1) * CPk, :]
        pre = jnp.dot(u_mat, z.astype(uw_ref.dtype),
                      preferred_element_type=jnp.float32) + ub
        return jax.nn.sigmoid(batchnorm(pre, bn_idx))

    # g1_t = sigmoid(bn0(u1_gate(prev)))
    g1 = gate(h, 0, u1b, 0)
    # c1_t = bn1(conv2d(prev * g1, w_gate_inh, padding=P))
    c1 = batchnorm(conv_kxk(h * g1, 0), 1)
    # next_state1 = relu(input - relu(c1 * (alpha * prev + mu)))
    ns1 = jnp.maximum(x - jnp.maximum(c1 * (alpha * h + mu), 0.0), 0.0)
    # g2_t = sigmoid(bn2(u2_gate(next_state1)))
    g2 = gate(ns1, 1, u2b, 2)
    # c2_t = bn3(conv2d(next_state1, w_gate_exc, padding=P))
    c2 = batchnorm(conv_kxk(ns1, 1), 3)
    # h2_t = relu(kappa*ns1 + gamma*c2 + w*ns1*c2)
    h2 = jnp.maximum(kappa * ns1 + gamma * c2 + wpar * ns1 * c2, 0.0)
    # prev_state2 = (1 - g2)*prev + g2*h2
    out_ref[...] = (1.0 - g2) * h + g2 * h2


def hgru_cell_pallas(x_nchw, h_nchw, params):
    N, C, H, W = x_nchw.shape
    K = params["w_gate_inh"].shape[-1]
    P = K // 2
    KK = K * K
    NHW = N * H * W

    def to_cl(a):   # NCHW -> (CP, N*H*W): channels->sublanes, spatial->lanes
        a = jnp.transpose(a, (1, 0, 2, 3)).reshape(C, NHW)
        return jnp.pad(a.astype(jnp.float32), ((0, CP - C), (0, 0)))

    x_cl = to_cl(x_nchw)
    h_cl = to_cl(h_nchw)

    # ---- weight / param re-layouts (plain-JAX glue outside the kernel) ----
    def pad_cc(w):                        # (C, C) -> (CP, CP), zero padded
        return jnp.pad(w, ((0, CP - C), (0, CP - C)))

    # Both 1x1 gate weights stacked along sublanes: (2*CP, CP) bf16.
    uw = jnp.concatenate([pad_cc(params["u1_w"]), pad_cc(params["u2_w"])],
                         axis=0).astype(MXU_DTYPE)

    def conv_w_mat(w):                    # (Co, Ci, K, K) -> (CP, KK*CP)
        w = jnp.transpose(w, (2, 3, 0, 1))                          # (K,K,Co,Ci)
        w = jnp.pad(w, ((0, 0), (0, 0), (0, CP - C), (0, CP - C)))
        w = jnp.transpose(w.reshape(KK, CP, CP), (1, 0, 2))         # (Co, t, Ci)
        return w.reshape(CP, KK * CP)

    # Both spatial conv weights stacked along sublanes: (2*CP, KK*CP) bf16.
    wc = jnp.concatenate([conv_w_mat(params["w_gate_inh"]),
                          conv_w_mat(params["w_gate_exc"])],
                         axis=0).astype(MXU_DTYPE)

    # All per-channel params + the 4 BN layers packed into ONE (CP, 16) f32
    # ref: cols 0..6 = alpha, mu, kappa, gamma, w, u1_bias, u2_bias;
    # cols 8..11 = BN weights; cols 12..15 = BN biases.
    def padc(v):
        return jnp.pad(v.reshape(C).astype(jnp.float32), (0, CP - C))

    par = jnp.stack(
        [padc(params["alpha"]), padc(params["mu"]), padc(params["kappa"]),
         padc(params["gamma"]), padc(params["w"]), padc(params["u1_b"]),
         padc(params["u2_b"]), jnp.zeros((CP,), jnp.float32)]
        + [padc(params["bn_w"][i]) for i in range(4)]
        + [padc(params["bn_b"][i]) for i in range(4)],
        axis=1)                                                      # (CP, 16)

    # Boundary masks for the KK flat lane shifts (valid output positions).
    f = jnp.arange(NHW)
    hh = (f % (H * W)) // W
    ww = f % W
    masks = []
    for i in range(K):
        for j in range(K):
            dy, dx = i - P, j - P
            ok = ((hh + dy >= 0) & (hh + dy < H)
                  & (ww + dx >= 0) & (ww + dx < W))
            masks.append(ok.astype(jnp.float32))
    mask = jnp.stack(masks, axis=0)       # (KK, NHW)

    kernel = functools.partial(_hgru_kernel, K, P, W)
    vmem = pl.BlockSpec(memory_space=pltpu.MemorySpace.VMEM)

    # TODO(synk): for much larger N*H*W this single-shot all-in-VMEM design
    # should become a gridded kernel with a two-pass BatchNorm (per-tile
    # sum/sumsq then normalize) so it also fits v7x's 64 MiB VMEM and can use
    # both of its TensorCores; at NHW=512 a grid is pure overhead.
    out_cl = pl.pallas_call(
        kernel,
        out_shape=jax.ShapeDtypeStruct((CP, NHW), jnp.float32),
        in_specs=[vmem] * 6,
        out_specs=vmem,
        scratch_shapes=[pltpu.VMEM((KK * CP, NHW), MXU_DTYPE)],  # im2col patches
        compiler_params=pltpu.CompilerParams(
            vmem_limit_bytes=32 * 1024 * 1024),
    )(x_cl, h_cl, uw, wc, mask, par)

    out = out_cl[:C].reshape(C, N, H, W)
    return jnp.transpose(out, (1, 0, 2, 3))


def hgru_cell_ref(x, h, params):
    """Pure-JAX reference in NCHW, full f32 precision (mirrors PyTorch)."""
    C = x.shape[1]
    P = params["w_gate_inh"].shape[-1] // 2
    hi = jax.lax.Precision.HIGHEST

    def pc(v):
        return v.reshape(1, C, 1, 1)

    def bn(z, idx):
        mean = jnp.mean(z, axis=(0, 2, 3), keepdims=True)
        var = jnp.mean((z - mean) ** 2, axis=(0, 2, 3), keepdims=True)
        return ((z - mean) / jnp.sqrt(var + BN_EPS)
                * pc(params["bn_w"][idx]) + pc(params["bn_b"][idx]))

    def conv1x1(z, w, b):
        return jnp.einsum("nchw,oc->nohw", z, w, precision=hi) + pc(b)

    def convkk(z, w):
        return jax.lax.conv_general_dilated(
            z, w, (1, 1), [(P, P), (P, P)],
            dimension_numbers=("NCHW", "OIHW", "NCHW"), precision=hi)

    g1 = jax.nn.sigmoid(bn(conv1x1(h, params["u1_w"], params["u1_b"]), 0))
    c1 = bn(convkk(h * g1, params["w_gate_inh"]), 1)
    ns1 = jax.nn.relu(x - jax.nn.relu(c1 * (pc(params["alpha"]) * h
                                            + pc(params["mu"]))))
    g2 = jax.nn.sigmoid(bn(conv1x1(ns1, params["u2_w"], params["u2_b"]), 2))
    c2 = bn(convkk(ns1, params["w_gate_exc"]), 3)
    h2 = jax.nn.relu(pc(params["kappa"]) * ns1 + pc(params["gamma"]) * c2
                     + pc(params["w"]) * ns1 * c2)
    return (1.0 - g2) * h + g2 * h2


def make_params(key, C, K):
    ks = jax.random.split(key, 6)
    # Deterministic synthetic init (orthogonal for the 1x1 gates, scaled normal
    # for the spatial gate weights; values/signs follow the module's __init__).
    w_gate_inh = 0.1 * jax.random.normal(ks[0], (C, C, K, K), jnp.float32)
    w_gate_exc = 0.1 * jax.random.normal(ks[1], (C, C, K, K), jnp.float32)
    u1_w = jnp.linalg.qr(jax.random.normal(ks[2], (C, C), jnp.float32))[0]
    u2_w = jnp.linalg.qr(jax.random.normal(ks[3], (C, C), jnp.float32))[0]
    # bias: uniform(1, 7); the .log() in the PyTorch code is not in-place,
    # so the u1 bias stays uniform and the u2 bias is its negation.
    u1_b = jax.random.uniform(ks[4], (C,), jnp.float32, 1.0, 7.0)
    u2_b = -u1_b
    return dict(
        w_gate_inh=w_gate_inh, w_gate_exc=w_gate_exc,
        u1_w=u1_w, u2_w=u2_w, u1_b=u1_b, u2_b=u2_b,
        alpha=jnp.full((C,), 0.1, jnp.float32),
        gamma=jnp.full((C,), 1.0, jnp.float32),
        kappa=jnp.full((C,), 0.5, jnp.float32),
        w=jnp.full((C,), 0.5, jnp.float32),
        mu=jnp.full((C,), 1.0, jnp.float32),
        bn_w=jnp.full((4, C), 0.1, jnp.float32),   # bn weight init 0.1
        bn_b=jnp.zeros((4, C), jnp.float32),       # bn bias default 0
    )


if __name__ == "__main__":
    N, C, H, W, K = 2, C_HIDDEN, 16, 16, 3
    key = jax.random.PRNGKey(0)
    k_par, k_x, k_h = jax.random.split(key, 3)

    params = make_params(k_par, C, K)
    x = jax.random.normal(k_x, (N, C, H, W), jnp.float32)

    # timestep == 0: prev_state2 = xavier_normal_(empty_like(input_))
    fan_in, fan_out = C * H * W, N * H * W
    xavier_std = (2.0 / (fan_in + fan_out)) ** 0.5
    h0 = xavier_std * jax.random.normal(k_h, (N, C, H, W), jnp.float32)

    out = jax.block_until_ready(jax.jit(hgru_cell_pallas)(x, h0, params))
    ref = jax.block_until_ready(hgru_cell_ref(x, h0, params))

    max_diff = float(jnp.max(jnp.abs(out - ref)))
    assert out.shape == (N, C, H, W)
    # bf16 MXU operands (with f32 accumulation) give ~1e-3 max-abs error at
    # these magnitudes; BatchNorm renormalizes so it does not grow beyond that.
    assert max_diff < 3e-3, f"mismatch vs reference: {max_diff}"
    print("KERNEL_OK")
</pallas_src>

<mosaic_0001>
module attributes {stable_mosaic.version = 11 : i64} {
  func.func @_hgru_kernel(%arg0: memref<32x512xf32, #tpu.memory_space<vmem>>, %arg1: memref<32x512xf32, #tpu.memory_space<vmem>>, %arg2: memref<64x32xbf16, #tpu.memory_space<vmem>>, %arg3: memref<64x288xbf16, #tpu.memory_space<vmem>>, %arg4: memref<9x512xf32, #tpu.memory_space<vmem>>, %arg5: memref<32x16xf32, #tpu.memory_space<vmem>>, %arg6: memref<32x512xf32, #tpu.memory_space<vmem>>, %arg7: memref<288x512xbf16, #tpu.memory_space<vmem>>) attributes {dimension_semantics = [], scalar_prefetch = 0 : i64, scratch_operands = 1 : i64, tpu.core_type = #tpu.core_type<tc>} {
    %c0 = arith.constant 0 : index
    %c0_0 = arith.constant 0 : index
    %0 = vector.load %arg0[%c0, %c0_0] : memref<32x512xf32, #tpu.memory_space<vmem>>, vector<32x512xf32>
    %c0_1 = arith.constant 0 : index
    %c0_2 = arith.constant 0 : index
    %1 = vector.load %arg1[%c0_1, %c0_2] : memref<32x512xf32, #tpu.memory_space<vmem>>, vector<32x512xf32>
    %c0_3 = arith.constant 0 : index
    %c0_4 = arith.constant 0 : index
    %2 = vector.load %arg5[%c0_3, %c0_4] : memref<32x16xf32, #tpu.memory_space<vmem>>, vector<32x1xf32>
    %c0_5 = arith.constant 0 : index
    %c1 = arith.constant 1 : index
    %3 = vector.load %arg5[%c0_5, %c1] : memref<32x16xf32, #tpu.memory_space<vmem>>, vector<32x1xf32>
    %c0_6 = arith.constant 0 : index
    %c2 = arith.constant 2 : index
    %4 = vector.load %arg5[%c0_6, %c2] : memref<32x16xf32, #tpu.memory_space<vmem>>, vector<32x1xf32>
    %c0_7 = arith.constant 0 : index
    %c3 = arith.constant 3 : index
    %5 = vector.load %arg5[%c0_7, %c3] : memref<32x16xf32, #tpu.memory_space<vmem>>, vector<32x1xf32>
    %c0_8 = arith.constant 0 : index
    %c4 = arith.constant 4 : index
    %6 = vector.load %arg5[%c0_8, %c4] : memref<32x16xf32, #tpu.memory_space<vmem>>, vector<32x1xf32>
    %c0_9 = arith.constant 0 : index
    %c5 = arith.constant 5 : index
    %7 = vector.load %arg5[%c0_9, %c5] : memref<32x16xf32, #tpu.memory_space<vmem>>, vector<32x1xf32>
    %c0_10 = arith.constant 0 : index
    %c6 = arith.constant 6 : index
    %8 = vector.load %arg5[%c0_10, %c6] : memref<32x16xf32, #tpu.memory_space<vmem>>, vector<32x1xf32>
    %c0_11 = arith.constant 0 : index
    %c0_12 = arith.constant 0 : index
    %9 = vector.load %arg2[%c0_11, %c0_12] : memref<64x32xbf16, #tpu.memory_space<vmem>>, vector<32x32xbf16>
    %10 = arith.truncf %1 : vector<32x512xf32> to vector<32x512xbf16>
    %cst = arith.constant dense<0.000000e+00> : vector<32x512xf32>
    %11 = tpu.matmul %9, %10, %cst {dimension_numbers = #tpu.dot_dimension_numbers<[1], [0], [0], [1], [0, 0, 1, 1], [], []>} : vector<32x32xbf16>, vector<32x512xbf16>, vector<32x512xf32> -> vector<32x512xf32>
    %12 = vector.broadcast %7 : vector<32x1xf32> to vector<32x512xf32>
    %13 = arith.addf %11, %12 : vector<32x512xf32>
    %cst_13 = arith.constant dense<0.000000e+00> : vector<32xf32>
    %14 = vector.multi_reduction <add>, %13, %cst_13 [1] : vector<32x512xf32> to vector<32xf32>
    %15 = vector.shape_cast %14 : vector<32xf32> to vector<32x1xf32>
    %cst_14 = arith.constant 5.120000e+02 : f32
    %16 = vector.broadcast %cst_14 : f32 to vector<32x1xf32>
    %17 = arith.divf %15, %16 : vector<32x1xf32>
    %18 = vector.broadcast %17 : vector<32x1xf32> to vector<32x512xf32>
    %19 = arith.subf %13, %18 : vector<32x512xf32>
    %20 = arith.mulf %19, %19 : vector<32x512xf32>
    %cst_15 = arith.constant dense<0.000000e+00> : vector<32xf32>
    %21 = vector.multi_reduction <add>, %20, %cst_15 [1] : vector<32x512xf32> to vector<32xf32>
    %22 = vector.shape_cast %21 : vector<32xf32> to vector<32x1xf32>
    %cst_16 = arith.constant 5.120000e+02 : f32
    %23 = vector.broadcast %cst_16 : f32 to vector<32x1xf32>
    %24 = arith.divf %22, %23 : vector<32x1xf32>
    %25 = vector.broadcast %17 : vector<32x1xf32> to vector<32x512xf32>
    %26 = arith.subf %13, %25 : vector<32x512xf32>
    %cst_17 = arith.constant 1.000000e-03 : f32
    %27 = vector.broadcast %cst_17 : f32 to vector<32x1xf32>
    %28 = arith.addf %24, %27 : vector<32x1xf32>
    %29 = math.rsqrt %28 : vector<32x1xf32>
    %30 = vector.broadcast %29 : vector<32x1xf32> to vector<32x512xf32>
    %31 = arith.mulf %26, %30 : vector<32x512xf32>
    %c0_18 = arith.constant 0 : index
    %c8 = arith.constant 8 : index
    %32 = vector.load %arg5[%c0_18, %c8] : memref<32x16xf32, #tpu.memory_space<vmem>>, vector<32x1xf32>
    %33 = vector.broadcast %32 : vector<32x1xf32> to vector<32x512xf32>
    %34 = arith.mulf %31, %33 : vector<32x512xf32>
    %c0_19 = arith.constant 0 : index
    %c12 = arith.constant 12 : index
    %35 = vector.load %arg5[%c0_19, %c12] : memref<32x16xf32, #tpu.memory_space<vmem>>, vector<32x1xf32>
    %36 = vector.broadcast %35 : vector<32x1xf32> to vector<32x512xf32>
    %37 = arith.addf %34, %36 : vector<32x512xf32>
    %38 = arith.negf %37 : vector<32x512xf32>
    %39 = math.exp %38 : vector<32x512xf32>
    %cst_20 = arith.constant 1.000000e+00 : f32
    %40 = vector.broadcast %cst_20 : f32 to vector<32x512xf32>
    %41 = arith.addf %40, %39 : vector<32x512xf32>
    %42 = arith.divf %40, %41 : vector<32x512xf32>
    %43 = arith.mulf %1, %42 : vector<32x512xf32>
    %c17_i32 = arith.constant 17 : i32
    %44 = tpu.dynamic_rotate %43 by %c17_i32 dim 1 : vector<32x512xf32>, i32 -> vector<32x512xf32>
    %c0_21 = arith.constant 0 : index
    %c0_22 = arith.constant 0 : index
    %45 = vector.load %arg4[%c0_21, %c0_22] : memref<9x512xf32, #tpu.memory_space<vmem>>, vector<1x512xf32>
    %46 = vector.broadcast %45 : vector<1x512xf32> to vector<32x512xf32>
    %47 = arith.mulf %44, %46 : vector<32x512xf32>
    %48 = arith.truncf %47 : vector<32x512xf32> to vector<32x512xbf16>
    %c0_23 = arith.constant 0 : index
    %c0_24 = arith.constant 0 : index
    %49 = vector.load %arg7[%c0_23, %c0_24] : memref<288x512xbf16, #tpu.memory_space<vmem>>, vector<32x512xbf16>
    tpu.vector_store %arg7[%c0_23, %c0_24], %48 {strides = array<i32>} : memref<288x512xbf16, #tpu.memory_space<vmem>>, vector<32x512xbf16>,
    %c16_i32 = arith.constant 16 : i32
    %50 = tpu.dynamic_rotate %43 by %c16_i32 dim 1 : vector<32x512xf32>, i32 -> vector<32x512xf32>
    %c1_25 = arith.constant 1 : index
    %c0_26 = arith.constant 0 : index
    %51 = vector.load %arg4[%c1_25, %c0_26] : memref<9x512xf32, #tpu.memory_space<vmem>>, vector<1x512xf32>
    %52 = vector.broadcast %51 : vector<1x512xf32> to vector<32x512xf32>
    %53 = arith.mulf %50, %52 : vector<32x512xf32>
    %54 = arith.truncf %53 : vector<32x512xf32> to vector<32x512xbf16>
    %c32 = arith.constant 32 : index
    %c0_27 = arith.constant 0 : index
    %55 = vector.load %arg7[%c32, %c0_27] : memref<288x512xbf16, #tpu.memory_space<vmem>>, vector<32x512xbf16>
    tpu.vector_store %arg7[%c32, %c0_27], %54 {strides = array<i32>} : memref<288x512xbf16, #tpu.memory_space<vmem>>, vector<32x512xbf16>,
    %c15_i32 = arith.constant 15 : i32
    %56 = tpu.dynamic_rotate %43 by %c15_i32 dim 1 : vector<32x512xf32>, i32 -> vector<32x512xf32>
    %c2_28 = arith.constant 2 : index
    %c0_29 = arith.constant 0 : index
    %57 = vector.load %arg4[%c2_28, %c0_29] : memref<9x512xf32, #tpu.memory_space<vmem>>, vector<1x512xf32>
    %58 = vector.broadcast %57 : vector<1x512xf32> to vector<32x512xf32>
    %59 = arith.mulf %56, %58 : vector<32x512xf32>
    %60 = arith.truncf %59 : vector<32x512xf32> to vector<32x512xbf16>
    %c64 = arith.constant 64 : index
    %c0_30 = arith.constant 0 : index
    %61 = vector.load %arg7[%c64, %c0_30] : memref<288x512xbf16, #tpu.memory_space<vmem>>, vector<32x512xbf16>
    tpu.vector_store %arg7[%c64, %c0_30], %60 {strides = array<i32>} : memref<288x512xbf16, #tpu.memory_space<vmem>>, vector<32x512xbf16>,
    %c1_i32 = arith.constant 1 : i32
    %62 = tpu.dynamic_rotate %43 by %c1_i32 dim 1 : vector<32x512xf32>, i32 -> vector<32x512xf32>
    %c3_31 = arith.constant 3 : index
    %c0_32 = arith.constant 0 : index
    %63 = vector.load %arg4[%c3_31, %c0_32] : memref<9x512xf32, #tpu.memory_space<vmem>>, vector<1x512xf32>
    %64 = vector.broadcast %63 : vector<1x512xf32> to vector<32x512xf32>
    %65 = arith.mulf %62, %64 : vector<32x512xf32>
    %66 = arith.truncf %65 : vector<32x512xf32> to vector<32x512xbf16>
    %c96 = arith.constant 96 : index
    %c0_33 = arith.constant 0 : index
    %67 = vector.load %arg7[%c96, %c0_33] : memref<288x512xbf16, #tpu.memory_space<vmem>>, vector<32x512xbf16>
    tpu.vector_store %arg7[%c96, %c0_33], %66 {strides = array<i32>} : memref<288x512xbf16, #tpu.memory_space<vmem>>, vector<32x512xbf16>,
    %68 = arith.truncf %43 : vector<32x512xf32> to vector<32x512xbf16>
    %c128 = arith.constant 128 : index
    %c0_34 = arith.constant 0 : index
    %69 = vector.load %arg7[%c128, %c0_34] : memref<288x512xbf16, #tpu.memory_space<vmem>>, vector<32x512xbf16>
    tpu.vector_store %arg7[%c128, %c0_34], %68 {strides = array<i32>} : memref<288x512xbf16, #tpu.memory_space<vmem>>, vector<32x512xbf16>,
    %c511_i32 = arith.constant 511 : i32
    %70 = tpu.dynamic_rotate %43 by %c511_i32 dim 1 : vector<32x512xf32>, i32 -> vector<32x512xf32>
    %c5_35 = arith.constant 5 : index
    %c0_36 = arith.constant 0 : index
    %71 = vector.load %arg4[%c5_35, %c0_36] : memref<9x512xf32, #tpu.memory_space<vmem>>, vector<1x512xf32>
    %72 = vector.broadcast %71 : vector<1x512xf32> to vector<32x512xf32>
    %73 = arith.mulf %70, %72 : vector<32x512xf32>
    %74 = arith.truncf %73 : vector<32x512xf32> to vector<32x512xbf16>
    %c160 = arith.constant 160 : index
    %c0_37 = arith.constant 0 : index
    %75 = vector.load %arg7[%c160, %c0_37] : memref<288x512xbf16, #tpu.memory_space<vmem>>, vector<32x512xbf16>
    tpu.vector_store %arg7[%c160, %c0_37], %74 {strides = array<i32>} : memref<288x512xbf16, #tpu.memory_space<vmem>>, vector<32x512xbf16>,
    %c497_i32 = arith.constant 497 : i32
    %76 = tpu.dynamic_rotate %43 by %c497_i32 dim 1 : vector<32x512xf32>, i32 -> vector<32x512xf32>
    %c6_38 = arith.constant 6 : index
    %c0_39 = arith.constant 0 : index
    %77 = vector.load %arg4[%c6_38, %c0_39] : memref<9x512xf32, #tpu.memory_space<vmem>>, vector<1x512xf32>
    %78 = vector.broadcast %77 : vector<1x512xf32> to vector<32x512xf32>
    %79 = arith.mulf %76, %78 : vector<32x512xf32>
    %80 = arith.truncf %79 : vector<32x512xf32> to vector<32x512xbf16>
    %c192 = arith.constant 192 : index
    %c0_40 = arith.constant 0 : index
    %81 = vector.load %arg7[%c192, %c0_40] : memref<288x512xbf16, #tpu.memory_space<vmem>>, vector<32x512xbf16>
    tpu.vector_store %arg7[%c192, %c0_40], %80 {strides = array<i32>} : memref<288x512xbf16, #tpu.memory_space<vmem>>, vector<32x512xbf16>,
    %c496_i32 = arith.constant 496 : i32
    %82 = tpu.dynamic_rotate %43 by %c496_i32 dim 1 : vector<32x512xf32>, i32 -> vector<32x512xf32>
    %c7 = arith.constant 7 : index
    %c0_41 = arith.constant 0 : index
    %83 = vector.load %arg4[%c7, %c0_41] : memref<9x512xf32, #tpu.memory_space<vmem>>, vector<1x512xf32>
    %84 = vector.broadcast %83 : vector<1x512xf32> to vector<32x512xf32>
    %85 = arith.mulf %82, %84 : vector<32x512xf32>
    %86 = arith.truncf %85 : vector<32x512xf32> to vector<32x512xbf16>
    %c224 = arith.constant 224 : index
    %c0_42 = arith.constant 0 : index
    %87 = vector.load %arg7[%c224, %c0_42] : memref<288x512xbf16, #tpu.memory_space<vmem>>, vector<32x512xbf16>
    tpu.vector_store %arg7[%c224, %c0_42], %86 {strides = array<i32>} : memref<288x512xbf16, #tpu.memory_space<vmem>>, vector<32x512xbf16>,
    %c495_i32 = arith.constant 495 : i32
    %88 = tpu.dynamic_rotate %43 by %c495_i32 dim 1 : vector<32x512xf32>, i32 -> vector<32x512xf32>
    %c8_43 = arith.constant 8 : index
    %c0_44 = arith.constant 0 : index
    %89 = vector.load %arg4[%c8_43, %c0_44] : memref<9x512xf32, #tpu.memory_space<vmem>>, vector<1x512xf32>
    %90 = vector.broadcast %89 : vector<1x512xf32> to vector<32x512xf32>
    %91 = arith.mulf %88, %90 : vector<32x512xf32>
    %92 = arith.truncf %91 : vector<32x512xf32> to vector<32x512xbf16>
    %c256 = arith.constant 256 : index
    %c0_45 = arith.constant 0 : index
    %93 = vector.load %arg7[%c256, %c0_45] : memref<288x512xbf16, #tpu.memory_space<vmem>>, vector<32x512xbf16>
    tpu.vector_store %arg7[%c256, %c0_45], %92 {strides = array<i32>} : memref<288x512xbf16, #tpu.memory_space<vmem>>, vector<32x512xbf16>,
    %c0_46 = arith.constant 0 : index
    %c0_47 = arith.constant 0 : index
    %94 = vector.load %arg3[%c0_46, %c0_47] : memref<64x288xbf16, #tpu.memory_space<vmem>>, vector<32x288xbf16>
    %c0_48 = arith.constant 0 : index
    %c0_49 = arith.constant 0 : index
    %95 = vector.load %arg7[%c0_48, %c0_49] : memref<288x512xbf16, #tpu.memory_space<vmem>>, vector<288x512xbf16>
    %cst_50 = arith.constant dense<0.000000e+00> : vector<32x512xf32>
    %96 = tpu.matmul %94, %95, %cst_50 {dimension_numbers = #tpu.dot_dimension_numbers<[1], [0], [0], [1], [0, 0, 1, 1], [], []>} : vector<32x288xbf16>, vector<288x512xbf16>, vector<32x512xf32> -> vector<32x512xf32>
    %cst_51 = arith.constant dense<0.000000e+00> : vector<32xf32>
    %97 = vector.multi_reduction <add>, %96, %cst_51 [1] : vector<32x512xf32> to vector<32xf32>
    %98 = vector.shape_cast %97 : vector<32xf32> to vector<32x1xf32>
    %cst_52 = arith.constant 5.120000e+02 : f32
    %99 = vector.broadcast %cst_52 : f32 to vector<32x1xf32>
    %100 = arith.divf %98, %99 : vector<32x1xf32>
    %101 = vector.broadcast %100 : vector<32x1xf32> to vector<32x512xf32>
    %102 = arith.subf %96, %101 : vector<32x512xf32>
    %103 = arith.mulf %102, %102 : vector<32x512xf32>
    %cst_53 = arith.constant dense<0.000000e+00> : vector<32xf32>
    %104 = vector.multi_reduction <add>, %103, %cst_53 [1] : vector<32x512xf32> to vector<32xf32>
    %105 = vector.shape_cast %104 : vector<32xf32> to vector<32x1xf32>
    %cst_54 = arith.constant 5.120000e+02 : f32
    %106 = vector.broadcast %cst_54 : f32 to vector<32x1xf32>
    %107 = arith.divf %105, %106 : vector<32x1xf32>
    %108 = vector.broadcast %100 : vector<32x1xf32> to vector<32x512xf32>
    %109 = arith.subf %96, %108 : vector<32x512xf32>
    %cst_55 = arith.constant 1.000000e-03 : f32
    %110 = vector.broadcast %cst_55 : f32 to vector<32x1xf32>
    %111 = arith.addf %107, %110 : vector<32x1xf32>
    %112 = math.rsqrt %111 : vector<32x1xf32>
    %113 = vector.broadcast %112 : vector<32x1xf32> to vector<32x512xf32>
    %114 = arith.mulf %109, %113 : vector<32x512xf32>
    %c0_56 = arith.constant 0 : index
    %c9 = arith.constant 9 : index
    %115 = vector.load %arg5[%c0_56, %c9] : memref<32x16xf32, #tpu.memory_space<vmem>>, vector<32x1xf32>
    %116 = vector.broadcast %115 : vector<32x1xf32> to vector<32x512xf32>
    %117 = arith.mulf %114, %116 : vector<32x512xf32>
    %c0_57 = arith.constant 0 : index
    %c13 = arith.constant 13 : index
    %118 = vector.load %arg5[%c0_57, %c13] : memref<32x16xf32, #tpu.memory_space<vmem>>, vector<32x1xf32>
    %119 = vector.broadcast %118 : vector<32x1xf32> to vector<32x512xf32>
    %120 = arith.addf %117, %119 : vector<32x512xf32>
    %121 = vector.broadcast %2 : vector<32x1xf32> to vector<32x512xf32>
    %122 = arith.mulf %121, %1 : vector<32x512xf32>
    %123 = vector.broadcast %3 : vector<32x1xf32> to vector<32x512xf32>
    %124 = arith.addf %122, %123 : vector<32x512xf32>
    %125 = arith.mulf %120, %124 : vector<32x512xf32>
    %cst_58 = arith.constant 0.000000e+00 : f32
    %126 = vector.broadcast %cst_58 : f32 to vector<32x512xf32>
    %127 = arith.maximumf %125, %126 : vector<32x512xf32>
    %128 = arith.subf %0, %127 : vector<32x512xf32>
    %cst_59 = arith.constant 0.000000e+00 : f32
    %129 = vector.broadcast %cst_59 : f32 to vector<32x512xf32>
    %130 = arith.maximumf %128, %129 : vector<32x512xf32>
    %c32_60 = arith.constant 32 : index
    %c0_61 = arith.constant 0 : index
    %131 = vector.load %arg2[%c32_60, %c0_61] : memref<64x32xbf16, #tpu.memory_space<vmem>>, vector<32x32xbf16>
    %132 = arith.truncf %130 : vector<32x512xf32> to vector<32x512xbf16>
    %cst_62 = arith.constant dense<0.000000e+00> : vector<32x512xf32>
    %133 = tpu.matmul %131, %132, %cst_62 {dimension_numbers = #tpu.dot_dimension_numbers<[1], [0], [0], [1], [0, 0, 1, 1], [], []>} : vector<32x32xbf16>, vector<32x512xbf16>, vector<32x512xf32> -> vector<32x512xf32>
    %134 = vector.broadcast %8 : vector<32x1xf32> to vector<32x512xf32>
    %135 = arith.addf %133, %134 : vector<32x512xf32>
    %cst_63 = arith.constant dense<0.000000e+00> : vector<32xf32>
    %136 = vector.multi_reduction <add>, %135, %cst_63 [1] : vector<32x512xf32> to vector<32xf32>
    %137 = vector.shape_cast %136 : vector<32xf32> to vector<32x1xf32>
    %cst_64 = arith.constant 5.120000e+02 : f32
    %138 = vector.broadcast %cst_64 : f32 to vector<32x1xf32>
    %139 = arith.divf %137, %138 : vector<32x1xf32>
    %140 = vector.broadcast %139 : vector<32x1xf32> to vector<32x512xf32>
    %141 = arith.subf %135, %140 : vector<32x512xf32>
    %142 = arith.mulf %141, %141 : vector<32x512xf32>
    %cst_65 = arith.constant dense<0.000000e+00> : vector<32xf32>
    %143 = vector.multi_reduction <add>, %142, %cst_65 [1] : vector<32x512xf32> to vector<32xf32>
    %144 = vector.shape_cast %143 : vector<32xf32> to vector<32x1xf32>
    %cst_66 = arith.constant 5.120000e+02 : f32
    %145 = vector.broadcast %cst_66 : f32 to vector<32x1xf32>
    %146 = arith.divf %144, %145 : vector<32x1xf32>
    %147 = vector.broadcast %139 : vector<32x1xf32> to vector<32x512xf32>
    %148 = arith.subf %135, %147 : vector<32x512xf32>
    %cst_67 = arith.constant 1.000000e-03 : f32
    %149 = vector.broadcast %cst_67 : f32 to vector<32x1xf32>
    %150 = arith.addf %146, %149 : vector<32x1xf32>
    %151 = math.rsqrt %150 : vector<32x1xf32>
    %152 = vector.broadcast %151 : vector<32x1xf32> to vector<32x512xf32>
    %153 = arith.mulf %148, %152 : vector<32x512xf32>
    %c0_68 = arith.constant 0 : index
    %c10 = arith.constant 10 : index
    %154 = vector.load %arg5[%c0_68, %c10] : memref<32x16xf32, #tpu.memory_space<vmem>>, vector<32x1xf32>
    %155 = vector.broadcast %154 : vector<32x1xf32> to vector<32x512xf32>
    %156 = arith.mulf %153, %155 : vector<32x512xf32>
    %c0_69 = arith.constant 0 : index
    %c14 = arith.constant 14 : index
    %157 = vector.load %arg5[%c0_69, %c14] : memref<32x16xf32, #tpu.memory_space<vmem>>, vector<32x1xf32>
    %158 = vector.broadcast %157 : vector<32x1xf32> to vector<32x512xf32>
    %159 = arith.addf %156, %158 : vector<32x512xf32>
    %160 = arith.negf %159 : vector<32x512xf32>
    %161 = math.exp %160 : vector<32x512xf32>
    %cst_70 = arith.constant 1.000000e+00 : f32
    %162 = vector.broadcast %cst_70 : f32 to vector<32x512xf32>
    %163 = arith.addf %162, %161 : vector<32x512xf32>
    %164 = arith.divf %162, %163 : vector<32x512xf32>
    %c17_i32_71 = arith.constant 17 : i32
    %165 = tpu.dynamic_rotate %130 by %c17_i32_71 dim 1 : vector<32x512xf32>, i32 -> vector<32x512xf32>
    %c0_72 = arith.constant 0 : index
    %c0_73 = arith.constant 0 : index
    %166 = vector.load %arg4[%c0_72, %c0_73] : memref<9x512xf32, #tpu.memory_space<vmem>>, vector<1x512xf32>
    %167 = vector.broadcast %166 : vector<1x512xf32> to vector<32x512xf32>
    %168 = arith.mulf %165, %167 : vector<32x512xf32>
    %169 = arith.truncf %168 : vector<32x512xf32> to vector<32x512xbf16>
    %c0_74 = arith.constant 0 : index
    %c0_75 = arith.constant 0 : index
    %170 = vector.load %arg7[%c0_74, %c0_75] : memref<288x512xbf16, #tpu.memory_space<vmem>>, vector<32x512xbf16>
    tpu.vector_store %arg7[%c0_74, %c0_75], %169 {strides = array<i32>} : memref<288x512xbf16, #tpu.memory_space<vmem>>, vector<32x512xbf16>,
    %c16_i32_76 = arith.constant 16 : i32
    %171 = tpu.dynamic_rotate %130 by %c16_i32_76 dim 1 : vector<32x512xf32>, i32 -> vector<32x512xf32>
    %c1_77 = arith.constant 1 : index
    %c0_78 = arith.constant 0 : index
    %172 = vector.load %arg4[%c1_77, %c0_78] : memref<9x512xf32, #tpu.memory_space<vmem>>, vector<1x512xf32>
    %173 = vector.broadcast %172 : vector<1x512xf32> to vector<32x512xf32>
    %174 = arith.mulf %171, %173 : vector<32x512xf32>
    %175 = arith.truncf %174 : vector<32x512xf32> to vector<32x512xbf16>
    %c32_79 = arith.constant 32 : index
    %c0_80 = arith.constant 0 : index
    %176 = vector.load %arg7[%c32_79, %c0_80] : memref<288x512xbf16, #tpu.memory_space<vmem>>, vector<32x512xbf16>
    tpu.vector_store %arg7[%c32_79, %c0_80], %175 {strides = array<i32>} : memref<288x512xbf16, #tpu.memory_space<vmem>>, vector<32x512xbf16>,
    %c15_i32_81 = arith.constant 15 : i32
    %177 = tpu.dynamic_rotate %130 by %c15_i32_81 dim 1 : vector<32x512xf32>, i32 -> vector<32x512xf32>
    %c2_82 = arith.constant 2 : index
    %c0_83 = arith.constant 0 : index
    %178 = vector.load %arg4[%c2_82, %c0_83] : memref<9x512xf32, #tpu.memory_space<vmem>>, vector<1x512xf32>
    %179 = vector.broadcast %178 : vector<1x512xf32> to vector<32x512xf32>
    %180 = arith.mulf %177, %179 : vector<32x512xf32>
    %181 = arith.truncf %180 : vector<32x512xf32> to vector<32x512xbf16>
    %c64_84 = arith.constant 64 : index
    %c0_85 = arith.constant 0 : index
    %182 = vector.load %arg7[%c64_84, %c0_85] : memref<288x512xbf16, #tpu.memory_space<vmem>>, vector<32x512xbf16>
    tpu.vector_store %arg7[%c64_84, %c0_85], %181 {strides = array<i32>} : memref<288x512xbf16, #tpu.memory_space<vmem>>, vector<32x512xbf16>,
    %c1_i32_86 = arith.constant 1 : i32
    %183 = tpu.dynamic_rotate %130 by %c1_i32_86 dim 1 : vector<32x512xf32>, i32 -> vector<32x512xf32>
    %c3_87 = arith.constant 3 : index
    %c0_88 = arith.constant 0 : index
    %184 = vector.load %arg4[%c3_87, %c0_88] : memref<9x512xf32, #tpu.memory_space<vmem>>, vector<1x512xf32>
    %185 = vector.broadcast %184 : vector<1x512xf32> to vector<32x512xf32>
    %186 = arith.mulf %183, %185 : vector<32x512xf32>
    %187 = arith.truncf %186 : vector<32x512xf32> to vector<32x512xbf16>
    %c96_89 = arith.constant 96 : index
    %c0_90 = arith.constant 0 : index
    %188 = vector.load %arg7[%c96_89, %c0_90] : memref<288x512xbf16, #tpu.memory_space<vmem>>, vector<32x512xbf16>
    tpu.vector_store %arg7[%c96_89, %c0_90], %187 {strides = array<i32>} : memref<288x512xbf16, #tpu.memory_space<vmem>>, vector<32x512xbf16>,
    %189 = arith.truncf %130 : vector<32x512xf32> to vector<32x512xbf16>
    %c128_91 = arith.constant 128 : index
    %c0_92 = arith.constant 0 : index
    %190 = vector.load %arg7[%c128_91, %c0_92] : memref<288x512xbf16, #tpu.memory_space<vmem>>, vector<32x512xbf16>
    tpu.vector_store %arg7[%c128_91, %c0_92], %189 {strides = array<i32>} : memref<288x512xbf16, #tpu.memory_space<vmem>>, vector<32x512xbf16>,
    %c511_i32_93 = arith.constant 511 : i32
    %191 = tpu.dynamic_rotate %130 by %c511_i32_93 dim 1 : vector<32x512xf32>, i32 -> vector<32x512xf32>
    %c5_94 = arith.constant 5 : index
    %c0_95 = arith.constant 0 : index
    %192 = vector.load %arg4[%c5_94, %c0_95] : memref<9x512xf32, #tpu.memory_space<vmem>>, vector<1x512xf32>
    %193 = vector.broadcast %192 : vector<1x512xf32> to vector<32x512xf32>
    %194 = arith.mulf %191, %193 : vector<32x512xf32>
    %195 = arith.truncf %194 : vector<32x512xf32> to vector<32x512xbf16>
    %c160_96 = arith.constant 160 : index
    %c0_97 = arith.constant 0 : index
    %196 = vector.load %arg7[%c160_96, %c0_97] : memref<288x512xbf16, #tpu.memory_space<vmem>>, vector<32x512xbf16>
    tpu.vector_store %arg7[%c160_96, %c0_97], %195 {strides = array<i32>} : memref<288x512xbf16, #tpu.memory_space<vmem>>, vector<32x512xbf16>,
    %c497_i32_98 = arith.constant 497 : i32
    %197 = tpu.dynamic_rotate %130 by %c497_i32_98 dim 1 : vector<32x512xf32>, i32 -> vector<32x512xf32>
    %c6_99 = arith.constant 6 : index
    %c0_100 = arith.constant 0 : index
    %198 = vector.load %arg4[%c6_99, %c0_100] : memref<9x512xf32, #tpu.memory_space<vmem>>, vector<1x512xf32>
    %199 = vector.broadcast %198 : vector<1x512xf32> to vector<32x512xf32>
    %200 = arith.mulf %197, %199 : vector<32x512xf32>
    %201 = arith.truncf %200 : vector<32x512xf32> to vector<32x512xbf16>
    %c192_101 = arith.constant 192 : index
    %c0_102 = arith.constant 0 : index
    %202 = vector.load %arg7[%c192_101, %c0_102] : memref<288x512xbf16, #tpu.memory_space<vmem>>, vector<32x512xbf16>
    tpu.vector_store %arg7[%c192_101, %c0_102], %201 {strides = array<i32>} : memref<288x512xbf16, #tpu.memory_space<vmem>>, vector<32x512xbf16>,
    %c496_i32_103 = arith.constant 496 : i32
    %203 = tpu.dynamic_rotate %130 by %c496_i32_103 dim 1 : vector<32x512xf32>, i32 -> vector<32x512xf32>
    %c7_104 = arith.constant 7 : index
    %c0_105 = arith.constant 0 : index
    %204 = vector.load %arg4[%c7_104, %c0_105] : memref<9x512xf32, #tpu.memory_space<vmem>>, vector<1x512xf32>
    %205 = vector.broadcast %204 : vector<1x512xf32> to vector<32x512xf32>
    %206 = arith.mulf %203, %205 : vector<32x512xf32>
    %207 = arith.truncf %206 : vector<32x512xf32> to vector<32x512xbf16>
    %c224_106 = arith.constant 224 : index
    %c0_107 = arith.constant 0 : index
    %208 = vector.load %arg7[%c224_106, %c0_107] : memref<288x512xbf16, #tpu.memory_space<vmem>>, vector<32x512xbf16>
    tpu.vector_store %arg7[%c224_106, %c0_107], %207 {strides = array<i32>} : memref<288x512xbf16, #tpu.memory_space<vmem>>, vector<32x512xbf16>,
    %c495_i32_108 = arith.constant 495 : i32
    %209 = tpu.dynamic_rotate %130 by %c495_i32_108 dim 1 : vector<32x512xf32>, i32 -> vector<32x512xf32>
    %c8_109 = arith.constant 8 : index
    %c0_110 = arith.constant 0 : index
    %210 = vector.load %arg4[%c8_109, %c0_110] : memref<9x512xf32, #tpu.memory_space<vmem>>, vector<1x512xf32>
    %211 = vector.broadcast %210 : vector<1x512xf32> to vector<32x512xf32>
    %212 = arith.mulf %209, %211 : vector<32x512xf32>
    %213 = arith.truncf %212 : vector<32x512xf32> to vector<32x512xbf16>
    %c256_111 = arith.constant 256 : index
    %c0_112 = arith.constant 0 : index
    %214 = vector.load %arg7[%c256_111, %c0_112] : memref<288x512xbf16, #tpu.memory_space<vmem>>, vector<32x512xbf16>
    tpu.vector_store %arg7[%c256_111, %c0_112], %213 {strides = array<i32>} : memref<288x512xbf16, #tpu.memory_space<vmem>>, vector<32x512xbf16>,
    %c32_113 = arith.constant 32 : index
    %c0_114 = arith.constant 0 : index
    %215 = vector.load %arg3[%c32_113, %c0_114] : memref<64x288xbf16, #tpu.memory_space<vmem>>, vector<32x288xbf16>
    %c0_115 = arith.constant 0 : index
    %c0_116 = arith.constant 0 : index
    %216 = vector.load %arg7[%c0_115, %c0_116] : memref<288x512xbf16, #tpu.memory_space<vmem>>, vector<288x512xbf16>
    %cst_117 = arith.constant dense<0.000000e+00> : vector<32x512xf32>
    %217 = tpu.matmul %215, %216, %cst_117 {dimension_numbers = #tpu.dot_dimension_numbers<[1], [0], [0], [1], [0, 0, 1, 1], [], []>} : vector<32x288xbf16>, vector<288x512xbf16>, vector<32x512xf32> -> vector<32x512xf32>
    %cst_118 = arith.constant dense<0.000000e+00> : vector<32xf32>
    %218 = vector.multi_reduction <add>, %217, %cst_118 [1] : vector<32x512xf32> to vector<32xf32>
    %219 = vector.shape_cast %218 : vector<32xf32> to vector<32x1xf32>
    %cst_119 = arith.constant 5.120000e+02 : f32
    %220 = vector.broadcast %cst_119 : f32 to vector<32x1xf32>
    %221 = arith.divf %219, %220 : vector<32x1xf32>
    %222 = vector.broadcast %221 : vector<32x1xf32> to vector<32x512xf32>
    %223 = arith.subf %217, %222 : vector<32x512xf32>
    %224 = arith.mulf %223, %223 : vector<32x512xf32>
    %cst_120 = arith.constant dense<0.000000e+00> : vector<32xf32>
    %225 = vector.multi_reduction <add>, %224, %cst_120 [1] : vector<32x512xf32> to vector<32xf32>
    %226 = vector.shape_cast %225 : vector<32xf32> to vector<32x1xf32>
    %cst_121 = arith.constant 5.120000e+02 : f32
    %227 = vector.broadcast %cst_121 : f32 to vector<32x1xf32>
    %228 = arith.divf %226, %227 : vector<32x1xf32>
    %229 = vector.broadcast %221 : vector<32x1xf32> to vector<32x512xf32>
    %230 = arith.subf %217, %229 : vector<32x512xf32>
    %cst_122 = arith.constant 1.000000e-03 : f32
    %231 = vector.broadcast %cst_122 : f32 to vector<32x1xf32>
    %232 = arith.addf %228, %231 : vector<32x1xf32>
    %233 = math.rsqrt %232 : vector<32x1xf32>
    %234 = vector.broadcast %233 : vector<32x1xf32> to vector<32x512xf32>
    %235 = arith.mulf %230, %234 : vector<32x512xf32>
    %c0_123 = arith.constant 0 : index
    %c11 = arith.constant 11 : index
    %236 = vector.load %arg5[%c0_123, %c11] : memref<32x16xf32, #tpu.memory_space<vmem>>, vector<32x1xf32>
    %237 = vector.broadcast %236 : vector<32x1xf32> to vector<32x512xf32>
    %238 = arith.mulf %235, %237 : vector<32x512xf32>
    %c0_124 = arith.constant 0 : index
    %c15 = arith.constant 15 : index
    %239 = vector.load %arg5[%c0_124, %c15] : memref<32x16xf32, #tpu.memory_space<vmem>>, vector<32x1xf32>
    %240 = vector.broadcast %239 : vector<32x1xf32> to vector<32x512xf32>
    %241 = arith.addf %238, %240 : vector<32x512xf32>
    %242 = vector.broadcast %4 : vector<32x1xf32> to vector<32x512xf32>
    %243 = arith.mulf %242, %130 : vector<32x512xf32>
    %244 = vector.broadcast %5 : vector<32x1xf32> to vector<32x512xf32>
    %245 = arith.mulf %244, %241 : vector<32x512xf32>
    %246 = arith.addf %243, %245 : vector<32x512xf32>
    %247 = vector.broadcast %6 : vector<32x1xf32> to vector<32x512xf32>
    %248 = arith.mulf %247, %130 : vector<32x512xf32>
    %249 = arith.mulf %248, %241 : vector<32x512xf32>
    %250 = arith.addf %246, %249 : vector<32x512xf32>
    %cst_125 = arith.constant 0.000000e+00 : f32
    %251 = vector.broadcast %cst_125 : f32 to vector<32x512xf32>
    %252 = arith.maximumf %250, %251 : vector<32x512xf32>
    %cst_126 = arith.constant 1.000000e+00 : f32
    %253 = vector.broadcast %cst_126 : f32 to vector<32x512xf32>
    %254 = arith.subf %253, %164 : vector<32x512xf32>
    %255 = arith.mulf %254, %1 : vector<32x512xf32>
    %256 = arith.mulf %164, %252 : vector<32x512xf32>
    %257 = arith.addf %255, %256 : vector<32x512xf32>
    %c0_127 = arith.constant 0 : index
    %c0_128 = arith.constant 0 : index
    %258 = vector.load %arg6[%c0_127, %c0_128] : memref<32x512xf32, #tpu.memory_space<vmem>>, vector<32x512xf32>
    tpu.vector_store %arg6[%c0_127, %c0_128], %257 {strides = array<i32>} : memref<32x512xf32, #tpu.memory_space<vmem>>, vector<32x512xf32>,
    return
  }
}

</mosaic_0001>

<bundles_post_ra>
// kernel: hgru_cell_pallas.1
= control target key start
LH: loop header
LB: loop body
LE: loop exit
PB: predicated region body
PF: predicated region fallthrough
CT: control target
= control target key end

     0   :  { %v10238_v3 = vmov 0   ;;  %v6341_v8 = vmov 5   ;;  %vm102_vm0 = vcmask 261120   ;;  %v6342_v32 = vmov 8   ;;  %s6344_s17 = smov 1   ;;  %s6345_s18 = smov 15   ;;  %s10231_s1 = inlined_call_operand.vmem [shape: f32[32,512], index: 1, kind: input, shape index: {}]   ;;  %s10232_s2 = inlined_call_operand.vmem [shape: bf16[64,32], index: 2, kind: input, shape index: {}]   ;;  %s10233_s5 = inlined_call_operand.vmem [shape: f32[32,16], index: 5, kind: input, shape index: {}]   ;;  %s10234_s3 = inlined_call_operand.vmem [shape: bf16[64,288], index: 3, kind: input, shape index: {}]   ;;  %s10235_s4 = inlined_call_operand.vmem [shape: f32[9,512], index: 4, kind: input, shape index: {}]   ;;  %s10236_s0 = inlined_call_operand.vmem [shape: f32[32,512], index: 0, kind: input, shape index: {}]   ;;  %s10237_s6 = inlined_call_operand.vmem [shape: f32[32,512], index: 6, kind: output, shape index: {}]  }
   0x1   :  { %v6401_v0 = vld [vmem:[%s10231_s1 + $0x48] sm:$0xff]  ;;  %v6411_v2 = vld [vmem:[%s10231_s1 + $0x58] sm:$0xff]  ;;  %141 = vmatprep.mubr.bf16.mxu0 %v10238_v3  ;;  %194 = vmatprep.mubr.bf16.mxu1 %v10238_v3  ;;  %v6425_v6 = vld [vmem:[%s10231_s1 + $0x40] sm:$0xff]  ;;  %v6343_v33 = vmov 12   ;;  %s6346_s19 = smov 111   ;;  %s6347_s20 = smov 16  }
   0x2   :  { %v6406_v1 = vld [vmem:[%s10231_s1 + $0x68] sm:$0xff]  ;;  %v6420_v5 = vld [vmem:[%s10231_s1 + $0x78] sm:$0xff]  ;;  %v6430_v7 = vld [vmem:[%s10231_s1 + $0x60] sm:$0xff]  ;;  %6081 = vset.pattern.permute.xlu1 %v6341_v8  ;;  %6080 = vset.pattern.permute.xlu0 %v6341_v8  ;;  %s6348_s21 = smov 17   ;;  %s6349_s22 = smov 112  }
   0x3   :  { %v69_v4 = vpack.c.bf16 %v6406_v1, %v6401_v0  ;;  %v71_v9 = vpack.c.bf16 %v6420_v5, %v6411_v2  ;;  %v68_v10 = vpack.c.bf16 %v6430_v7, %v6425_v6  ;;  %v6439_v11 = vld [vmem:[%s10231_s1 + $0x50] sm:$0xff]  ;;  %v6449_v13 = vld [vmem:[%s10231_s1 + $0x8] sm:$0xff]  ;;  %v6461_v16 = vld [vmem:[%s10231_s1 + $0x18] sm:$0xff]  ;;  %s6350_s23 = smov 113   ;;  %s6351_s24 = smov 127  }
   0x4   :  { %v6444_v12 = vld [vmem:[%s10231_s1 + $0x70] sm:$0xff]  ;;  %v6456_v15 = vld [vmem:[%s10231_s1 + $0x28] sm:$0xff]  ;;  %v6466_v17 = vld [vmem:[%s10231_s1 + $0x38] sm:$0xff] }
   0x5   :  { %121 = vmatprep.subr.bf16.mxu0 %v69_v4  ;;  %v70_v14 = vpack.c.bf16 %v6444_v12, %v6439_v11  ;;  %174 = vmatprep.subr.bf16.mxu1 %v71_v9  ;;  %v65_v18 = vpack.c.bf16 %v6456_v15, %v6449_v13  ;;  %v67_v19 = vpack.c.bf16 %v6466_v17, %v6461_v16  ;;  %v6475_v20 = vld [vmem:[%s10231_s1] sm:$0xff]  ;;  %v6485_v22 = vld [vmem:[%s10231_s1 + $0x10] sm:$0xff]  ;;  %v57_v29 = vld [vmem:[%s10233_s5 + $0x8] sm:$0xff] }
   0x6   :  { %122 = vmatpush1.bf16.msra.mxu0 %v68_v10  ;;  %v6480_v21 = vld [vmem:[%s10231_s1 + $0x20] sm:$0xff]  ;;  %v6492_v24 = vld [vmem:[%s10231_s1 + $0x30] sm:$0xff]  ;;  %v59_v30 = vld [vmem:[%s10233_s5 + $0x18] sm:$0xff] }
   0x7   :  { %175 = vmatpush1.bf16.msra.mxu1 %v70_v14  ;;  %v64_v23 = vpack.c.bf16 %v6480_v21, %v6475_v20  ;;  %123 = vmatprep.subr.bf16.mxu0 %v65_v18  ;;  %v66_v25 = vpack.c.bf16 %v6492_v24, %v6485_v22  ;;  %v6112_v26 = vld [vmem:[%s10232_s2] sm:$0xff]   ;;  %v58_v28 = vld [vmem:[%s10233_s5 + $0x10] sm:$0xff]  ;;  %v6113_v31 = vld [vmem:[%s10232_s2 + $0x8] sm:$0xff]  }
   0x8   :  { %176 = vmatprep.subr.bf16.mxu1 %v67_v19  ;;  %v56_v27 = vld [vmem:[%s10233_s5] sm:$0xff]  ;;  %84 = vperm.xlu0 %6080, %v58_v28  }
   0x9   :  { %74 = vperm.xlu1 %6081, %v56_v27  }
   0xa   :  { %124 = vmatpush1.bf16.msra.mxu0 %v64_v23 }
   0xb   :  { %177 = vmatpush1.bf16.msra.mxu1 %v66_v25 }
   0xc   :  { %89 = vperm.xlu0 %6080, %v59_v30  }
   0xd   :  { %5405 = vmatmul.mubr.msk.bf16.vlgmr.msra.gmra.mxu0 %vm102_vm0, %v6112_v26  ;;  %79 = vperm.xlu1 %6081, %v57_v29  }
   0xe   :  { %5407 = vmatmul.mubr.msk.bf16.vlgmr.msra.gmra.mxu1 %vm102_vm0, %v6112_v26  ;;  %151 = vmatprep.mubr.bf16.mxu0 %v10238_v3 }
   0xf   :  { %204 = vmatprep.mubr.bf16.mxu1 %v10238_v3 }
  0x10   :  { %6083 = vset.pattern.permute.xlu0 %v6342_v32 }
  0x11   :  { %6082 = vset.pattern.permute.xlu1 %v6342_v32  ;;  %333 = vperm.xlu0 %6083, %v59_v30  }
  0x12   :  { %329 = vperm.xlu1 %6082, %v58_v28  }
  0x15   :  { %5406 = vmatmul.mubr.msk.bf16.gmra.mxu0 %vm102_vm0, %v6113_v31 }
  0x16   :  { %5408 = vmatmul.mubr.msk.bf16.gmra.mxu1 %vm102_vm0, %v6113_v31  ;;  %6084 = vset.pattern.permute.xlu1 %v6343_v33 }
  0x17   :  { %2266 = vmatprep.mubr.bf16.mxu1 %v10238_v3  ;;  %361 = vperm.xlu1 %6084, %v58_v28  }
  0x1b   :  { %365 = vperm.xlu1 %6084, %v59_v30  }
  0x1f   :  { %6085 = vset.pattern.permute.xlu1 %v6342_v32 }
  0x20   :  { %321 = vperm.xlu1 %6085, %v56_v27  }
  0x24   :  { %325 = vperm.xlu1 %6085, %v57_v29  }
  0x28   :  { %6086 = vset.pattern.permute.xlu1 %v6343_v33 }
  0x29   :  { %353 = vperm.xlu1 %6086, %v56_v27  }
  0x2d   :  { %357 = vperm.xlu1 %6086, %v57_v29  }
  0x83   :  { %v85_v42 = vpop.permute.xlu0 %84 }
  0x84   :  { %v75_v34 = vpop.permute.xlu1 %74 }
  0x87   :  { %v90_v60 = vpop.permute.xlu0 %89 }
  0x88   :  { %v80_v46 = vpop.permute.xlu1 %79 }
  0xcd   :  { %v143_v35 = vpop.f32.mrf.mxu0 }
  0xce   :  { %v196_v36 = vpop.f32.mrf.mxu1  ;;  %v144_v38 = vadd.f32 %v143_v35, %v75_v34  ;;  %v6527_v35 = vpop.permute.xlu1 %329 }
  0xcf   :  { %v145_v37 = vpop.f32.mrf.mxu0  ;;  %v197_v43 = vadd.f32 %v196_v36, %v75_v34 }
  0xd0   :  { %v146_v39 = vadd.f32 %v145_v37, %v75_v34  ;;  %v198_v40 = vpop.f32.mrf.mxu1 }
  0xd1   :  { %v147_v41 = vpop.f32.mrf.mxu0  ;;  %v199_v48 = vadd.f32 %v198_v40, %v75_v34 }
  0xd2   :  { %v215_v44 = vadd.f32 %v146_v39, %v144_v38  ;;  %v200_v45 = vpop.f32.mrf.mxu1  ;;  %v148_v49 = vadd.f32 %v147_v41, %v80_v46  ;;  %v6529_v36 = vpop.permute.xlu1 %361 }
  0xd3   :  { %v149_v47 = vpop.f32.mrf.mxu0  ;;  %v201_v54 = vadd.f32 %v200_v45, %v80_v46 }
  0xd4   :  { %v150_v50 = vadd.f32 %v149_v47, %v80_v46  ;;  %v202_v51 = vpop.f32.mrf.mxu1  ;;  %v216_v52 = vadd.f32 %v215_v44, %v197_v43 }
  0xd5   :  { %v153_v53 = vpop.f32.mrf.mxu0  ;;  %v203_v61 = vadd.f32 %v202_v51, %v80_v46 }
  0xd6   :  { %v220_v55 = vadd.f32 %v150_v50, %v148_v49  ;;  %v6521_v56 = vadd.f32 %v153_v53, %v85_v42  ;;  %v217_v57 = vadd.f32 %v216_v52, %v199_v48  ;;  %v206_v58 = vpop.f32.mrf.mxu1  ;;  %v6531_v37 = vpop.permute.xlu1 %365 }
  0xd7   :  { %v155_v59 = vpop.f32.mrf.mxu0  ;;  %v207_v63 = vadd.f32 %v206_v58, %v85_v42 }
  0xd8   :  { %v156_v62 = vadd.f32 %v155_v59, %v85_v42  ;;  %218 = vadd.xlane.f32.xlu0 %v217_v57  ;;  %v208_v4 = vpop.f32.mrf.mxu1  ;;  %v221_v8 = vadd.f32 %v220_v55, %v201_v54 }
  0xd9   :  { %v157_v9 = vpop.f32.mrf.mxu0  ;;  %v209_v18 = vadd.f32 %v208_v4, %v85_v42  ;;  %v6537_v42 = vpop.permute.xlu0 %333 }
  0xda   :  { %v225_v10 = vadd.f32 %v156_v62, %v6521_v56  ;;  %v6524_v14 = vadd.f32 %v157_v9, %v90_v60  ;;  %v222_v19 = vadd.f32 %v221_v8, %v203_v61  ;;  %v210_v23 = vpop.f32.mrf.mxu1  ;;  %v6533_v40 = vpop.permute.xlu1 %321 }
  0xdb   :  { %v159_v25 = vpop.f32.mrf.mxu0  ;;  %v211_v28 = vadd.f32 %v210_v23, %v90_v60 }
  0xdc   :  { %v226_v26 = vadd.f32 %v225_v10, %v207_v63  ;;  %v160_v27 = vadd.f32 %v159_v25, %v90_v60  ;;  %223 = vadd.xlane.f32.xlu0 %v222_v19  ;;  %v212_v29 = vpop.f32.mrf.mxu1 }
  0xdd   :  { %v213_v31 = vadd.f32 %v212_v29, %v90_v60 }
  0xde   :  { %v230_v30 = vadd.f32 %v160_v27, %v6524_v14  ;;  %v227_v32 = vadd.f32 %v226_v26, %v209_v18  ;;  %v6535_v41 = vpop.permute.xlu1 %325 }
  0xe0   :  { %v231_v33 = vadd.f32 %v230_v30, %v211_v28  ;;  %228 = vadd.xlane.f32.xlu0 %v227_v32 }
  0xe2   :  { %v232_v34 = vadd.f32 %v231_v33, %v213_v31  ;;  %v6539_v45 = vpop.permute.xlu1 %353 }
  0xe4   :  { %233 = vadd.xlane.f32.xlu1 %v232_v34 }
  0xe6   :  { %v6551_v60 = vpop.permute.xlu1 %357 }
 0x161   :  { %v219_v44 = vpop.xlane.xlu0 %218 }
 0x162   :  { %v236_v46 = vmul.f32 0.001953125, %v219_v44 }
 0x164   :  { %v6541_v47 = vsub.f32 %v144_v38, %v236_v46  ;;  %v6543_v51 = vsub.f32 %v146_v39, %v236_v46  ;;  %v6545_v52 = vsub.f32 %v197_v43, %v236_v46  ;;  %v243_v55 = vsub.f32 %v199_v48, %v236_v46 }
 0x165   :  { %v224_v53 = vpop.xlane.xlu0 %223 }
 0x166   :  { %v237_v57 = vmul.f32 0.001953125, %v224_v53  ;;  %v256_v58 = vmul.f32 %v6541_v47, %v6541_v47  ;;  %v257_v59 = vmul.f32 %v6543_v51, %v6543_v51  ;;  %v258_v4 = vmul.f32 %v6545_v52, %v6545_v52 }
 0x167   :  { %v259_v10 = vmul.f32 %v243_v55, %v243_v55 }
 0x168   :  { %v272_v38 = vadd.f32 %v257_v59, %v256_v58  ;;  %v244_v8 = vsub.f32 %v148_v49, %v237_v57  ;;  %v245_v39 = vsub.f32 %v150_v50, %v237_v57  ;;  %v6555_v9 = vsub.f32 %v201_v54, %v237_v57 }
 0x169   :  { %v229_v43 = vpop.xlane.xlu0 %228  ;;  %v247_v48 = vsub.f32 %v203_v61, %v237_v57 }
 0x16a   :  { %v238_v19 = vmul.f32 0.001953125, %v229_v43  ;;  %v273_v23 = vadd.f32 %v272_v38, %v258_v4  ;;  %v260_v25 = vmul.f32 %v244_v8, %v244_v8  ;;  %v261_v26 = vmul.f32 %v245_v39, %v245_v39 }
 0x16b   :  { %v262_v29 = vmul.f32 %v6555_v9, %v6555_v9  ;;  %v263_v50 = vmul.f32 %v247_v48, %v247_v48 }
 0x16c   :  { %v274_v30 = vadd.f32 %v273_v23, %v259_v10  ;;  %v277_v32 = vadd.f32 %v261_v26, %v260_v25  ;;  %v6560_v33 = vsub.f32 %v6521_v56, %v238_v19  ;;  %v6562_v34 = vsub.f32 %v156_v62, %v238_v19 }
 0x16d   :  { %v234_v49 = vpop.xlane.xlu1 %233  ;;  %v6564_v54 = vsub.f32 %v207_v63, %v238_v19  ;;  %v6566_v44 = vsub.f32 %v209_v18, %v238_v19 }
 0x16e   :  { %v239_v61 = vmul.f32 0.001953125, %v234_v49  ;;  %275 = vadd.xlane.f32.xlu1 %v274_v30  ;;  %v278_v46 = vadd.f32 %v277_v32, %v262_v29  ;;  %v264_v53 = vmul.f32 %v6560_v33, %v6560_v33  ;;  %v265_v57 = vmul.f32 %v6562_v34, %v6562_v34 }
 0x16f   :  { %v266_v56 = vmul.f32 %v6564_v54, %v6564_v54  ;;  %v267_v18 = vmul.f32 %v6566_v44, %v6566_v44 }
 0x170   :  { %v279_v62 = vadd.f32 %v278_v46, %v263_v50  ;;  %v282_v58 = vadd.f32 %v265_v57, %v264_v53  ;;  %v6575_v59 = vsub.f32 %v6524_v14, %v239_v61  ;;  %v6577_v63 = vsub.f32 %v160_v27, %v239_v61 }
 0x171   :  { %v6581_v4 = vsub.f32 %v211_v28, %v239_v61  ;;  %v6583_v43 = vsub.f32 %v213_v31, %v239_v61 }
 0x172   :  { %280 = vadd.xlane.f32.xlu0 %v279_v62  ;;  %v283_v38 = vadd.f32 %v282_v58, %v266_v56  ;;  %v268_v10 = vmul.f32 %v6575_v59, %v6575_v59  ;;  %v269_v19 = vmul.f32 %v6577_v63, %v6577_v63 }
 0x173   :  { %v270_v14 = vmul.f32 %v6581_v4, %v6581_v4  ;;  %v271_v28 = vmul.f32 %v6583_v43, %v6583_v43 }
 0x174   :  { %v284_v23 = vadd.f32 %v283_v38, %v267_v18  ;;  %v287_v27 = vadd.f32 %v269_v19, %v268_v10 }
 0x176   :  { %285 = vadd.xlane.f32.xlu1 %v284_v23  ;;  %v288_v25 = vadd.f32 %v287_v27, %v270_v14 }
 0x178   :  { %v289_v26 = vadd.f32 %v288_v25, %v271_v28 }
 0x17a   :  { %290 = vadd.xlane.f32.xlu0 %v289_v26 }
 0x1f7   :  { %v276_v31 = vpop.xlane.xlu1 %275 }
 0x1f8   :  { %v292_v29 = vmul.f32 0.001953125, %v276_v31 }
 0x1fa   :  { %v296_v30 = vadd.f32 0.001, %v292_v29 }
 0x1fb   :  { %v281_v32 = vpop.xlane.xlu0 %280 }
 0x1fc   :  { %6132 = vrsqrt.f32 %v296_v30  ;;  %v293_v49 = vmul.f32 0.001953125, %v281_v32 }
 0x1fe   :  { %v297_v50 = vadd.f32 0.001, %v293_v49 }
 0x200   :  { %6134 = vrsqrt.f32 %v297_v50 }
 0x209   :  { %v6133_v61 = vpop.eup %6132 }
 0x20a   :  { %v304_v46 = vmul.f32 %v6133_v61, %v6541_v47  ;;  %v305_v53 = vmul.f32 %v6133_v61, %v6543_v51  ;;  %v307_v57 = vmul.f32 %v6133_v61, %v243_v55 }
 0x20c   :  { %v336_v56 = vmul.f32 %v6533_v40, %v304_v46  ;;  %v337_v62 = vmul.f32 %v6533_v40, %v305_v53  ;;  %v339_v18 = vmul.f32 %v6533_v40, %v307_v57 }
 0x20d   :  { %v6135_v58 = vpop.eup %6134 }
 0x20e   :  { %v308_v38 = vmul.f32 %v6135_v58, %v244_v8  ;;  %v309_v10 = vmul.f32 %v6135_v58, %v245_v39  ;;  %v311_v19 = vmul.f32 %v6135_v58, %v247_v48  ;;  %v368_v23 = vadd.f32 %v6539_v45, %v336_v56 }
 0x20f   :  { %v369_v14 = vadd.f32 %v6539_v45, %v337_v62  ;;  %v371_v25 = vadd.f32 %v6539_v45, %v339_v18  ;;  %v306_v48 = vmul.f32 %v6133_v61, %v6545_v52  ;;  %v310_v50 = vmul.f32 %v6135_v58, %v6555_v9 }
 0x210   :  { %v340_v27 = vmul.f32 %v6535_v41, %v308_v38  ;;  %v341_v47 = vmul.f32 %v6535_v41, %v309_v10  ;;  %v343_v51 = vmul.f32 %v6535_v41, %v311_v19  ;;  %v5409_v55 = vmul.f32 -1.442695, %v368_v23 }
 0x211   :  { %v5410_v28 = vmul.f32 -1.442695, %v369_v14  ;;  %v5412_v29 = vmul.f32 -1.442695, %v371_v25  ;;  %v338_v49 = vmul.f32 %v6533_v40, %v306_v48  ;;  %v342_v46 = vmul.f32 %v6535_v41, %v310_v50 }
 0x212   :  { %6136 = vpow2.f32 %v5409_v55  ;;  %v372_v26 = vadd.f32 %v6551_v60, %v340_v27  ;;  %v373_v8 = vadd.f32 %v6551_v60, %v341_v47  ;;  %v375_v39 = vadd.f32 %v6551_v60, %v343_v51 }
 0x213   :  { %6138 = vpow2.f32 %v5410_v28  ;;  %v370_v53 = vadd.f32 %v6539_v45, %v338_v49  ;;  %v374_v52 = vadd.f32 %v6551_v60, %v342_v46 }
 0x214   :  { %v5413_v31 = vmul.f32 -1.442695, %v372_v26  ;;  %v5414_v30 = vmul.f32 -1.442695, %v373_v8  ;;  %v5416_v32 = vmul.f32 -1.442695, %v375_v39 }
 0x215   :  { %v5411_v56 = vmul.f32 -1.442695, %v370_v53  ;;  %v5415_v40 = vmul.f32 -1.442695, %v374_v52 }
 0x216   :  { %6140 = vpow2.f32 %v5413_v31 }
 0x217   :  { %6142 = vpow2.f32 %v5412_v29 }
 0x218   :  { %6144 = vpow2.f32 %v5414_v30  ;;  %v286_v30 = vpop.xlane.xlu1 %285 }
 0x219   :  { %6146 = vpow2.f32 %v5416_v32  ;;  %v291_v32 = vpop.xlane.xlu0 %290 }
 0x21a   :  { %v295_v49 = vmul.f32 0.001953125, %v291_v32 }
 0x21c   :  { %v299_v50 = vadd.f32 0.001, %v295_v49 }
 0x21f   :  { %v6137_v57 = vpop.eup %6136 }
 0x220   :  { %v432_v61 = vadd.f32 1.0, %v6137_v57  ;;  %v6139_v62 = vpop.eup %6138 }
 0x221   :  { %v433_v18 = vadd.f32 1.0, %v6139_v62 }
 0x222   :  { %6148 = vrcp.f32 %v432_v61 }
 0x223   :  { %v6141_v38 = vpop.eup %6140  ;;  %6150 = vpow2.f32 %v5411_v56 }
 0x224   :  { %6152 = vrcp.f32 %v433_v18  ;;  %v436_v9 = vadd.f32 1.0, %v6141_v38  ;;  %v6143_v58 = vpop.eup %6142 }
 0x225   :  { %v6145_v10 = vpop.eup %6144  ;;  %v435_v19 = vadd.f32 1.0, %v6143_v58 }
 0x226   :  { %6154 = vrcp.f32 %v436_v9  ;;  %v6147_v41 = vpop.eup %6146  ;;  %v437_v23 = vadd.f32 1.0, %v6145_v10 }
 0x227   :  { %6156 = vpow2.f32 %v5415_v40  ;;  %v439_v45 = vadd.f32 1.0, %v6147_v41 }
 0x228   :  { %6158 = vrcp.f32 %v435_v19 }
 0x229   :  { %6160 = vrcp.f32 %v437_v23 }
 0x22a   :  { %6162 = vrcp.f32 %v439_v45 }
 0x22f   :  { %v6149_v60 = vpop.eup %6148 }
 0x230   :  { %v6151_v14 = vpop.eup %6150  ;;  %v6614_v27 = vmul.f32 %v6149_v60, %v6475_v20 }
 0x231   :  { %v6153_v47 = vpop.eup %6152  ;;  %v434_v26 = vadd.f32 1.0, %v6151_v14 }
 0x232   :  { %10403 = vst [vmem:[#allocation3_spill] sm:$0xff] %v6614_v27  ;;  %929 = vrot.lane.b32.xlu0 %v6614_v27, %s6344_s17  ;;  %v6619_v28 = vmul.f32 %v6153_v47, %v6449_v13 }
 0x233   :  { %v6155_v51 = vpop.eup %6154  ;;  %6164 = vrcp.f32 %v434_v26 }
 0x234   :  { %v6157_v55 = vpop.eup %6156  ;;  %10404 = vst [vmem:[#allocation4_spill] sm:$0xff] %v6619_v28  ;;  %v6622_v25 = vmul.f32 %v6155_v51, %v6480_v21 }
 0x235   :  { %v6159_v8 = vpop.eup %6158  ;;  %v438_v13 = vadd.f32 1.0, %v6157_v55 }
 0x236   :  { %10405 = vst [vmem:[#allocation5_spill] sm:$0xff] %v6622_v25  ;;  %v6161_v39 = vpop.eup %6160  ;;  %937 = vrot.lane.b32.xlu0 %v6619_v28, %s6344_s17  ;;  %931 = vrot.lane.b32.xlu1 %v6622_v25, %s6344_s17  ;;  %v6629_v20 = vmul.f32 %v6159_v8, %v6461_v16 }
 0x237   :  { %v6632_v48 = vmul.f32 %v6161_v39, %v6456_v15  ;;  %v6163_v31 = vpop.eup %6162  ;;  %6166 = vrcp.f32 %v438_v13 }
 0x238   :  { %10406 = vst [vmem:[#allocation6_spill] sm:$0xff] %v6629_v20  ;;  %v6639_v21 = vmul.f32 %v6163_v31, %v6466_v17 }
 0x239   :  { %10407 = vst [vmem:[#allocation7_spill] sm:$0xff] %v6632_v48 }
 0x23a   :  { %953 = vrot.lane.b32.xlu0 %v6629_v20, %s6344_s17  ;;  %939 = vrot.lane.b32.xlu1 %v6632_v48, %s6344_s17  ;;  %10408 = vst [vmem:[#allocation8_spill] sm:$0xff] %v6639_v21 }
 0x23e   :  { %785 = vrot.lane.b32.xlu0 %v6614_v27, %s6345_s18  ;;  %955 = vrot.lane.b32.xlu1 %v6639_v21, %s6344_s17 }
 0x240   :  { %v6165_v15 = vpop.eup %6164 }
 0x241   :  { %v6654_v16 = vmul.f32 %v6165_v15, %v6485_v22  ;;  %v294_v22 = vmul.f32 0.001953125, %v286_v30 }
 0x242   :  { %793 = vrot.lane.b32.xlu0 %v6619_v28, %s6345_s18  ;;  %787 = vrot.lane.b32.xlu1 %v6622_v25, %s6345_s18 }
 0x243   :  { %10409 = vst [vmem:[#allocation9_spill] sm:$0xff] %v6654_v16 }
 0x244   :  { %v6167_v17 = vpop.eup %6166 }
 0x245   :  { %v6661_v29 = vmul.f32 %v6167_v17, %v6492_v24  ;;  %v298_v24 = vadd.f32 0.001, %v294_v22 }
 0x246   :  { %1569 = vrot.lane.b32.xlu0 %v6619_v28, %s6346_s19  ;;  %795 = vrot.lane.b32.xlu1 %v6632_v48, %s6345_s18 }
 0x247   :  { %10410 = vst [vmem:[#allocation10_spill] sm:$0xff] %v6661_v29  ;;  %6168 = vrsqrt.f32 %v298_v24 }
 0x248   :  { %6170 = vrsqrt.f32 %v299_v50 }
 0x24a   :  { %1577 = vrot.lane.b32.xlu0 %v6654_v16, %s6346_s19  ;;  %1571 = vrot.lane.b32.xlu1 %v6632_v48, %s6346_s19 }
 0x24e   :  { %809 = vrot.lane.b32.xlu0 %v6629_v20, %s6345_s18  ;;  %1579 = vrot.lane.b32.xlu1 %v6661_v29, %s6346_s19 }
 0x252   :  { %1561 = vrot.lane.b32.xlu0 %v6614_v27, %s6346_s19  ;;  %811 = vrot.lane.b32.xlu1 %v6639_v21, %s6345_s18 }
 0x254   :  { %v6169_v46 = vpop.eup %6168 }
 0x255   :  { %v313_v53 = vmul.f32 %v6169_v46, %v6562_v34  ;;  %v315_v57 = vmul.f32 %v6169_v46, %v6566_v44  ;;  %v312_v56 = vmul.f32 %v6169_v46, %v6560_v33  ;;  %v6171_v61 = vpop.eup %6170  ;;  %v314_v23 = vmul.f32 %v6169_v46, %v6564_v54 }
 0x256   :  { %641 = vrot.lane.b32.xlu0 %v6614_v27, %s6347_s20  ;;  %1563 = vrot.lane.b32.xlu1 %v6622_v25, %s6346_s19  ;;  %v316_v18 = vmul.f32 %v6171_v61, %v6575_v59  ;;  %v317_v44 = vmul.f32 %v6171_v61, %v6577_v63  ;;  %v319_v59 = vmul.f32 %v6171_v61, %v6583_v43 }
 0x257   :  { %v345_v52 = vmul.f32 %v6527_v35, %v313_v53  ;;  %v347_v34 = vmul.f32 %v6527_v35, %v315_v57  ;;  %v344_v62 = vmul.f32 %v6527_v35, %v312_v56  ;;  %v346_v14 = vmul.f32 %v6527_v35, %v314_v23 }
 0x258   :  { %v348_v40 = vmul.f32 %v6537_v42, %v316_v18  ;;  %v349_v19 = vmul.f32 %v6537_v42, %v317_v44  ;;  %v351_v45 = vmul.f32 %v6537_v42, %v319_v59  ;;  %v318_v35 = vmul.f32 %v6171_v61, %v6581_v4 }
 0x259   :  { %v377_v38 = vadd.f32 %v6529_v36, %v345_v52  ;;  %v379_v33 = vadd.f32 %v6529_v36, %v347_v34  ;;  %v376_v58 = vadd.f32 %v6529_v36, %v344_v62  ;;  %v378_v54 = vadd.f32 %v6529_v36, %v346_v14 }
 0x25a   :  { %649 = vrot.lane.b32.xlu0 %v6619_v28, %s6347_s20  ;;  %643 = vrot.lane.b32.xlu1 %v6622_v25, %s6347_s20  ;;  %v380_v63 = vadd.f32 %v6531_v37, %v348_v40  ;;  %v381_v60 = vadd.f32 %v6531_v37, %v349_v19  ;;  %v383_v51 = vadd.f32 %v6531_v37, %v351_v45 }
 0x25b   :  { %v5418_v9 = vmul.f32 -1.442695, %v377_v38  ;;  %v5420_v10 = vmul.f32 -1.442695, %v379_v33  ;;  %v5417_v41 = vmul.f32 -1.442695, %v376_v58  ;;  %v350_v36 = vmul.f32 %v6537_v42, %v318_v35 }
 0x25c   :  { %v5421_v43 = vmul.f32 -1.442695, %v380_v63  ;;  %v5422_v47 = vmul.f32 -1.442695, %v381_v60  ;;  %v5424_v55 = vmul.f32 -1.442695, %v383_v51 }
 0x25d   :  { %6172 = vpow2.f32 %v5418_v9  ;;  %v5419_v8 = vmul.f32 -1.442695, %v378_v54  ;;  %v382_v4 = vadd.f32 %v6531_v37, %v350_v36 }
 0x25e   :  { %945 = vrot.lane.b32.xlu0 %v6654_v16, %s6344_s17  ;;  %651 = vrot.lane.b32.xlu1 %v6632_v48, %s6347_s20  ;;  %6174 = vpow2.f32 %v5420_v10 }
 0x25f   :  { %6176 = vpow2.f32 %v5417_v41  ;;  %v5423_v42 = vmul.f32 -1.442695, %v382_v4 }
 0x260   :  { %6178 = vpow2.f32 %v5421_v43 }
 0x261   :  { %6180 = vpow2.f32 %v5422_v47 }
 0x262   :  { %665 = vrot.lane.b32.xlu0 %v6629_v20, %s6347_s20  ;;  %947 = vrot.lane.b32.xlu1 %v6661_v29, %s6344_s17  ;;  %6182 = vpow2.f32 %v5424_v55 }
 0x263   :  { %6184 = vpow2.f32 %v5419_v8 }
 0x266   :  { %496 = vrot.lane.b32.xlu0 %v6614_v27, %s6348_s21  ;;  %667 = vrot.lane.b32.xlu1 %v6639_v21, %s6347_s20 }
 0x26a   :  { %504 = vrot.lane.b32.xlu0 %v6619_v28, %s6348_s21  ;;  %498 = vrot.lane.b32.xlu1 %v6622_v25, %s6348_s21  ;;  %v6173_v26 = vpop.eup %6172 }
 0x26b   :  { %v6175_v39 = vpop.eup %6174  ;;  %v441_v13 = vadd.f32 1.0, %v6173_v26 }
 0x26c   :  { %v6177_v31 = vpop.eup %6176  ;;  %v443_v15 = vadd.f32 1.0, %v6175_v39 }
 0x26d   :  { %6186 = vrcp.f32 %v441_v13  ;;  %v440_v17 = vadd.f32 1.0, %v6177_v31  ;;  %v6179_v30 = vpop.eup %6178 }
 0x26e   :  { %801 = vrot.lane.b32.xlu0 %v6654_v16, %s6345_s18  ;;  %506 = vrot.lane.b32.xlu1 %v6632_v48, %s6348_s21  ;;  %6188 = vrcp.f32 %v443_v15  ;;  %v444_v22 = vadd.f32 1.0, %v6179_v30  ;;  %v6181_v24 = vpop.eup %6180 }
 0x26f   :  { %6190 = vrcp.f32 %v440_v17  ;;  %v445_v32 = vadd.f32 1.0, %v6181_v24  ;;  %v6183_v49 = vpop.eup %6182 }
 0x270   :  { %6192 = vrcp.f32 %v444_v22  ;;  %v6185_v37 = vpop.eup %6184  ;;  %v447_v50 = vadd.f32 1.0, %v6183_v49 }
 0x271   :  { %6194 = vpow2.f32 %v5423_v42  ;;  %v442_v56 = vadd.f32 1.0, %v6185_v37 }
 0x272   :  { %520 = vrot.lane.b32.xlu0 %v6629_v20, %s6348_s21  ;;  %803 = vrot.lane.b32.xlu1 %v6661_v29, %s6345_s18  ;;  %6196 = vrcp.f32 %v445_v32 }
 0x273   :  { %6198 = vrcp.f32 %v447_v50 }
 0x274   :  { %6200 = vrcp.f32 %v442_v56 }
 0x276   :  { %657 = vrot.lane.b32.xlu0 %v6654_v16, %s6347_s20  ;;  %522 = vrot.lane.b32.xlu1 %v6639_v21, %s6348_s21 }
 0x27a   :  { %1425 = vrot.lane.b32.xlu0 %v6619_v28, %s6349_s22  ;;  %659 = vrot.lane.b32.xlu1 %v6661_v29, %s6347_s20  ;;  %v6187_v46 = vpop.eup %6186 }
 0x27b   :  { %v6189_v53 = vpop.eup %6188  ;;  %v6772_v57 = vmul.f32 %v6187_v46, %v6401_v0 }
 0x27c   :  { %v6191_v52 = vpop.eup %6190  ;;  %v6781_v34 = vmul.f32 %v6189_v53, %v6411_v2 }
 0x27d   :  { %10411 = vst [vmem:[#allocation11_spill] sm:$0xff] %v6772_v57  ;;  %v6784_v62 = vmul.f32 %v6191_v52, %v6425_v6  ;;  %v6193_v0 = vpop.eup %6192 }
 0x27e   :  { %1433 = vrot.lane.b32.xlu0 %v6654_v16, %s6349_s22  ;;  %1427 = vrot.lane.b32.xlu1 %v6632_v48, %s6349_s22  ;;  %10412 = vst [vmem:[#allocation12_spill] sm:$0xff] %v6781_v34  ;;  %v6195_v18 = vpop.eup %6194  ;;  %v6795_v44 = vmul.f32 %v6193_v0, %v6430_v7 }
 0x27f   :  { %10413 = vst [vmem:[#allocation13_spill] sm:$0xff] %v6784_v62  ;;  %v6197_v2 = vpop.eup %6196  ;;  %v446_v58 = vadd.f32 1.0, %v6195_v18 }
 0x280   :  { %10414 = vst [vmem:[#allocation14_spill] sm:$0xff] %v6795_v44  ;;  %v6806_v9 = vmul.f32 %v6197_v2, %v6406_v1  ;;  %v6199_v59 = vpop.eup %6198 }
 0x281   :  { %v6817_v19 = vmul.f32 %v6199_v59, %v6420_v5  ;;  %6202 = vrcp.f32 %v446_v58  ;;  %v6201_v41 = vpop.eup %6200 }
 0x282   :  { %1417 = vrot.lane.b32.xlu0 %v6614_v27, %s6349_s22  ;;  %1435 = vrot.lane.b32.xlu1 %v6661_v29, %s6349_s22  ;;  %10415 = vst [vmem:[#allocation15_spill] sm:$0xff] %v6806_v9  ;;  %v6828_v23 = vmul.f32 %v6201_v41, %v6439_v11 }
 0x283   :  { %10416 = vst [vmem:[#allocation16_spill] sm:$0xff] %v6817_v19 }
 0x284   :  { %10418 = vst [vmem:[#allocation18_spill] sm:$0xff] %v6828_v23 }
 0x286   :  { %512 = vrot.lane.b32.xlu0 %v6654_v16, %s6348_s21  ;;  %1419 = vrot.lane.b32.xlu1 %v6622_v25, %s6349_s22 }
 0x28a   :  { %1281 = vrot.lane.b32.xlu0 %v6619_v28, %s6350_s23  ;;  %514 = vrot.lane.b32.xlu1 %v6661_v29, %s6348_s21 }
 0x28e   :  { %1289 = vrot.lane.b32.xlu0 %v6654_v16, %s6350_s23  ;;  %1283 = vrot.lane.b32.xlu1 %v6632_v48, %s6350_s23  ;;  %v6203_v60 = vpop.eup %6202 }
 0x28f   :  { %v6855_v51 = vmul.f32 %v6203_v60, %v6444_v12 }
 0x291   :  { %10422 = vst [vmem:[#allocation22_spill] sm:$0xff] %v6855_v51 }
 0x292   :  { %1273 = vrot.lane.b32.xlu0 %v6614_v27, %s6350_s23  ;;  %1291 = vrot.lane.b32.xlu1 %v6661_v29, %s6350_s23 }
 0x296   :  { %1137 = vrot.lane.b32.xlu0 %v6619_v28, %s6351_s24  ;;  %1275 = vrot.lane.b32.xlu1 %v6622_v25, %s6350_s23 }
 0x29a   :  { %1145 = vrot.lane.b32.xlu0 %v6654_v16, %s6351_s24  ;;  %1139 = vrot.lane.b32.xlu1 %v6632_v48, %s6351_s24 }
 0x29e   :  { %1441 = vrot.lane.b32.xlu0 %v6629_v20, %s6349_s22  ;;  %1147 = vrot.lane.b32.xlu1 %v6661_v29, %s6351_s24 }
 0x2a2   :  { %941 = vrot.lane.b32.xlu0 %v6772_v57, %s6344_s17  ;;  %1443 = vrot.lane.b32.xlu1 %v6639_v21, %s6349_s22 }
 0x2a4   :  { %v6778_v61 = vpop.permute.xlu0 %929 }
 0x2a6   :  { %957 = vrot.lane.b32.xlu0 %v6781_v34, %s6344_s17  ;;  %933 = vrot.lane.b32.xlu1 %v6784_v62, %s6344_s17 }
 0x2a8   :  { %v6790_v38 = vpop.permute.xlu1 %931  ;;  %v6792_v33 = vpop.permute.xlu0 %937 }
 0x2aa   :  { %789 = vrot.lane.b32.xlu0 %v6784_v62, %s6345_s18  ;;  %935 = vrot.lane.b32.xlu1 %v6795_v44, %s6344_s17 }
 0x2ac   :  { %v6801_v6 = vpop.permute.xlu1 %939  ;;  %v6803_v40 = vpop.permute.xlu0 %953 }
 0x2ae   :  { %797 = vrot.lane.b32.xlu0 %v6772_v57, %s6345_s18  ;;  %943 = vrot.lane.b32.xlu1 %v6806_v9, %s6344_s17 }
 0x2b0   :  { %v6812_v7 = vpop.permute.xlu1 %955  ;;  %v6814_v10 = vpop.permute.xlu0 %785 }
 0x2b2   :  { %1573 = vrot.lane.b32.xlu0 %v6772_v57, %s6346_s19  ;;  %959 = vrot.lane.b32.xlu1 %v6817_v19, %s6344_s17 }
 0x2b4   :  { %v6823_v1 = vpop.permute.xlu1 %787  ;;  %v6825_v63 = vpop.permute.xlu0 %793 }
 0x2b5   :  { %10417 = vst [vmem:[#allocation17_spill] sm:$0xff] %v6825_v63 }
 0x2b6   :  { %1581 = vrot.lane.b32.xlu0 %v6828_v23, %s6346_s19  ;;  %791 = vrot.lane.b32.xlu1 %v6795_v44, %s6345_s18 }
 0x2b8   :  { %v6834_v5 = vpop.permute.xlu1 %795  ;;  %v6836_v45 = vpop.permute.xlu0 %1569 }
 0x2b9   :  { %10419 = vst [vmem:[#allocation19_spill] sm:$0xff] %v6834_v5 }
 0x2ba   :  { %813 = vrot.lane.b32.xlu0 %v6781_v34, %s6345_s18  ;;  %799 = vrot.lane.b32.xlu1 %v6806_v9, %s6345_s18 }
 0x2bc   :  { %v6842_v43 = vpop.permute.xlu1 %1571  ;;  %v6844_v11 = vpop.permute.xlu0 %1577 }
 0x2bd   :  { %10420 = vst [vmem:[#allocation20_spill] sm:$0xff] %v6844_v11 }
 0x2be   :  { %1565 = vrot.lane.b32.xlu0 %v6784_v62, %s6346_s19  ;;  %1575 = vrot.lane.b32.xlu1 %v6806_v9, %s6346_s19 }
 0x2c0   :  { %v6850_v14 = vpop.permute.xlu1 %1579  ;;  %v6852_v47 = vpop.permute.xlu0 %809 }
 0x2c1   :  { %10421 = vst [vmem:[#allocation21_spill] sm:$0xff] %v6850_v14 }
 0x2c2   :  { %645 = vrot.lane.b32.xlu0 %v6784_v62, %s6347_s20  ;;  %1583 = vrot.lane.b32.xlu1 %v6855_v51, %s6346_s19 }
 0x2c4   :  { %v6861_v54 = vpop.permute.xlu1 %811  ;;  %v6863_v55 = vpop.permute.xlu0 %1561 }
 0x2c6   :  { %653 = vrot.lane.b32.xlu0 %v6772_v57, %s6347_s20  ;;  %815 = vrot.lane.b32.xlu1 %v6817_v19, %s6345_s18 }
 0x2c8   :  { %v6869_v26 = vpop.permute.xlu1 %1563  ;;  %v6871_v12 = vpop.permute.xlu0 %641 }
 0x2c9   :  { %10423 = vst [vmem:[#allocation23_spill] sm:$0xff] %v6869_v26 }
 0x2ca   :  { %949 = vrot.lane.b32.xlu0 %v6828_v23, %s6344_s17  ;;  %1567 = vrot.lane.b32.xlu1 %v6795_v44, %s6346_s19 }
 0x2cc   :  { %v6877_v35 = vpop.permute.xlu1 %643  ;;  %v6879_v8 = vpop.permute.xlu0 %649 }
 0x2ce   :  { %669 = vrot.lane.b32.xlu0 %v6781_v34, %s6347_s20  ;;  %647 = vrot.lane.b32.xlu1 %v6795_v44, %s6347_s20 }
 0x2d0   :  { %v6885_v39 = vpop.permute.xlu1 %651  ;;  %v6887_v13 = vpop.permute.xlu0 %945 }
 0x2d2   :  { %500 = vrot.lane.b32.xlu0 %v6784_v62, %s6348_s21  ;;  %655 = vrot.lane.b32.xlu1 %v6806_v9, %s6347_s20 }
 0x2d4   :  { %v6893_v31 = vpop.permute.xlu1 %947  ;;  %v6895_v36 = vpop.permute.xlu0 %665 }
 0x2d6   :  { %508 = vrot.lane.b32.xlu0 %v6772_v57, %s6348_s21  ;;  %951 = vrot.lane.b32.xlu1 %v6855_v51, %s6344_s17 }
 0x2d8   :  { %v6901_v15 = vpop.permute.xlu1 %667  ;;  %v6903_v17 = vpop.permute.xlu0 %496 }
 0x2da   :  { %805 = vrot.lane.b32.xlu0 %v6828_v23, %s6345_s18  ;;  %671 = vrot.lane.b32.xlu1 %v6817_v19, %s6347_s20 }
 0x2dc   :  { %v6909_v30 = vpop.permute.xlu1 %498  ;;  %v6911_v4 = vpop.permute.xlu0 %504 }
 0x2de   :  { %524 = vrot.lane.b32.xlu0 %v6781_v34, %s6348_s21  ;;  %502 = vrot.lane.b32.xlu1 %v6795_v44, %s6348_s21 }
 0x2e0   :  { %v6917_v22 = vpop.permute.xlu1 %506  ;;  %v6919_v24 = vpop.permute.xlu0 %801 }
 0x2e1   :  { %10424 = vst [vmem:[#allocation24_spill] sm:$0xff] %v6919_v24 }
 0x2e2   :  { %661 = vrot.lane.b32.xlu0 %v6828_v23, %s6347_s20  ;;  %510 = vrot.lane.b32.xlu1 %v6806_v9, %s6348_s21 }
 0x2e4   :  { %v6925_v42 = vpop.permute.xlu1 %803  ;;  %v6927_v32 = vpop.permute.xlu0 %520 }
 0x2e5   :  { %10425 = vst [vmem:[#allocation25_spill] sm:$0xff] %v6927_v32 }
 0x2e6   :  { %1429 = vrot.lane.b32.xlu0 %v6772_v57, %s6349_s22  ;;  %807 = vrot.lane.b32.xlu1 %v6855_v51, %s6345_s18 }
 0x2e8   :  { %v6933_v49 = vpop.permute.xlu1 %522  ;;  %v6935_v37 = vpop.permute.xlu0 %657 }
 0x2e9   :  { %10426 = vst [vmem:[#allocation26_spill] sm:$0xff] %v6933_v49  ;;  %10427 = vst [vmem:[#allocation27_spill] sm:$0xff] %v6935_v37 }
 0x2ea   :  { %1437 = vrot.lane.b32.xlu0 %v6828_v23, %s6349_s22  ;;  %526 = vrot.lane.b32.xlu1 %v6817_v19, %s6348_s21 }
 0x2ec   :  { %v6941_v50 = vpop.permute.xlu1 %659  ;;  %v6943_v46 = vpop.permute.xlu0 %1425 }
 0x2ed   :  { %10428 = vst [vmem:[#allocation28_spill] sm:$0xff] %v6941_v50  ;;  %10429 = vst [vmem:[#allocation29_spill] sm:$0xff] %v6943_v46 }
 0x2ee   :  { %1421 = vrot.lane.b32.xlu0 %v6784_v62, %s6349_s22  ;;  %663 = vrot.lane.b32.xlu1 %v6855_v51, %s6347_s20 }
 0x2f0   :  { %v6949_v53 = vpop.permute.xlu1 %1427  ;;  %v6951_v56 = vpop.permute.xlu0 %1433 }
 0x2f1   :  { %10430 = vst [vmem:[#allocation30_spill] sm:$0xff] %v6949_v53  ;;  %10431 = vst [vmem:[#allocation31_spill] sm:$0xff] %v6951_v56 }
 0x2f2   :  { %1431 = vrot.lane.b32.xlu1 %v6806_v9, %s6349_s22  ;;  %516 = vrot.lane.b32.xlu0 %v6828_v23, %s6348_s21 }
 0x2f4   :  { %v6957_v52 = vpop.permute.xlu1 %1435  ;;  %v6959_v0 = vpop.permute.xlu0 %1417 }
 0x2f5   :  { %10432 = vst [vmem:[#allocation32_spill] sm:$0xff] %v6957_v52  ;;  %10433 = vst [vmem:[#allocation33_spill] sm:$0xff] %v6959_v0 }
 0x2f6   :  { %1439 = vrot.lane.b32.xlu1 %v6855_v51, %s6349_s22  ;;  %1285 = vrot.lane.b32.xlu0 %v6772_v57, %s6350_s23 }
 0x2f8   :  { %v6965_v18 = vpop.permute.xlu1 %1419  ;;  %v6967_v2 = vpop.permute.xlu0 %512 }
 0x2f9   :  { %10434 = vst [vmem:[#allocation34_spill] sm:$0xff] %v6965_v18  ;;  %10435 = vst [vmem:[#allocation35_spill] sm:$0xff] %v6967_v2 }
 0x2fa   :  { %1423 = vrot.lane.b32.xlu1 %v6795_v44, %s6349_s22  ;;  %1293 = vrot.lane.b32.xlu0 %v6828_v23, %s6350_s23 }
 0x2fc   :  { %v6973_v58 = vpop.permute.xlu1 %514  ;;  %v6975_v59 = vpop.permute.xlu0 %1281 }
 0x2fd   :  { %10436 = vst [vmem:[#allocation36_spill] sm:$0xff] %v6973_v58  ;;  %10437 = vst [vmem:[#allocation37_spill] sm:$0xff] %v6975_v59 }
 0x2fe   :  { %518 = vrot.lane.b32.xlu1 %v6855_v51, %s6348_s21  ;;  %1277 = vrot.lane.b32.xlu0 %v6784_v62, %s6350_s23 }
 0x300   :  { %v6981_v41 = vpop.permute.xlu1 %1283  ;;  %v6983_v60 = vpop.permute.xlu0 %1289 }
 0x301   :  { %10438 = vst [vmem:[#allocation38_spill] sm:$0xff] %v6981_v41  ;;  %10439 = vst [vmem:[#allocation39_spill] sm:$0xff] %v6983_v60 }
 0x302   :  { %1287 = vrot.lane.b32.xlu1 %v6806_v9, %s6350_s23  ;;  %1141 = vrot.lane.b32.xlu0 %v6772_v57, %s6351_s24 }
 0x304   :  { %v6989_v3 = vpop.permute.xlu1 %1291  ;;  %v6991_v29 = vpop.permute.xlu0 %1273 }
 0x305   :  { %10440 = vst [vmem:[#allocation40_spill] sm:$0xff] %v6989_v3  ;;  %10441 = vst [vmem:[#allocation41_spill] sm:$0xff] %v6991_v29 }
 0x306   :  { %1295 = vrot.lane.b32.xlu1 %v6855_v51, %s6350_s23  ;;  %1149 = vrot.lane.b32.xlu0 %v6828_v23, %s6351_s24 }
 0x308   :  { %v6997_v16 = vpop.permute.xlu1 %1275  ;;  %v6999_v48 = vpop.permute.xlu0 %1137 }
 0x309   :  { %10442 = vst [vmem:[#allocation42_spill] sm:$0xff] %v6997_v16  ;;  %10443 = vst [vmem:[#allocation43_spill] sm:$0xff] %v6999_v48  ;;  %v528_v48 = vlaneseq  ;;  %v7047_v16 = vld [vmem:[%s10235_s4 + $0x3] ss:$8 sm:$0xf] }
 0x30a   :  { %1279 = vrot.lane.b32.xlu1 %v6795_v44, %s6350_s23  ;;  %1445 = vrot.lane.b32.xlu0 %v6781_v34, %s6349_s22 }
 0x30c   :  { %v7005_v28 = vpop.permute.xlu1 %1139  ;;  %v7007_v57 = vpop.permute.xlu0 %1145 }
 0x30d   :  { %10444 = vst [vmem:[#allocation44_spill] sm:$0xff] %v7005_v28  ;;  %10445 = vst [vmem:[#allocation45_spill] sm:$0xff] %v7007_v57 }
 0x30e   :  { %1143 = vrot.lane.b32.xlu1 %v6806_v9, %s6351_s24  ;;  %1133 = vrot.lane.b32.xlu0 %v6784_v62, %s6351_s24  ;;  %v7029_v62 = vshrl.u32 %v528_v48, 7 }
 0x310   :  { %v7013_v23 = vpop.permute.xlu1 %1147  ;;  %v7015_v29 = vpop.permute.xlu0 %1441  ;;  %v7060_v59 = vsub.s32 0, %v7029_v62 }
 0x311   :  { %10446 = vst [vmem:[#allocation46_spill] sm:$0xff] %v7013_v23  ;;  %10447 = vst [vmem:[#allocation47_spill] sm:$0xff] %v7015_v29 }
 0x312   :  { %1151 = vrot.lane.b32.xlu1 %v6855_v51, %s6351_s24  ;;  %1129 = vrot.lane.b32.xlu0 %v6614_v27, %s6351_s24  ;;  %v7033_v51 = vand.u32 127, %v528_v48  ;;  %v7040_v27 = vsub.s32 1, %v7029_v62  ;;  %v984_v46 = vrot.slane %v7047_v16, %v7060_v59 }
 0x314   :  { %v7021_v28 = vpop.permute.xlu1 %1443  ;;  %v7023_v57 = vpop.permute.xlu0 %941  ;;  %vm961_vm1 = vcmp.lt.s32.totalorder %v7033_v51, 1  ;;  %vm817_vm2 = vcmp.lt.s32.totalorder %v7033_v51, 15  ;;  %vm1593_vm3 = vcmp.lt.s32.totalorder %v7033_v51, 111  ;;  %vm673_vm4 = vcmp.lt.s32.totalorder %v7033_v51, 16 }
 0x315   :  { %10448 = vst [vmem:[#allocation48_spill] sm:$0xff] %v7021_v28  ;;  %v971_v2 = vsel %vm961_vm1, %v6790_v38, %v6801_v6  ;;  %v975_v37 = vsel %vm961_vm1, %v6812_v7, %v6790_v38  ;;  %vm530_vm5 = vcmp.lt.s32.totalorder %v7033_v51, 17  ;;  %vm1449_vm6 = vcmp.lt.s32.totalorder %v7033_v51, 112 }
 0x316   :  { %1447 = vrot.lane.b32.xlu1 %v6817_v19, %s6349_s22  ;;  %1301 = vrot.lane.b32.xlu0 %v6781_v34, %s6350_s23  ;;  %v1005_v38 = vmul.f32 %v984_v46, %v975_v37  ;;  %vm1305_vm7 = vcmp.lt.s32.totalorder %v7033_v51, 113  ;;  %vm1161_vm8 = vcmp.lt.s32.totalorder %v7033_v51, 127 }
 0x318   :  { %v934_v9 = vpop.permute.xlu1 %933  ;;  %v7031_v29 = vpop.permute.xlu0 %957 }
 0x319   :  { %v972_v48 = vsel %vm961_vm1, %v934_v9, %v7023_v57  ;;  %v976_v0 = vsel %vm961_vm1, %v7031_v29, %v934_v9 }
 0x31a   :  { %1135 = vrot.lane.b32.xlu1 %v6795_v44, %s6351_s24  ;;  %1297 = vrot.lane.b32.xlu0 %v6629_v20, %s6350_s23  ;;  %v988_v44 = vrot.slane %v7047_v16, %v7040_v27  ;;  %v1009_v50 = vmul.f32 %v984_v46, %v976_v0  ;;  %v7116_v0 = vld [vmem:[%s10235_s4 + $0x2] ss:$8 sm:$0xf] }
 0x31b   :  { %v844_v37 = vrot.slane %v7116_v0, %v7040_v27 }
 0x31c   :  { %v936_v23 = vpop.permute.xlu1 %935  ;;  %v7042_v28 = vpop.permute.xlu0 %789  ;;  %v1010_v58 = vmul.f32 %v988_v44, %v972_v48  ;;  %v970_v48 = vsel %vm961_vm1, %v6778_v61, %v6792_v33  ;;  %v1006_v52 = vmul.f32 %v988_v44, %v971_v2 }
 0x31e   :  { %1131 = vrot.lane.b32.xlu1 %v6622_v25, %s6351_s24  ;;  %1157 = vrot.lane.b32.xlu0 %v6781_v34, %s6351_s24  ;;  %v7069_v25 = vld [vmem:[%s10234_s3 + $0x4] ss:$12 sps:$4 sm:$0xff]  }
 0x31f   :  { %2213 = vmatprep.mubr.bf16.mxu0 %v7069_v25 }
 0x320   :  { %v7062_v60 = vpop.permute.xlu1 %943  ;;  %v7064_v41 = vpop.permute.xlu0 %797 }
 0x321   :  { %v973_v3 = vsel %vm961_vm1, %v936_v23, %v7062_v60 }
 0x322   :  { %v1014_v18 = vmul.f32 %v988_v44, %v973_v3  ;;  %1303 = vrot.lane.b32.xlu1 %v6817_v19, %s6350_s23  ;;  %1153 = vrot.lane.b32.xlu0 %v6629_v20, %s6351_s24 }
 0x324   :  { %v7088_v56 = vpop.permute.xlu1 %959  ;;  %v7090_v53 = vpop.permute.xlu0 %1573  ;;  %v5942_v3 = vpack.c.bf16 %v1014_v18, %v1010_v58  ;;  %v1002_v18 = vmul.f32 %v988_v44, %v970_v48 }
 0x325   :  { %v977_v9 = vsel %vm961_vm1, %v7088_v56, %v936_v23  ;;  %v974_v23 = vsel %vm961_vm1, %v6803_v40, %v6778_v61 }
 0x326   :  { %v1013_v49 = vmul.f32 %v984_v46, %v977_v9  ;;  %1299 = vrot.lane.b32.xlu1 %v6639_v21, %s6350_s23  ;;  %1589 = vrot.lane.b32.xlu0 %v6781_v34, %s6346_s19  ;;  %v5938_v44 = vpack.c.bf16 %v1006_v52, %v1002_v18  ;;  %v1001_v61 = vmul.f32 %v984_v46, %v974_v23 }
 0x327   :  { %2181 = vmatprep.subr.bf16.mxu0 %v5942_v3  ;;  %v840_v34 = vrot.slane %v7116_v0, %v7060_v59 }
 0x328   :  { %v5941_v2 = vpack.c.bf16 %v1013_v49, %v1009_v50  ;;  %v792_v58 = vpop.permute.xlu1 %791  ;;  %v7111_v32 = vpop.permute.xlu0 %1581  ;;  %v828_v49 = vsel %vm817_vm2, %v7042_v28, %v7064_v41  ;;  %v5937_v48 = vpack.c.bf16 %v1005_v38, %v1001_v61 }
 0x329   :  { %10449 = vst [vmem:[#allocation49_spill] sm:$0xff] %v7111_v32  ;;  %v866_v46 = vmul.f32 %v844_v37, %v828_v49  ;;  %v1600_v38 = vsel %vm1593_vm3, %v7090_v53, %v7111_v32 }
 0x32a   :  { %1159 = vrot.lane.b32.xlu1 %v6817_v19, %s6351_s24  ;;  %1585 = vrot.lane.b32.xlu0 %v6629_v20, %s6346_s19 }
 0x32b   :  { %2182 = vmatpush1.bf16.msra.mxu0 %v5941_v2 }
 0x32c   :  { %2183 = vmatprep.subr.bf16.mxu0 %v5938_v44  ;;  %v7129_v50 = vpop.permute.xlu1 %799  ;;  %v7131_v3 = vpop.permute.xlu0 %813  ;;  %v7143_v44 = vld [vmem:[%s10235_s4 + $0x20] ss:$8 sm:$0xf] }
 0x32d   :  { %10450 = vst [vmem:[#allocation50_spill] sm:$0xff] %v7129_v50  ;;  %v829_v52 = vsel %vm817_vm2, %v792_v58, %v7129_v50  ;;  %10452 = vst [vmem:[#allocation52_spill] sm:$0xff] %v7143_v44  ;;  %v1620_v61 = vrot.slane %v7143_v44, %v7040_v27  ;;  %v832_v20 = vsel %vm817_vm2, %v7131_v3, %v7042_v28 }
 0x32e   :  { %v870_v9 = vmul.f32 %v844_v37, %v829_v52  ;;  %1155 = vrot.lane.b32.xlu1 %v6639_v21, %s6351_s24  ;;  %v1599_v50 = vsel %vm1593_vm3, %v6842_v43, %v6850_v14  ;;  %v1603_v14 = vsel %vm1593_vm3, %v6869_v26, %v6842_v43 }
 0x32f   :  { %2184 = vmatpush1.bf16.msra.mxu0 %v5937_v48 }
 0x330   :  { %v1576_v18 = vpop.permute.xlu1 %1575  ;;  %v7138_v23 = vpop.permute.xlu0 %1565  ;;  %v5934_v2 = vpack.c.bf16 %v870_v9, %v866_v46  ;;  %v827_v46 = vsel %vm817_vm2, %v6823_v1, %v6834_v5  ;;  %v1642_v9 = vmul.f32 %v1620_v61, %v1600_v38  ;;  %v1616_v5 = vrot.slane %v7143_v44, %v7060_v59 }
 0x331   :  { %10451 = vst [vmem:[#allocation51_spill] sm:$0xff] %v7138_v23  ;;  %v862_v32 = vmul.f32 %v844_v37, %v827_v46 }
 0x332   :  { %1591 = vrot.lane.b32.xlu1 %v6817_v19, %s6346_s19  ;;  %2185 = vmatprep.subr.bf16.mxu0 %v5934_v2  ;;  %v826_v19 = vsel %vm817_vm2, %v6814_v10, %v6825_v63  ;;  %v865_v63 = vmul.f32 %v840_v34, %v832_v20  ;;  %v1598_v20 = vsel %vm1593_vm3, %v6836_v45, %v6844_v11 }
 0x333   :  { %v858_v46 = vmul.f32 %v844_v37, %v826_v19  ;;  %v1634_v44 = vmul.f32 %v1620_v61, %v1598_v20  ;;  %v1637_v43 = vmul.f32 %v1616_v5, %v1603_v14  ;;  %v7240_v14 = vsub.s32 3, %v7029_v62 }
 0x334   :  { %v7154_v49 = vpop.permute.xlu1 %1583  ;;  %v7156_v48 = vpop.permute.xlu0 %645 }
 0x335   :  { %10453 = vst [vmem:[#allocation53_spill] sm:$0xff] %v7154_v49  ;;  %v1601_v52 = vsel %vm1593_vm3, %v1576_v18, %v7154_v49 }
 0x336   :  { %v1646_v2 = vmul.f32 %v1620_v61, %v1601_v52  ;;  %1587 = vrot.lane.b32.xlu1 %v6639_v21, %s6346_s19  ;;  %v831_v21 = vsel %vm817_vm2, %v6861_v54, %v6823_v1  ;;  %v830_v1 = vsel %vm817_vm2, %v6852_v47, %v6814_v10 }
 0x337   :  { %v861_v19 = vmul.f32 %v840_v34, %v831_v21  ;;  %v5930_v21 = vpack.c.bf16 %v862_v32, %v858_v46  ;;  %v10455_v32 = vmov 0  }
 0x338   :  { %v7177_v49 = vpop.permute.xlu1 %815  ;;  %v7179_v38 = vpop.permute.xlu0 %653  ;;  %v5982_v52 = vpack.c.bf16 %v1646_v2, %v1642_v9  ;;  %v7205_v2 = vld [vmem:[%s10233_s5 + $0x10] sm:$0xff] }
 0x339   :  { %10454 = vst [vmem:[#allocation54_spill] sm:$0xff] %v7177_v49  ;;  %v833_v28 = vsel %vm817_vm2, %v7177_v49, %v792_v58  ;;  %v1604_v58 = vsel %vm1593_vm3, %v7138_v23, %v7090_v53  ;;  %v1638_v53 = vmul.f32 %v1620_v61, %v1599_v50  ;;  %v1602_v50 = vsel %vm1593_vm3, %v6863_v55, %v6836_v45 }
 0x33a   :  { %v869_v9 = vmul.f32 %v840_v34, %v833_v28  ;;  %2246 = vmatprep.subr.bf16.mxu1 %v5982_v52  ;;  %v10290_v28 = vmov 9   ;;  %v7237_v45 = vsub.s32 2, %v7029_v62 }
 0x33b   :  { %6087 = vset.pattern.permute.xlu1 %v10290_v28  ;;  %6088 = vset.pattern.permute.xlu0 %v10290_v28 }
 0x33c   :  { %v5933_v37 = vpack.c.bf16 %v869_v9, %v865_v63  ;;  %v7211_v52 = vpop.permute.xlu1 %1567  ;;  %v950_v10 = vpop.permute.xlu0 %949  ;;  %2513 = vperm.xlu1 %6087, %v7205_v2   ;;  %v857_v63 = vmul.f32 %v840_v34, %v830_v1  ;;  %v1641_v9 = vmul.f32 %v1616_v5, %v1604_v58  ;;  %v7232_v34 = vld [vmem:[%s10235_s4 + $0x1] ss:$8 sm:$0xf]  ;;  %v963_v58 = vsel %vm961_vm1, %v6893_v31, %v6812_v7 }
 0x33d   :  { %v1605_v11 = vsel %vm1593_vm3, %v7211_v52, %v1576_v18  ;;  %v1633_v18 = vmul.f32 %v1616_v5, %v1602_v50  ;;  %v7264_v1 = vld [vmem:[%s10234_s3 + $0x8] ss:$12 sps:$4 sm:$0xff]   ;;  %v7283_v7 = vld [vmem:[%s10233_s5 + $0x18] sm:$0xff] }
 0x33e   :  { %v1645_v23 = vmul.f32 %v1616_v5, %v1605_v11  ;;  %2186 = vmatpush1.bf16.msra.mxu0 %v5933_v37  ;;  %v5929_v28 = vpack.c.bf16 %v861_v19, %v857_v63  ;;  %v5978_v11 = vpack.c.bf16 %v1638_v53, %v1634_v44  ;;  %v7249_v5 = vld [vmem:[%s10233_s5 + $0x10] sm:$0xff]  ;;  %v700_v44 = vrot.slane %v7232_v34, %v7040_v27 }
 0x33f   :  { %2187 = vmatprep.subr.bf16.mxu0 %v5930_v21  ;;  %v968_v19 = vsel %vm961_vm1, %v7023_v57, %v950_v10  ;;  %v996_v53 = vrot.slane %v7047_v16, %v7240_v14  ;;  %v964_v21 = vsel %vm961_vm1, %v950_v10, %v7031_v29  ;;  %v683_v57 = vsel %vm673_vm4, %v6877_v35, %v6885_v39 }
 0x340   :  { %v5981_v26 = vpack.c.bf16 %v1645_v23, %v1641_v9  ;;  %v648_v49 = vpop.permute.xlu1 %647  ;;  %v7227_v24 = vpop.permute.xlu0 %669  ;;  %6089 = vset.pattern.permute.xlu1 %v10455_v32  ;;  %v684_v23 = vsel %vm673_vm4, %v7156_v48, %v7179_v38  ;;  %v967_v29 = vsel %vm961_vm1, %v6801_v6, %v6893_v31  ;;  %v682_v31 = vsel %vm673_vm4, %v6871_v12, %v6879_v8 }
 0x341   :  { %2578 = vperm.xlu1 %6089, %v7249_v5   ;;  %v722_v20 = vmul.f32 %v700_v44, %v684_v23  ;;  %v1008_v50 = vmul.f32 %v996_v53, %v963_v58 }
 0x342   :  { %2188 = vmatpush1.bf16.msra.mxu0 %v5929_v28  ;;  %2247 = vmatpush1.bf16.msra.mxu1 %v5981_v26  ;;  %v5977_v26 = vpack.c.bf16 %v1637_v43, %v1633_v18  ;;  %v992_v28 = vrot.slane %v7047_v16, %v7237_v45  ;;  %v962_v16 = vsel %vm961_vm1, %v6887_v13, %v6803_v40 }
 0x343   :  { %2248 = vmatprep.subr.bf16.mxu1 %v5978_v11  ;;  %v1012_v40 = vmul.f32 %v996_v53, %v964_v21  ;;  %v718_v21 = vmul.f32 %v700_v44, %v683_v57  ;;  %v714_v57 = vmul.f32 %v700_v44, %v682_v31 }
 0x344   :  { %v7254_v61 = vpop.permute.xlu1 %655  ;;  %v7256_v62 = vpop.permute.xlu0 %500  ;;  %v1011_v43 = vmul.f32 %v992_v28, %v968_v19 }
 0x345   :  { %v685_v46 = vsel %vm673_vm4, %v648_v49, %v7254_v61  ;;  %2582 = vperm.xlu1 %6089, %v7283_v7  }
 0x346   :  { %v726_v37 = vmul.f32 %v700_v44, %v685_v46  ;;  %2249 = vmatpush1.bf16.msra.mxu1 %v5977_v26  ;;  %v966_v26 = vsel %vm961_vm1, %v6792_v33, %v6887_v13  ;;  %v1004_v46 = vmul.f32 %v996_v53, %v962_v16  ;;  %v7335_v33 = vld [vmem:[%s10234_s3 + $0x20] ss:$12 sps:$4 sm:$0xff]   ;;  %v5922_v44 = vpack.c.bf16 %v718_v21, %v714_v57 }
 0x348   :  { %v952_v10 = vpop.permute.xlu1 %951  ;;  %v7298_v63 = vpop.permute.xlu0 %508  ;;  %v5926_v9 = vpack.c.bf16 %v726_v37, %v722_v20  ;;  %v5940_v16 = vpack.c.bf16 %v1008_v50, %v1004_v46  ;;  %v819_v46 = vsel %vm817_vm2, %v6925_v42, %v6861_v54 }
 0x349   :  { %v965_v11 = vsel %vm961_vm1, %v952_v10, %v7088_v56  ;;  %v969_v18 = vsel %vm961_vm1, %v7062_v60, %v952_v10  ;;  %5582 = vmatmul.mubr.msk.bf16.vlgmr.msra.gmra.mxu1 %vm102_vm0, %v7264_v1  ;;  %v696_v56 = vrot.slane %v7232_v34, %v7060_v59  ;;  %v688_v60 = vsel %vm673_vm4, %v7227_v24, %v7156_v48 }
 0x34a   :  { %v1015_v23 = vmul.f32 %v992_v28, %v969_v18  ;;  %v1016_v6 = vmul.f32 %v996_v53, %v965_v11  ;;  %2189 = vmatprep.subr.bf16.mxu0 %v5926_v9  ;;  %2276 = vmatprep.mubr.bf16.mxu1 %v10455_v32  ;;  %v1007_v10 = vmul.f32 %v992_v28, %v967_v29 }
 0x34b   :  { %v687_v9 = vsel %vm673_vm4, %v6901_v15, %v6877_v35  ;;  %v721_v13 = vmul.f32 %v696_v56, %v688_v60  ;;  %v1003_v29 = vmul.f32 %v992_v28, %v966_v26  ;;  %v686_v35 = vsel %vm673_vm4, %v6895_v36, %v6871_v12 }
 0x34c   :  { %v5943_v58 = vpack.c.bf16 %v1015_v23, %v1011_v43  ;;  %v7323_v20 = vpop.permute.xlu1 %671  ;;  %v806_v19 = vpop.permute.xlu0 %805  ;;  %v5944_v37 = vpack.c.bf16 %v1016_v6, %v1012_v40  ;;  %v717_v43 = vmul.f32 %v696_v56, %v687_v9  ;;  %v7346_v23 = vld [vmem:[%s10235_s4] ss:$8 sm:$0xf]  ;;  %v713_v28 = vmul.f32 %v696_v56, %v686_v35 }
 0x34d   :  { %v689_v48 = vsel %vm673_vm4, %v7323_v20, %v648_v49  ;;  %v5939_v40 = vpack.c.bf16 %v1007_v10, %v1003_v29  ;;  %v541_v12 = vsel %vm530_vm5, %v7256_v62, %v7298_v63  ;;  %v556_v6 = vrot.slane %v7346_v23, %v7040_v27 }
 0x34e   :  { %v725_v53 = vmul.f32 %v696_v56, %v689_v48  ;;  %2287 = vmatprep.subr.bf16.mxu1 %v5944_v37  ;;  %v5921_v50 = vpack.c.bf16 %v717_v43, %v713_v28  ;;  %v848_v56 = vrot.slane %v7116_v0, %v7237_v45  ;;  %v7379_v10 = vrot.slane %v7232_v34, %v7237_v45 }
 0x34f   :  { %2288 = vmatpush1.bf16.msra.mxu1 %v5943_v58  ;;  %v552_v58 = vrot.slane %v7346_v23, %v7060_v59  ;;  %v578_v37 = vmul.f32 %v556_v6, %v541_v12  ;;  %v820_v9 = vsel %vm817_vm2, %v806_v19, %v7131_v3  ;;  %v824_v54 = vsel %vm817_vm2, %v7064_v41, %v806_v19  ;;  %v10458_v41 = vld [vmem:[#allocation19_spill] sm:$0xff] }
 0x350   :  { %v5925_v11 = vpack.c.bf16 %v725_v53, %v721_v13  ;;  %v503_v49 = vpop.permute.xlu1 %502  ;;  %2289 = vmatprep.subr.bf16.mxu1 %v5940_v16  ;;  %v7341_v18 = vpop.permute.xlu0 %524  ;;  %v540_v48 = vsel %vm530_vm5, %v6909_v30, %v6917_v22  ;;  %v10456_v13 = vld [vmem:[#allocation24_spill] sm:$0xff]  ;;  %v10457_v16 = vld [vmem:[#allocation17_spill] sm:$0xff]  ;;  %v823_v19 = vsel %vm817_vm2, %v10458_v41, %v6925_v42  ;;  %v867_v28 = vmul.f32 %v848_v56, %v824_v54 }
 0x351   :  { %5583 = vmatmul.mubr.msk.bf16.gmra.mxu1 %vm102_vm0, %v7335_v33  ;;  %v818_v53 = vsel %vm817_vm2, %v10456_v13, %v6852_v47  ;;  %v822_v57 = vsel %vm817_vm2, %v10457_v16, %v10456_v13  ;;  %v10460_v47 = vld [vmem:[#allocation50_spill] sm:$0xff]  ;;  %v708_v13 = vrot.slane %v7232_v34, %v7240_v14  ;;  %v545_v42 = vsel %vm530_vm5, %v7341_v18, %v7256_v62  ;;  %v10461_v16 = vld [vmem:[#allocation25_spill] sm:$0xff] }
 0x352   :  { %2190 = vmatpush1.bf16.msra.mxu0 %v5925_v11  ;;  %2319 = vmatprep.mubr.bf16.mxu1 %v7069_v25  ;;  %v852_v25 = vrot.slane %v7116_v0, %v7240_v14  ;;  %v539_v0 = vsel %vm530_vm5, %v6903_v17, %v6911_v4  ;;  %v10459_v11 = vld [vmem:[#allocation54_spill] sm:$0xff]  ;;  %v543_v54 = vsel %vm530_vm5, %v10461_v16, %v6903_v17 }
 0x353   :  { %2191 = vmatprep.subr.bf16.mxu0 %v5922_v44  ;;  %2290 = vmatpush1.bf16.msra.mxu1 %v5939_v40  ;;  %v10462_v34 = vld [vmem:[#allocation26_spill] sm:$0xff] }
 0x354   :  { %v7358_v31 = vpop.permute.xlu1 %510  ;;  %v662_v60 = vpop.permute.xlu0 %661  ;;  %v864_v43 = vmul.f32 %v852_v25, %v819_v46  ;;  %v868_v12 = vmul.f32 %v852_v25, %v820_v9  ;;  %v863_v46 = vmul.f32 %v848_v56, %v823_v19  ;;  %v544_v41 = vsel %vm530_vm5, %v10462_v34, %v6909_v30  ;;  %v10463_v19 = vld [vmem:[#allocation28_spill] sm:$0xff] }
 0x355   :  { %v542_v26 = vsel %vm530_vm5, %v503_v49, %v7358_v31  ;;  %v675_v17 = vsel %vm673_vm4, %v10463_v19, %v6901_v15  ;;  %v680_v30 = vsel %vm673_vm4, %v7179_v38, %v662_v60 }
 0x356   :  { %v582_v21 = vmul.f32 %v556_v6, %v542_v26  ;;  %2192 = vmatpush1.bf16.msra.mxu0 %v5921_v50  ;;  %v720_v38 = vmul.f32 %v708_v13, %v675_v17  ;;  %v10465_v17 = vld [vmem:[#allocation32_spill] sm:$0xff] }
 0x358   :  { %v808_v3 = vpop.permute.xlu1 %807  ;;  %v7399_v29 = vpop.permute.xlu0 %1429  ;;  %v5918_v35 = vpack.c.bf16 %v582_v21, %v578_v37  ;;  %v574_v37 = vmul.f32 %v556_v6, %v540_v48  ;;  %v860_v21 = vmul.f32 %v852_v25, %v818_v53  ;;  %v570_v48 = vmul.f32 %v556_v6, %v539_v0 }
 0x359   :  { %v821_v40 = vsel %vm817_vm2, %v808_v3, %v10459_v11  ;;  %v825_v44 = vsel %vm817_vm2, %v10460_v47, %v808_v3  ;;  %v859_v53 = vmul.f32 %v848_v56, %v822_v57  ;;  %v577_v11 = vmul.f32 %v552_v58, %v545_v42 }
 0x35a   :  { %v871_v50 = vmul.f32 %v848_v56, %v825_v44  ;;  %v872_v26 = vmul.f32 %v852_v25, %v821_v40  ;;  %2193 = vmatprep.subr.bf16.mxu0 %v5918_v35  ;;  %v5932_v47 = vpack.c.bf16 %v864_v43, %v860_v21  ;;  %v569_v6 = vmul.f32 %v552_v58, %v543_v54  ;;  %v10464_v44 = vld [vmem:[#allocation27_spill] sm:$0xff] }
 0x35b   :  { %v676_v56 = vsel %vm673_vm4, %v662_v60, %v7227_v24  ;;  %v5931_v0 = vpack.c.bf16 %v863_v46, %v859_v53  ;;  %v573_v57 = vmul.f32 %v552_v58, %v544_v41  ;;  %v674_v15 = vsel %vm673_vm4, %v10464_v44, %v6895_v36 }
 0x35c   :  { %v5935_v9 = vpack.c.bf16 %v871_v50, %v867_v28  ;;  %v7421_v3 = vpop.permute.xlu1 %526  ;;  %v7423_v35 = vpop.permute.xlu0 %1437  ;;  %v5936_v25 = vpack.c.bf16 %v872_v26, %v868_v12  ;;  %v679_v24 = vsel %vm673_vm4, %v6885_v39, %v10463_v19  ;;  %v723_v36 = vmul.f32 %v7379_v10, %v680_v30  ;;  %v10468_v30 = vld [vmem:[#allocation29_spill] sm:$0xff] }
 0x35d   :  { %v546_v62 = vsel %vm530_vm5, %v7421_v3, %v503_v49  ;;  %v5914_v49 = vpack.c.bf16 %v574_v37, %v570_v48  ;;  %v724_v50 = vmul.f32 %v708_v13, %v676_v56  ;;  %v678_v39 = vsel %vm673_vm4, %v6879_v8, %v10464_v44  ;;  %v10467_v56 = vld [vmem:[#allocation31_spill] sm:$0xff] }
 0x35e   :  { %v581_v40 = vmul.f32 %v552_v58, %v546_v62  ;;  %2291 = vmatprep.subr.bf16.mxu1 %v5936_v25  ;;  %v5913_v21 = vpack.c.bf16 %v573_v57, %v569_v6  ;;  %v7468_v25 = vld [vmem:[%s10235_s4 + $0x7] ss:$8 sm:$0xf]  ;;  %v715_v48 = vmul.f32 %v7379_v10, %v678_v39 }
 0x35f   :  { %2292 = vmatpush1.bf16.msra.mxu1 %v5935_v9  ;;  %v719_v9 = vmul.f32 %v7379_v10, %v679_v24  ;;  %v1476_v53 = vrot.slane %v7468_v25, %v7040_v27 }
 0x360   :  { %v5917_v28 = vpack.c.bf16 %v581_v40, %v577_v11  ;;  %v664_v43 = vpop.permute.xlu1 %663  ;;  %2293 = vmatprep.subr.bf16.mxu1 %v5932_v47  ;;  %v7446_v12 = vpop.permute.xlu0 %1421  ;;  %v10466_v11 = vld [vmem:[#allocation30_spill] sm:$0xff] }
 0x361   :  { %v677_v60 = vsel %vm673_vm4, %v664_v43, %v7323_v20  ;;  %v681_v58 = vsel %vm673_vm4, %v7254_v61, %v664_v43  ;;  %v716_v20 = vmul.f32 %v708_v13, %v674_v15  ;;  %v5923_v19 = vpack.c.bf16 %v719_v9, %v715_v48  ;;  %v10469_v15 = vld [vmem:[#allocation33_spill] sm:$0xff] }
 0x362   :  { %v727_v26 = vmul.f32 %v7379_v10, %v681_v58  ;;  %v728_v37 = vmul.f32 %v708_v13, %v677_v60  ;;  %2194 = vmatpush1.bf16.msra.mxu0 %v5917_v28  ;;  %v1456_v13 = vsel %vm1449_vm6, %v7399_v29, %v7423_v35  ;;  %v1455_v10 = vsel %vm1449_vm6, %v10466_v11, %v10465_v17  ;;  %v10470_v60 = vld [vmem:[#allocation34_spill] sm:$0xff] }
 0x363   :  { %2195 = vmatprep.subr.bf16.mxu0 %v5914_v49  ;;  %2294 = vmatpush1.bf16.msra.mxu1 %v5931_v0  ;;  %v5924_v8 = vpack.c.bf16 %v720_v38, %v716_v20  ;;  %v1498_v47 = vmul.f32 %v1476_v53, %v1456_v13  ;;  %v1454_v49 = vsel %vm1449_vm6, %v10468_v30, %v10467_v56 }
 0x364   :  { %v5927_v42 = vpack.c.bf16 %v727_v26, %v723_v36  ;;  %v1432_v46 = vpop.permute.xlu1 %1431  ;;  %v517_v54 = vpop.permute.xlu0 %516  ;;  %v5928_v61 = vpack.c.bf16 %v728_v37, %v724_v50  ;;  %v1472_v0 = vrot.slane %v7468_v25, %v7060_v59  ;;  %v1460_v57 = vsel %vm1449_vm6, %v7446_v12, %v7399_v29  ;;  %v10471_v26 = vld [vmem:[#allocation36_spill] sm:$0xff] }
 0x365   :  { %v1494_v44 = vmul.f32 %v1476_v53, %v1455_v10  ;;  %v1458_v28 = vsel %vm1449_vm6, %v10469_v15, %v10468_v30  ;;  %v1459_v58 = vsel %vm1449_vm6, %v10470_v60, %v10466_v11  ;;  %v560_v29 = vrot.slane %v7346_v23, %v7237_v45 }
 0x366   :  { %2196 = vmatpush1.bf16.msra.mxu0 %v5913_v21  ;;  %2295 = vmatprep.subr.bf16.mxu1 %v5928_v61  ;;  %v1490_v50 = vmul.f32 %v1476_v53, %v1454_v49  ;;  %v532_v37 = vsel %vm530_vm5, %v10471_v26, %v10462_v34  ;;  %v1497_v39 = vmul.f32 %v1472_v0, %v1460_v57 }
 0x367   :  { %2296 = vmatpush1.bf16.msra.mxu1 %v5927_v42  ;;  %v1489_v20 = vmul.f32 %v1472_v0, %v1458_v28  ;;  %v564_v42 = vrot.slane %v7346_v23, %v7240_v14  ;;  %v533_v61 = vsel %vm530_vm5, %v517_v54, %v7341_v18  ;;  %v1493_v9 = vmul.f32 %v1472_v0, %v1459_v58 }
 0x368   :  { %v7478_v41 = vpop.permute.xlu1 %1439  ;;  %2297 = vmatprep.subr.bf16.mxu1 %v5924_v8  ;;  %v7480_v62 = vpop.permute.xlu0 %1285  ;;  %v10472_v8 = vld [vmem:[#allocation35_spill] sm:$0xff]  ;;  %v536_v18 = vsel %vm530_vm5, %v6917_v22, %v10471_v26 }
 0x369   :  { %v1457_v40 = vsel %vm1449_vm6, %v1432_v46, %v7478_v41  ;;  %v531_v34 = vsel %vm530_vm5, %v10472_v8, %v10461_v16  ;;  %v576_v23 = vmul.f32 %v564_v42, %v532_v37  ;;  %v580_v11 = vmul.f32 %v564_v42, %v533_v61  ;;  %v10474_v37 = vld [vmem:[#allocation38_spill] sm:$0xff]  ;;  %v10475_v61 = vld [vmem:[#allocation39_spill] sm:$0xff] }
 0x36a   :  { %v1502_v6 = vmul.f32 %v1476_v53, %v1457_v40  ;;  %v5969_v22 = vpack.c.bf16 %v1493_v9, %v1489_v20  ;;  %v575_v57 = vmul.f32 %v560_v29, %v536_v18  ;;  %v10477_v18 = vld [vmem:[#allocation42_spill] sm:$0xff] }
 0x36b   :  { %2298 = vmatpush1.bf16.msra.mxu1 %v5923_v19  ;;  %v5970_v19 = vpack.c.bf16 %v1494_v44, %v1490_v50 }
 0x36c   :  { %v7503_v43 = vpop.permute.xlu1 %1423  ;;  %v7505_v24 = vpop.permute.xlu0 %1293  ;;  %v5974_v38 = vpack.c.bf16 %v1502_v6, %v1498_v47  ;;  %v535_v47 = vsel %vm530_vm5, %v6911_v4, %v10472_v8  ;;  %v572_v6 = vmul.f32 %v564_v42, %v531_v34 }
 0x36d   :  { %v1461_v36 = vsel %vm1449_vm6, %v7503_v43, %v1432_v46  ;;  %v537_v46 = vsel %vm530_vm5, %v7298_v63, %v517_v54  ;;  %v571_v4 = vmul.f32 %v560_v29, %v535_v47  ;;  %v1312_v28 = vsel %vm1305_vm7, %v7480_v62, %v7505_v24 }
 0x36e   :  { %v1501_v21 = vmul.f32 %v1472_v0, %v1461_v36  ;;  %2197 = vmatprep.subr.bf16.mxu0 %v5974_v38  ;;  %v579_v16 = vmul.f32 %v560_v29, %v537_v46  ;;  %v5916_v44 = vpack.c.bf16 %v576_v23, %v572_v6  ;;  %v10476_v46 = vld [vmem:[#allocation37_spill] sm:$0xff]  ;;  %v1315_v23 = vsel %vm1305_vm7, %v10477_v18, %v10474_v37 }
 0x36f   :  { %v5915_v50 = vpack.c.bf16 %v575_v57, %v571_v4  ;;  %v1310_v9 = vsel %vm1305_vm7, %v10476_v46, %v10475_v61 }
 0x370   :  { %v5973_v48 = vpack.c.bf16 %v1501_v21, %v1497_v39  ;;  %v519_v13 = vpop.permute.xlu1 %518  ;;  %v7532_v53 = vpop.permute.xlu0 %1277 }
 0x371   :  { %v534_v63 = vsel %vm530_vm5, %v519_v13, %v7421_v3  ;;  %v538_v54 = vsel %vm530_vm5, %v7358_v31, %v519_v13  ;;  %v7553_v31 = vld [vmem:[%s10235_s4 + $0x6] ss:$8 sm:$0xf] }
 0x372   :  { %v583_v10 = vmul.f32 %v560_v29, %v538_v54  ;;  %v584_v40 = vmul.f32 %v564_v42, %v534_v63  ;;  %2198 = vmatpush2.bf16.msra.mxu0 %v5973_v48  ;;  %v1332_v38 = vrot.slane %v7553_v31, %v7040_v27  ;;  %v10473_v29 = vld [vmem:[#allocation40_spill] sm:$0xff]  ;;  %v1316_v42 = vsel %vm1305_vm7, %v7532_v53, %v7480_v62 }
 0x373   :  { %2199 = vmatprep.subr.bf16.mxu0 %v5970_v19  ;;  %v1311_v39 = vsel %vm1305_vm7, %v10474_v37, %v10473_v29  ;;  %v1328_v8 = vrot.slane %v7553_v31, %v7060_v59 }
 0x374   :  { %v5919_v30 = vpack.c.bf16 %v583_v10, %v579_v16  ;;  %v1288_v49 = vpop.permute.xlu1 %1287  ;;  %v7548_v3 = vpop.permute.xlu0 %1141  ;;  %v5920_v0 = vpack.c.bf16 %v584_v40, %v580_v11  ;;  %v1354_v21 = vmul.f32 %v1332_v38, %v1312_v28  ;;  %v1350_v19 = vmul.f32 %v1332_v38, %v1311_v39  ;;  %v10478_v11 = vld [vmem:[#allocation41_spill] sm:$0xff] }
 0x375   :  { %v1353_v63 = vmul.f32 %v1328_v8, %v1316_v42  ;;  %v1346_v16 = vmul.f32 %v1332_v38, %v1310_v9  ;;  %v1314_v10 = vsel %vm1305_vm7, %v10478_v11, %v10476_v46  ;;  %v1349_v40 = vmul.f32 %v1328_v8, %v1315_v23 }
 0x376   :  { %2200 = vmatpush2.bf16.msra.mxu0 %v5969_v22  ;;  %2299 = vmatprep.subr.bf16.mxu1 %v5920_v0  ;;  %v1345_v0 = vmul.f32 %v1328_v8, %v1314_v10  ;;  %v1484_v42 = vrot.slane %v7468_v25, %v7240_v14 }
 0x377   :  { %2300 = vmatpush1.bf16.msra.mxu1 %v5919_v30  ;;  %v7601_v30 = vld [vmem:[%s10235_s4 + $0x5] ss:$8 sm:$0xf] }
 0x378   :  { %v7562_v58 = vpop.permute.xlu1 %1295  ;;  %2301 = vmatprep.subr.bf16.mxu1 %v5916_v44  ;;  %v7564_v36 = vpop.permute.xlu0 %1149  ;;  %v5961_v44 = vpack.c.bf16 %v1349_v40, %v1345_v0  ;;  %v1188_v4 = vrot.slane %v7601_v30, %v7040_v27  ;;  %v10484_v0 = vld [vmem:[#allocation43_spill] sm:$0xff] }
 0x379   :  { %v1313_v26 = vsel %vm1305_vm7, %v1288_v49, %v7562_v58  ;;  %v1168_v57 = vsel %vm1161_vm8, %v7548_v3, %v7564_v36 }
 0x37a   :  { %v1358_v20 = vmul.f32 %v1332_v38, %v1313_v26  ;;  %v10479_v26 = vld [vmem:[#allocation48_spill] sm:$0xff]  ;;  %v1210_v39 = vmul.f32 %v1188_v4, %v1168_v57 }
 0x37b   :  { %2302 = vmatpush1.bf16.msra.mxu1 %v5915_v50  ;;  %v1463_v37 = vsel %vm1449_vm6, %v10479_v26, %v10470_v60 }
 0x37c   :  { %v7583_v34 = vpop.permute.xlu1 %1279  ;;  %v1446_v48 = vpop.permute.xlu0 %1445  ;;  %v5966_v13 = vpack.c.bf16 %v1358_v20, %v1354_v21  ;;  %v1480_v20 = vrot.slane %v7468_v25, %v7237_v45  ;;  %v1184_v25 = vrot.slane %v7601_v30, %v7060_v59 }
 0x37d   :  { %v1317_v62 = vsel %vm1305_vm7, %v7583_v34, %v1288_v49  ;;  %v5962_v49 = vpack.c.bf16 %v1350_v19, %v1346_v16  ;;  %v1452_v46 = vsel %vm1449_vm6, %v7423_v35, %v1446_v48  ;;  %v1464_v9 = vsel %vm1449_vm6, %v1446_v48, %v7446_v12  ;;  %v10482_v19 = vld [vmem:[#allocation47_spill] sm:$0xff] }
 0x37e   :  { %v1357_v54 = vmul.f32 %v1328_v8, %v1317_v62  ;;  %2201 = vmatprep.subr.bf16.mxu0 %v5966_v13  ;;  %v10480_v8 = vld [vmem:[#allocation46_spill] sm:$0xff]  ;;  %v10481_v13 = vld [vmem:[#allocation44_spill] sm:$0xff]  ;;  %v1462_v23 = vsel %vm1449_vm6, %v10482_v19, %v10469_v15  ;;  %v1451_v12 = vsel %vm1449_vm6, %v10465_v17, %v10479_v26  ;;  %v1496_v48 = vmul.f32 %v1484_v42, %v1463_v37 }
 0x37f   :  { %v1167_v60 = vsel %vm1161_vm8, %v10481_v13, %v10480_v8  ;;  %v1499_v16 = vmul.f32 %v1480_v20, %v1452_v46  ;;  %v1500_v10 = vmul.f32 %v1484_v42, %v1464_v9  ;;  %v1495_v46 = vmul.f32 %v1480_v20, %v1451_v12 }
 0x380   :  { %v5965_v47 = vpack.c.bf16 %v1357_v54, %v1353_v63  ;;  %v1144_v22 = vpop.permute.xlu1 %1143  ;;  %v7596_v6 = vpop.permute.xlu0 %1133 }
 0x381   :  { %v1172_v17 = vsel %vm1161_vm8, %v7596_v6, %v7548_v3 }
 0x382   :  { %2202 = vmatpush2.bf16.msra.mxu0 %v5965_v47  ;;  %v1209_v9 = vmul.f32 %v1184_v25, %v1172_v17 }
 0x383   :  { %2203 = vmatprep.subr.bf16.mxu0 %v5962_v49  ;;  %v10483_v49 = vld [vmem:[#allocation45_spill] sm:$0xff] }
 0x384   :  { %v7610_v28 = vpop.permute.xlu1 %1151  ;;  %v7612_v38 = vpop.permute.xlu0 %1129  ;;  %v1166_v57 = vsel %vm1161_vm8, %v10484_v0, %v10483_v49 }
 0x385   :  { %v1169_v50 = vsel %vm1161_vm8, %v1144_v22, %v7610_v28 }
 0x386   :  { %v1214_v21 = vmul.f32 %v1188_v4, %v1169_v50  ;;  %2204 = vmatpush2.bf16.msra.mxu0 %v5961_v44 }
 0x388   :  { %v1448_v62 = vpop.permute.xlu1 %1447  ;;  %v1302_v63 = vpop.permute.xlu0 %1301  ;;  %v5958_v35 = vpack.c.bf16 %v1214_v21, %v1210_v39  ;;  %v6353_v39 = vmov 13   ;;  %v1206_v21 = vmul.f32 %v1188_v4, %v1167_v60  ;;  %v2500_v60 = vld [vmem:[%s10233_s5 + $0x18] sm:$0xff] }
 0x389   :  { %v1453_v54 = vsel %vm1449_vm6, %v7478_v41, %v1448_v62  ;;  %v1465_v15 = vsel %vm1449_vm6, %v1448_v62, %v7503_v43  ;;  %v1450_v41 = vsel %vm1449_vm6, %v10467_v56, %v10482_v19  ;;  %v1492_v43 = vmul.f32 %v1484_v42, %v1462_v23  ;;  %6090 = vset.pattern.permute.xlu1 %v6353_v39 }
 0x38a   :  { %v1503_v40 = vmul.f32 %v1480_v20, %v1453_v54  ;;  %v1504_v47 = vmul.f32 %v1484_v42, %v1465_v15  ;;  %2205 = vmatprep.subr.bf16.mxu0 %v5958_v35  ;;  %2546 = vperm.xlu1 %6090, %v7205_v2   ;;  %v1202_v42 = vmul.f32 %v1188_v4, %v1166_v57  ;;  %v7688_v54 = vld [vmem:[%s10233_s5 + $0x8] sm:$0xff]  ;;  %v10485_v57 = vld [vmem:[#allocation11_spill] sm:$0xff] }
 0x38b   :  { %v5972_v56 = vpack.c.bf16 %v1496_v48, %v1492_v43  ;;  %v1491_v19 = vmul.f32 %v1480_v20, %v1450_v41  ;;  %v1170_v23 = vsel %vm1161_vm8, %v7612_v38, %v10484_v0  ;;  %2518 = vperm.xlu0 %6088, %v2500_v60   ;;  %v1336_v4 = vrot.slane %v7553_v31, %v7237_v45 }
 0x38c   :  { %v5975_v44 = vpack.c.bf16 %v1503_v40, %v1499_v16  ;;  %v7663_v50 = vpop.permute.xlu1 %1135  ;;  %v1298_v26 = vpop.permute.xlu0 %1297  ;;  %v5976_v37 = vpack.c.bf16 %v1504_v47, %v1500_v10  ;;  %v5954_v48 = vpack.c.bf16 %v1206_v21, %v1202_v42  ;;  %v1201_v15 = vmul.f32 %v1184_v25, %v1170_v23  ;;  %v10489_v42 = vld [vmem:[#allocation4_spill] sm:$0xff] }
 0x38d   :  { %v1173_v3 = vsel %vm1161_vm8, %v7663_v50, %v1144_v22  ;;  %v5971_v2 = vpack.c.bf16 %v1495_v46, %v1491_v19  ;;  %v1340_v16 = vrot.slane %v7553_v31, %v7240_v14  ;;  %v1308_v40 = vsel %vm1305_vm7, %v7505_v24, %v1302_v63  ;;  %v10486_v24 = vld [vmem:[#allocation15_spill] sm:$0xff] }
 0x38e   :  { %v1213_v62 = vmul.f32 %v1184_v25, %v1173_v3  ;;  %2303 = vmatprep.subr.bf16.mxu1 %v5976_v37  ;;  %2550 = vperm.xlu1 %6090, %v2500_v60   ;;  %v5950_v17 = vpack.c.bf16 %v10486_v24, %v10485_v57  ;;  %v6354_v41 = vmov 1   ;;  %v1306_v37 = vsel %vm1305_vm7, %v10475_v61, %v1298_v26  ;;  %v10487_v3 = vld [vmem:[#allocation13_spill] sm:$0xff]  ;;  %v10490_v19 = vld [vmem:[#allocation7_spill] sm:$0xff]  ;;  %v7733_v60 = vld [vmem:[%s10233_s5 + $0x8] sm:$0xff] }
 0x38f   :  { %2304 = vmatpush2.bf16.msra.mxu1 %v5975_v44  ;;  %2508 = vperm.xlu0 %6088, %v7688_v54   ;;  %v5946_v23 = vpack.c.bf16 %v10490_v19, %v10489_v42  ;;  %v1192_v61 = vrot.slane %v7601_v30, %v7237_v45  ;;  %v10493_v57 = vld [vmem:[#allocation52_spill] sm:$0xff] }
 0x390   :  { %v5957_v35 = vpack.c.bf16 %v1213_v62, %v1209_v9  ;;  %v7677_v22 = vpop.permute.xlu1 %1131  ;;  %2305 = vmatprep.subr.bf16.mxu1 %v5972_v56  ;;  %v1158_v12 = vpop.permute.xlu0 %1157  ;;  %v10488_v9 = vld [vmem:[#allocation14_spill] sm:$0xff]  ;;  %v1624_v24 = vrot.slane %v10493_v57, %v7237_v45 }
 0x391   :  { %v1171_v20 = vsel %vm1161_vm8, %v7677_v22, %v10481_v13  ;;  %v1320_v13 = vsel %vm1305_vm7, %v1302_v63, %v7532_v53  ;;  %v1355_v53 = vmul.f32 %v1336_v4, %v1308_v40  ;;  %v5949_v62 = vpack.c.bf16 %v10488_v9, %v10487_v3  ;;  %v10496_v9 = vld [vmem:[#allocation51_spill] sm:$0xff] }
 0x392   :  { %v1205_v10 = vmul.f32 %v1184_v25, %v1171_v20  ;;  %2206 = vmatpush2.bf16.msra.mxu0 %v5957_v35  ;;  %6091 = vset.pattern.permute.xlu1 %v6354_v41  ;;  %v1356_v63 = vmul.f32 %v1340_v16, %v1320_v13  ;;  %v1347_v35 = vmul.f32 %v1336_v4, %v1306_v37 }
 0x393   :  { %2207 = vmatprep.subr.bf16.mxu0 %v5954_v48  ;;  %2306 = vmatpush2.bf16.msra.mxu1 %v5971_v2 }
 0x394   :  { %v5953_v47 = vpack.c.bf16 %v1205_v10, %v1201_v15  ;;  %v1304_v0 = vpop.permute.xlu1 %1303  ;;  %2610 = vperm.xlu1 %6091, %v7249_v5   ;;  %6094 = vset.pattern.permute.xlu0 %v10455_v32  ;;  %v10492_v15 = vld [vmem:[#allocation5_spill] sm:$0xff] }
 0x395   :  { %v1309_v31 = vsel %vm1305_vm7, %v7562_v58, %v1304_v0  ;;  %v1321_v25 = vsel %vm1305_vm7, %v1304_v0, %v7583_v34  ;;  %v1318_v58 = vsel %vm1305_vm7, %v1298_v26, %v10478_v11  ;;  %v1154_v34 = vpop.permute.xlu0 %1153  ;;  %v1196_v11 = vrot.slane %v7601_v30, %v7240_v14  ;;  %2574 = vperm.xlu0 %6094, %v7733_v60   ;;  %v10491_v30 = vld [vmem:[#allocation3_spill] sm:$0xff] }
 0x396   :  { %v1359_v43 = vmul.f32 %v1336_v4, %v1309_v31  ;;  %v1360_v44 = vmul.f32 %v1340_v16, %v1321_v25  ;;  %2208 = vmatpush2.bf16.msra.mxu0 %v5953_v47  ;;  %v1348_v2 = vmul.f32 %v1340_v16, %v1318_v58  ;;  %v5945_v10 = vpack.c.bf16 %v10492_v15, %v10491_v30  ;;  %v10499_v15 = vld [vmem:[#allocation12_spill] sm:$0xff] }
 0x397   :  { %2209 = vmatprep.subr.bf16.mxu0 %v5950_v17  ;;  %v1162_v40 = vsel %vm1161_vm8, %v10483_v49, %v1154_v34  ;;  %v7760_v49 = vld [vmem:[%s10234_s3] ss:$12 sps:$4 sm:$0xff]   ;;  %v1628_v17 = vrot.slane %v10493_v57, %v7240_v14  ;;  %v10494_v58 = vmov 9   ;;  %v10505_v57 = vld [vmem:[#allocation6_spill] sm:$0xff] }
 0x398   :  { %v5967_v21 = vpack.c.bf16 %v1359_v43, %v1355_v53  ;;  %v1300_v46 = vpop.permute.xlu1 %1299  ;;  %v5968_v56 = vpack.c.bf16 %v1360_v44, %v1356_v63  ;;  %2614 = vperm.xlu1 %6091, %v7283_v7   ;;  %v1203_v25 = vmul.f32 %v1192_v61, %v1162_v40  ;;  %v6295_v53 = vld [vmem:[%s10233_s5] sm:$0xff] }
 0x399   :  { %v1307_v5 = vsel %vm1305_vm7, %v10473_v29, %v1300_v46  ;;  %v1319_v26 = vsel %vm1305_vm7, %v1300_v46, %v10477_v18  ;;  %v1164_v29 = vsel %vm1161_vm8, %v7564_v36, %v1158_v12  ;;  %v1176_v18 = vsel %vm1161_vm8, %v1158_v12, %v7596_v6  ;;  %v1590_v6 = vpop.permute.xlu0 %1589  ;;  %6096 = vset.pattern.permute.xlu0 %v6354_v41 }
 0x39a   :  { %v1351_v20 = vmul.f32 %v1336_v4, %v1307_v5  ;;  %v1352_v48 = vmul.f32 %v1340_v16, %v1319_v26  ;;  %2210 = vmatpush2.bf16.msra.mxu0 %v5949_v62  ;;  %2307 = vmatprep.subr.bf16.mxu1 %v5968_v56  ;;  %v1174_v36 = vsel %vm1161_vm8, %v1154_v34, %v7612_v38  ;;  %v10495_v34 = vld [vmem:[#allocation49_spill] sm:$0xff] }
 0x39b   :  { %2211 = vmatprep.subr.bf16.mxu0 %v5946_v23  ;;  %2308 = vmatpush2.bf16.msra.mxu1 %v5967_v21  ;;  %v1211_v7 = vmul.f32 %v1192_v61, %v1164_v29  ;;  %v1212_v0 = vmul.f32 %v1196_v11, %v1176_v18  ;;  %v1204_v63 = vmul.f32 %v1196_v11, %v1174_v36  ;;  %v10502_v36 = vld [vmem:[#allocation22_spill] sm:$0xff] }
 0x39c   :  { %v5963_v4 = vpack.c.bf16 %v1351_v20, %v1347_v35  ;;  %v1160_v16 = vpop.permute.xlu1 %1159  ;;  %v5964_v13 = vpack.c.bf16 %v1352_v48, %v1348_v2  ;;  %2602 = vperm.xlu0 %6096, %v6295_v53   ;;  %6092 = vset.pattern.permute.xlu1 %v10494_v58  ;;  %v1596_v21 = vsel %vm1593_vm3, %v10495_v34, %v1590_v6  ;;  %v10508_v58 = vld [vmem:[#allocation10_spill] sm:$0xff] }
 0x39d   :  { %v1165_v12 = vsel %vm1161_vm8, %v7610_v28, %v1160_v16  ;;  %v1177_v47 = vsel %vm1161_vm8, %v1160_v16, %v7663_v50  ;;  %v7766_v28 = vld [vmem:[%s10234_s3 + $0x1c] ss:$12 sps:$4 sm:$0xff]   ;;  %v2497_v50 = vld [vmem:[%s10233_s5] sm:$0xff]  ;;  %v1608_v62 = vsel %vm1593_vm3, %v1590_v6, %v10496_v9  ;;  %v1586_v19 = vpop.permute.xlu0 %1585  ;;  %v1643_v26 = vmul.f32 %v1624_v24, %v1596_v21 }
 0x39e   :  { %v1215_v31 = vmul.f32 %v1192_v61, %v1165_v12  ;;  %v1216_v38 = vmul.f32 %v1196_v11, %v1177_v47  ;;  %2212 = vmatpush2.bf16.msra.mxu0 %v5945_v10  ;;  %2309 = vmatprep.subr.bf16.mxu1 %v5964_v13  ;;  %v1644_v35 = vmul.f32 %v1628_v17, %v1608_v62  ;;  %v10501_v13 = vld [vmem:[#allocation18_spill] sm:$0xff]  ;;  %v10503_v47 = vld [vmem:[#allocation21_spill] sm:$0xff] }
 0x39f   :  { %2310 = vmatpush2.bf16.msra.mxu1 %v5963_v4  ;;  %2503 = vperm.xlu1 %6092, %v2497_v50   ;;  %v1606_v30 = vsel %vm1593_vm3, %v1586_v19, %v6863_v55  ;;  %v5951_v6 = vpack.c.bf16 %v10502_v36, %v10501_v13 }
 0x3a0   :  { %v5959_v43 = vpack.c.bf16 %v1215_v31, %v1211_v7  ;;  %v1156_v44 = vpop.permute.xlu1 %1155  ;;  %v5960_v37 = vpack.c.bf16 %v1216_v38, %v1212_v0  ;;  %v10504_v0 = vld [vmem:[#allocation23_spill] sm:$0xff]  ;;  %v1636_v55 = vmul.f32 %v1628_v17, %v1606_v30 }
 0x3a1   :  { %v1163_v46 = vsel %vm1161_vm8, %v10480_v8, %v1156_v44  ;;  %v1175_v3 = vsel %vm1161_vm8, %v1156_v44, %v7677_v22  ;;  %2214 = vmatmul.mubr.bf16.vlgmr.msra.gmra.mxu0 %v7760_v49  ;;  %v10497_v22 = vld [vmem:[#allocation53_spill] sm:$0xff] }
 0x3a2   :  { %v1207_v56 = vmul.f32 %v1192_v61, %v1163_v46  ;;  %v1208_v42 = vmul.f32 %v1196_v11, %v1175_v3  ;;  %2311 = vmatprep.subr.bf16.mxu1 %v5960_v37  ;;  %2223 = vmatprep.mubr.bf16.mxu0 %v7766_v28  ;;  %v6121_v61 = vld [vmem:[%s10234_s3 + $0x18] ss:$12 sps:$4 sm:$0xff]   ;;  %v10498_v11 = vld [vmem:[#allocation20_spill] sm:$0xff]  ;;  %v10507_v37 = vld [vmem:[#allocation9_spill] sm:$0xff] }
 0x3a3   :  { %2312 = vmatpush2.bf16.msra.mxu1 %v5959_v43  ;;  %6093 = vset.pattern.permute.xlu1 %v10455_v32  ;;  %v1594_v48 = vsel %vm1593_vm3, %v10498_v11, %v1586_v19  ;;  %v5947_v34 = vpack.c.bf16 %v10508_v58, %v10507_v37 }
 0x3a4   :  { %v5955_v23 = vpack.c.bf16 %v1207_v56, %v1203_v25  ;;  %v1592_v8 = vpop.permute.xlu1 %1591  ;;  %v5956_v5 = vpack.c.bf16 %v1208_v42, %v1204_v63  ;;  %2570 = vperm.xlu1 %6093, %v6295_v53   ;;  %v1635_v12 = vmul.f32 %v1624_v24, %v1594_v48  ;;  %v10506_v53 = vld [vmem:[#allocation8_spill] sm:$0xff] }
 0x3a5   :  { %v1597_v2 = vsel %vm1593_vm3, %v10497_v22, %v1592_v8  ;;  %v1609_v20 = vsel %vm1593_vm3, %v1592_v8, %v7211_v52  ;;  %v10500_v52 = vld [vmem:[#allocation16_spill] sm:$0xff]  ;;  %v5948_v63 = vpack.c.bf16 %v10506_v53, %v10505_v57 }
 0x3a6   :  { %v1647_v29 = vmul.f32 %v1624_v24, %v1597_v2  ;;  %v1648_v18 = vmul.f32 %v1628_v17, %v1609_v20  ;;  %2313 = vmatprep.subr.bf16.mxu1 %v5956_v5  ;;  %v5952_v10 = vpack.c.bf16 %v10500_v52, %v10499_v15 }
 0x3a7   :  { %2314 = vmatpush2.bf16.msra.mxu1 %v5955_v23 }
 0x3a8   :  { %v5983_v40 = vpack.c.bf16 %v1647_v29, %v1643_v26  ;;  %v1588_v4 = vpop.permute.xlu1 %1587  ;;  %v5984_v16 = vpack.c.bf16 %v1648_v18, %v1644_v35  ;;  %2315 = vmatprep.subr.bf16.mxu1 %v5952_v10  ;;  %6095 = vset.pattern.permute.xlu1 %v6353_v39 }
 0x3a9   :  { %v1595_v7 = vsel %vm1593_vm3, %v10503_v47, %v1588_v4  ;;  %v1607_v31 = vsel %vm1593_vm3, %v1588_v4, %v10504_v0  ;;  %2224 = vmatmul.mubr.bf16.gmra.mxu0 %v6121_v61  ;;  %2538 = vperm.xlu1 %6095, %v2497_v50  }
 0x3aa   :  { %v1639_v38 = vmul.f32 %v1624_v24, %v1595_v7  ;;  %v1640_v25 = vmul.f32 %v1628_v17, %v1607_v31  ;;  %2352 = vmatprep.subr.bf16.mxu0 %v5984_v16  ;;  %2372 = vmatprep.mubr.bf16.mxu0 %v10455_v32 }
 0x3ab   :  { %2353 = vmatpush1.bf16.msra.mxu0 %v5983_v40  ;;  %2316 = vmatpush2.bf16.msra.mxu1 %v5951_v6 }
 0x3ac   :  { %v5979_v43 = vpack.c.bf16 %v1639_v38, %v1635_v12  ;;  %v5980_v44 = vpack.c.bf16 %v1640_v25, %v1636_v55  ;;  %2317 = vmatprep.subr.bf16.mxu1 %v5948_v63 }
 0x3ad   :  { %2542 = vperm.xlu1 %6095, %v7688_v54  }
 0x3ae   :  { %2354 = vmatprep.subr.bf16.mxu0 %v5980_v44 }
 0x3af   :  { %2355 = vmatpush1.bf16.msra.mxu0 %v5979_v43  ;;  %2318 = vmatpush2.bf16.msra.mxu1 %v5947_v34 }
 0x3b1   :  { %6097 = vset.pattern.permute.xlu1 %v6354_v41 }
 0x3b2   :  { %5584 = vmatmul.mubr.msk.bf16.vlgmr.msra.gmra.mxu0 %vm102_vm0, %v7264_v1  ;;  %2320 = vmatmul.mubr.bf16.vlgmr.msra.gmra.mxu1 %v7760_v49 }
 0x3b3   :  { %2382 = vmatprep.mubr.bf16.mxu0 %v10455_v32  ;;  %2329 = vmatprep.mubr.bf16.mxu1 %v7766_v28 }
 0x3b4   :  { %2606 = vperm.xlu1 %6097, %v7733_v60  }
 0x3ba   :  { %5585 = vmatmul.mubr.msk.bf16.gmra.mxu0 %vm102_vm0, %v7335_v33  ;;  %2330 = vmatmul.mubr.bf16.gmra.mxu1 %v6121_v61 }
 0x3bb   :  { %2773 = vmatprep.mubr.bf16.mxu0 %v10455_v32  ;;  %2826 = vmatprep.mubr.bf16.mxu1 %v10455_v32 }
 0x409   :  { %v2268_v39 = vpop.f32.mrf.mxu1 }
 0x40b   :  { %v2270_v1 = vpop.f32.mrf.mxu1 }
 0x40d   :  { %v2272_v54 = vpop.f32.mrf.mxu1 }
 0x40f   :  { %v2274_v50 = vpop.f32.mrf.mxu1 }
 0x411   :  { %v2278_v17 = vpop.f32.mrf.mxu1 }
 0x413   :  { %v2280_v41 = vpop.f32.mrf.mxu1 }
 0x415   :  { %v2282_v3 = vpop.f32.mrf.mxu1 }
 0x417   :  { %v2284_v56 = vpop.f32.mrf.mxu1 }
 0x461   :  { %v2215_v49 = vpop.f32.mrf.mxu0 }
 0x462   :  { %v7839_v42 = vadd.f32 %v2268_v39, %v2215_v49 }
 0x463   :  { %v2217_v24 = vpop.f32.mrf.mxu0 }
 0x464   :  { %v7837_v62 = vadd.f32 %v2270_v1, %v2217_v24 }
 0x465   :  { %v2219_v28 = vpop.f32.mrf.mxu0 }
 0x466   :  { %v2393_v5 = vadd.f32 %v7837_v62, %v7839_v42  ;;  %v7845_v22 = vadd.f32 %v2272_v54, %v2219_v28  ;;  %v7870_v54 = vpop.permute.xlu1 %2513 }
 0x467   :  { %v2221_v21 = vpop.f32.mrf.mxu0 }
 0x468   :  { %v7841_v23 = vadd.f32 %v2274_v50, %v2221_v21 }
 0x469   :  { %v2225_v46 = vpop.f32.mrf.mxu0 }
 0x46a   :  { %v2398_v48 = vadd.f32 %v7841_v23, %v7845_v22  ;;  %v7849_v18 = vadd.f32 %v2278_v17, %v2225_v46  ;;  %v7872_v49 = vpop.permute.xlu1 %2578 }
 0x46b   :  { %v2227_v60 = vpop.f32.mrf.mxu0 }
 0x46c   :  { %v7851_v30 = vadd.f32 %v2280_v41, %v2227_v60  ;;  %v7884_v41 = vpop.permute.xlu0 %2518 }
 0x46d   :  { %v2229_v9 = vpop.f32.mrf.mxu0 }
 0x46e   :  { %v2403_v6 = vadd.f32 %v7851_v30, %v7849_v18  ;;  %v7860_v55 = vadd.f32 %v2282_v3, %v2229_v9  ;;  %v7874_v50 = vpop.permute.xlu1 %2582 }
 0x46f   :  { %v2231_v33 = vpop.f32.mrf.mxu0 }
 0x470   :  { %v7857_v12 = vadd.f32 %v2284_v56, %v2231_v33  ;;  %v7888_v60 = vpop.permute.xlu0 %2508 }
 0x472   :  { %v2374_v19 = vpop.f32.mrf.mxu0  ;;  %v2321_v8 = vpop.f32.mrf.mxu1  ;;  %v2408_v63 = vadd.f32 %v7857_v12, %v7860_v55 }
 0x473   :  { %v2375_v26 = vadd.f32 %v2374_v19, %v2321_v8  ;;  %v7876_v24 = vpop.permute.xlu1 %2546 }
 0x474   :  { %v2376_v35 = vpop.f32.mrf.mxu0  ;;  %v2323_v2 = vpop.f32.mrf.mxu1 }
 0x475   :  { %v2394_v20 = vadd.f32 %v2393_v5, %v2375_v26  ;;  %v2377_v61 = vadd.f32 %v2376_v35, %v2323_v2  ;;  %v7892_v9 = vpop.permute.xlu0 %2574 }
 0x476   :  { %v2378_v11 = vpop.f32.mrf.mxu0  ;;  %v2325_v29 = vpop.f32.mrf.mxu1 }
 0x477   :  { %v2395_v15 = vadd.f32 %v2394_v20, %v2377_v61  ;;  %v2379_v52 = vadd.f32 %v2378_v11, %v2325_v29  ;;  %v7878_v17 = vpop.permute.xlu1 %2550 }
 0x478   :  { %v2380_v10 = vpop.f32.mrf.mxu0  ;;  %v2327_v40 = vpop.f32.mrf.mxu1 }
 0x479   :  { %v2399_v4 = vadd.f32 %v2398_v48, %v2379_v52  ;;  %v7853_v16 = vadd.f32 %v2380_v10, %v2327_v40  ;;  %2396 = vadd.xlane.f32.xlu0 %v2395_v15  ;;  %v7896_v56 = vpop.permute.xlu0 %2602 }
 0x47a   :  { %v2384_v13 = vpop.f32.mrf.mxu0  ;;  %v2331_v36 = vpop.f32.mrf.mxu1 }
 0x47b   :  { %v2400_v47 = vadd.f32 %v2399_v4, %v7853_v16  ;;  %v2385_v7 = vadd.f32 %v2384_v13, %v2331_v36  ;;  %v7880_v28 = vpop.permute.xlu1 %2610 }
 0x47c   :  { %v2386_v0 = vpop.f32.mrf.mxu0  ;;  %v2333_v31 = vpop.f32.mrf.mxu1 }
 0x47d   :  { %v2404_v38 = vadd.f32 %v2403_v6, %v2385_v7  ;;  %v2387_v25 = vadd.f32 %v2386_v0, %v2333_v31  ;;  %2401 = vadd.xlane.f32.xlu0 %v2400_v47 }
 0x47e   :  { %v2388_v57 = vpop.f32.mrf.mxu0  ;;  %v2335_v53 = vpop.f32.mrf.mxu1 }
 0x47f   :  { %v2405_v43 = vadd.f32 %v2404_v38, %v2387_v25  ;;  %v7864_v44 = vadd.f32 %v2388_v57, %v2335_v53  ;;  %v7882_v21 = vpop.permute.xlu1 %2614 }
 0x480   :  { %v2390_v37 = vpop.f32.mrf.mxu0  ;;  %v2337_v58 = vpop.f32.mrf.mxu1 }
 0x481   :  { %v2409_v34 = vadd.f32 %v2408_v63, %v7864_v44  ;;  %v7867_v39 = vadd.f32 %v2390_v37, %v2337_v58  ;;  %2406 = vadd.xlane.f32.xlu0 %v2405_v43 }
 0x483   :  { %v2410_v1 = vadd.f32 %v2409_v34, %v7867_v39  ;;  %v7886_v46 = vpop.permute.xlu1 %2503 }
 0x485   :  { %2411 = vadd.xlane.f32.xlu1 %v2410_v1 }
 0x487   :  { %v7890_v3 = vpop.permute.xlu1 %2570 }
 0x48b   :  { %v7894_v33 = vpop.permute.xlu1 %2538 }
 0x48f   :  { %v7898_v5 = vpop.permute.xlu1 %2542 }
 0x493   :  { %v7922_v4 = vpop.permute.xlu1 %2606 }
 0x502   :  { %v2397_v19 = vpop.xlane.xlu0 %2396 }
 0x503   :  { %v2413_v8 = vmul.f32 0.001953125, %v2397_v19 }
 0x505   :  { %v7901_v35 = vsub.f32 %v7839_v42, %v2413_v8  ;;  %v7904_v2 = vsub.f32 %v7837_v62, %v2413_v8  ;;  %v7906_v20 = vsub.f32 %v2375_v26, %v2413_v8  ;;  %v7908_v48 = vsub.f32 %v2377_v61, %v2413_v8 }
 0x506   :  { %v2402_v11 = vpop.xlane.xlu0 %2401 }
 0x507   :  { %v2414_v29 = vmul.f32 0.001953125, %v2402_v11  ;;  %v2433_v15 = vmul.f32 %v7901_v35, %v7901_v35  ;;  %v2434_v10 = vmul.f32 %v7904_v2, %v7904_v2  ;;  %v2435_v62 = vmul.f32 %v7906_v20, %v7906_v20 }
 0x508   :  { %v2436_v36 = vmul.f32 %v7908_v48, %v7908_v48 }
 0x509   :  { %v7915_v40 = vsub.f32 %v7845_v22, %v2414_v29  ;;  %v7918_v42 = vsub.f32 %v7841_v23, %v2414_v29  ;;  %v2449_v26 = vadd.f32 %v2434_v10, %v2433_v15  ;;  %v7924_v61 = vsub.f32 %v2379_v52, %v2414_v29 }
 0x50a   :  { %v2407_v13 = vpop.xlane.xlu0 %2406  ;;  %v7933_v0 = vsub.f32 %v7853_v16, %v2414_v29 }
 0x50b   :  { %v2415_v6 = vmul.f32 0.001953125, %v2407_v13  ;;  %v2450_v47 = vadd.f32 %v2449_v26, %v2435_v62  ;;  %v2437_v22 = vmul.f32 %v7915_v40, %v7915_v40  ;;  %v2438_v23 = vmul.f32 %v7918_v42, %v7918_v42 }
 0x50c   :  { %v2439_v63 = vmul.f32 %v7924_v61, %v7924_v61 }
 0x50d   :  { %v7936_v31 = vsub.f32 %v7849_v18, %v2415_v6  ;;  %v7939_v52 = vsub.f32 %v7851_v30, %v2415_v6  ;;  %v7941_v38 = vsub.f32 %v2385_v7, %v2415_v6  ;;  %v2451_v57 = vadd.f32 %v2450_v47, %v2436_v36 }
 0x50e   :  { %v2412_v53 = vpop.xlane.xlu1 %2411  ;;  %v2454_v43 = vadd.f32 %v2438_v23, %v2437_v22  ;;  %v7945_v37 = vsub.f32 %v2387_v25, %v2415_v6  ;;  %v2440_v30 = vmul.f32 %v7933_v0, %v7933_v0 }
 0x50f   :  { %v2416_v58 = vmul.f32 0.001953125, %v2412_v53  ;;  %2452 = vadd.xlane.f32.xlu1 %v2451_v57  ;;  %v2441_v16 = vmul.f32 %v7936_v31, %v7936_v31  ;;  %v2442_v18 = vmul.f32 %v7939_v52, %v7939_v52  ;;  %v2443_v34 = vmul.f32 %v7941_v38, %v7941_v38 }
 0x510   :  { %v2455_v7 = vadd.f32 %v2454_v43, %v2439_v63  ;;  %v2444_v29 = vmul.f32 %v7945_v37, %v7945_v37 }
 0x511   :  { %v7956_v1 = vsub.f32 %v7860_v55, %v2416_v58  ;;  %v7959_v25 = vsub.f32 %v7857_v12, %v2416_v58  ;;  %v7962_v19 = vsub.f32 %v7864_v44, %v2416_v58  ;;  %v2459_v8 = vadd.f32 %v2442_v18, %v2441_v16  ;;  %v6296_v16 = vld [vmem:[%s10231_s1 + $0x40] sm:$0xff] }
 0x512   :  { %v2456_v11 = vadd.f32 %v2455_v7, %v2440_v30  ;;  %v7967_v10 = vsub.f32 %v7867_v39, %v2416_v58  ;;  %v2593_v18 = vmul.f32 %v6296_v16, %v7872_v49  ;;  %v6297_v7 = vld [vmem:[%s10231_s1 + $0x48] sm:$0xff] }
 0x513   :  { %v2460_v15 = vadd.f32 %v2459_v8, %v2443_v34  ;;  %v2445_v62 = vmul.f32 %v7956_v1, %v7956_v1  ;;  %v2446_v55 = vmul.f32 %v7959_v25, %v7959_v25  ;;  %v2447_v44 = vmul.f32 %v7962_v19, %v7962_v19  ;;  %v6298_v8 = vld [vmem:[%s10231_s1 + $0x50] sm:$0xff] }
 0x514   :  { %2457 = vadd.xlane.f32.xlu0 %v2456_v11  ;;  %v2448_v13 = vmul.f32 %v7967_v10, %v7967_v10  ;;  %v2594_v34 = vmul.f32 %v6297_v7, %v7872_v49  ;;  %v2595_v11 = vmul.f32 %v6298_v8, %v7872_v49  ;;  %v6308_v8 = vld [vmem:[%s10231_s1] sm:$0xff] }
 0x515   :  { %v2461_v12 = vadd.f32 %v2460_v15, %v2444_v29  ;;  %v2464_v26 = vadd.f32 %v2446_v55, %v2445_v62  ;;  %v6299_v15 = vld [vmem:[%s10231_s1 + $0x58] sm:$0xff]  ;;  %v6300_v55 = vld [vmem:[%s10231_s1 + $0x60] sm:$0xff] }
 0x516   :  { %v2596_v62 = vmul.f32 %v6299_v15, %v7872_v49  ;;  %v6303_v49 = vld [vmem:[%s10231_s1 + $0x78] sm:$0xff]  ;;  %v8029_v16 = vadd.f32 %v7880_v28, %v2594_v34  ;;  %v6310_v34 = vld [vmem:[%s10231_s1 + $0x10] sm:$0xff] }
 0x517   :  { %2462 = vadd.xlane.f32.xlu1 %v2461_v12  ;;  %v2465_v36 = vadd.f32 %v2464_v26, %v2447_v44  ;;  %v2597_v12 = vmul.f32 %v6300_v55, %v7874_v50  ;;  %v6301_v44 = vld [vmem:[%s10231_s1 + $0x68] sm:$0xff]  ;;  %v6311_v15 = vld [vmem:[%s10231_s1 + $0x18] sm:$0xff] }
 0x518   :  { %v2598_v26 = vmul.f32 %v6301_v44, %v7874_v50  ;;  %v2588_v55 = vmul.f32 %v6311_v15, %v7890_v3 }
 0x519   :  { %v2466_v6 = vadd.f32 %v2465_v36, %v2448_v13  ;;  %v6302_v13 = vld [vmem:[%s10231_s1 + $0x70] sm:$0xff] }
 0x51a   :  { %v2599_v36 = vmul.f32 %v6302_v13, %v7874_v50 }
 0x51b   :  { %2467 = vadd.xlane.f32.xlu0 %v2466_v6  ;;  %v2600_v6 = vmul.f32 %v6303_v49, %v7874_v50  ;;  %v6307_v50 = vld [vmem:[%s10231_s1 + $0x38] sm:$0xff] }
 0x598   :  { %v2453_v39 = vpop.xlane.xlu1 %2452 }
 0x599   :  { %v2469_v47 = vmul.f32 0.001953125, %v2453_v39 }
 0x59b   :  { %v2473_v22 = vadd.f32 0.001, %v2469_v47  ;;  %v6304_v47 = vld [vmem:[%s10231_s1 + $0x20] sm:$0xff] }
 0x59d   :  { %6204 = vrsqrt.f32 %v2473_v22  ;;  %v2458_v23 = vpop.xlane.xlu0 %2457  ;;  %v2589_v22 = vmul.f32 %v6304_v47, %v7892_v9  ;;  %v8055_v47 = vadd.f32 %v7880_v28, %v2596_v62 }
 0x59e   :  { %v2470_v57 = vmul.f32 0.001953125, %v2458_v23  ;;  %v6305_v23 = vld [vmem:[%s10231_s1 + $0x28] sm:$0xff] }
 0x5a0   :  { %v2474_v53 = vadd.f32 0.001, %v2470_v57  ;;  %v2463_v63 = vpop.xlane.xlu1 %2462  ;;  %v2590_v57 = vmul.f32 %v6305_v23, %v7892_v9  ;;  %v8058_v23 = vadd.f32 %v7882_v21, %v2597_v12 }
 0x5a1   :  { %v2471_v43 = vmul.f32 0.001953125, %v2463_v63 }
 0x5a2   :  { %6206 = vrsqrt.f32 %v2474_v53  ;;  %v6306_v53 = vld [vmem:[%s10231_s1 + $0x30] sm:$0xff] }
 0x5a3   :  { %v2475_v58 = vadd.f32 0.001, %v2471_v43  ;;  %v2591_v63 = vmul.f32 %v6306_v53, %v7892_v9  ;;  %v2592_v43 = vmul.f32 %v6307_v50, %v7892_v9  ;;  %v6309_v9 = vld [vmem:[%s10231_s1 + $0x8] sm:$0xff]  ;;  %v8061_v53 = vadd.f32 %v7882_v21, %v2598_v26 }
 0x5a4   :  { %v2468_v30 = vpop.xlane.xlu0 %2467  ;;  %v8064_v50 = vadd.f32 %v7882_v21, %v2599_v36  ;;  %v2620_v36 = vadd.f32 %v7896_v56, %v2588_v55 }
 0x5a5   :  { %6208 = vrsqrt.f32 %v2475_v58  ;;  %v2472_v29 = vmul.f32 0.001953125, %v2468_v30  ;;  %v8026_v58 = vadd.f32 %v7880_v28, %v2593_v18  ;;  %v8032_v30 = vadd.f32 %v7880_v28, %v2595_v11 }
 0x5a6   :  { %v2586_v18 = vmul.f32 %v6309_v9, %v7890_v3  ;;  %v2587_v11 = vmul.f32 %v6310_v34, %v7890_v3  ;;  %v8071_v28 = vadd.f32 %v7882_v21, %v2600_v6  ;;  %v8086_v34 = vadd.f32 %v7922_v4, %v2590_v57 }
 0x5a7   :  { %v2476_v39 = vadd.f32 0.001, %v2472_v29  ;;  %v2585_v29 = vmul.f32 %v6308_v8, %v7890_v3  ;;  %v8091_v55 = vadd.f32 %v7922_v4, %v2592_v43 }
 0x5a8   :  { %v2618_v62 = vadd.f32 %v7896_v56, %v2586_v18  ;;  %v2619_v12 = vadd.f32 %v7896_v56, %v2587_v11  ;;  %v2621_v18 = vadd.f32 %v7922_v4, %v2589_v22 }
 0x5a9   :  { %6210 = vrsqrt.f32 %v2476_v39 }
 0x5aa   :  { %v6205_v7 = vpop.eup %6204 }
 0x5ab   :  { %v2481_v44 = vmul.f32 %v6205_v7, %v7901_v35  ;;  %v2482_v13 = vmul.f32 %v6205_v7, %v7904_v2  ;;  %v2483_v49 = vmul.f32 %v6205_v7, %v7906_v20  ;;  %v2484_v39 = vmul.f32 %v6205_v7, %v7908_v48 }
 0x5ac   :  { %v2617_v48 = vadd.f32 %v7896_v56, %v2585_v29  ;;  %v2623_v56 = vadd.f32 %v7922_v4, %v2591_v63 }
 0x5ad   :  { %v2521_v3 = vmul.f32 %v7886_v46, %v2481_v44  ;;  %v2522_v35 = vmul.f32 %v7886_v46, %v2482_v13  ;;  %v2523_v2 = vmul.f32 %v7886_v46, %v2483_v49  ;;  %v2524_v20 = vmul.f32 %v7886_v46, %v2484_v39 }
 0x5af   :  { %v6207_v26 = vpop.eup %6206  ;;  %v2553_v7 = vadd.f32 %v7894_v33, %v2521_v3  ;;  %v2554_v8 = vadd.f32 %v7894_v33, %v2522_v35  ;;  %v2555_v9 = vadd.f32 %v7894_v33, %v2523_v2  ;;  %v2556_v46 = vadd.f32 %v7894_v33, %v2524_v20 }
 0x5b0   :  { %v2485_v21 = vmul.f32 %v6207_v26, %v7915_v40  ;;  %v2486_v6 = vmul.f32 %v6207_v26, %v7918_v42  ;;  %v2487_v29 = vmul.f32 %v6207_v26, %v7924_v61  ;;  %v2488_v11 = vmul.f32 %v6207_v26, %v7933_v0 }
 0x5b1   :  { %v8093_v33 = vmul.f32 %v2619_v12, %v2555_v9  ;;  %v2633_v44 = vmul.f32 %v2617_v48, %v2553_v7  ;;  %v8102_v13 = vmul.f32 %v2618_v62, %v2554_v8  ;;  %v8104_v4 = vmul.f32 %v2620_v36, %v2556_v46 }
 0x5b2   :  { %v6209_v15 = vpop.eup %6208  ;;  %v2525_v40 = vmul.f32 %v7888_v60, %v2485_v21  ;;  %v2527_v42 = vmul.f32 %v7888_v60, %v2487_v29  ;;  %v2526_v61 = vmul.f32 %v7888_v60, %v2486_v6  ;;  %v2528_v43 = vmul.f32 %v7888_v60, %v2488_v11 }
 0x5b3   :  { %v2489_v22 = vmul.f32 %v6209_v15, %v7936_v31  ;;  %v2490_v57 = vmul.f32 %v6209_v15, %v7939_v52  ;;  %v2491_v63 = vmul.f32 %v6209_v15, %v7941_v38  ;;  %v2492_v49 = vmul.f32 %v6209_v15, %v7945_v37 }
 0x5b4   :  { %v2559_v0 = vadd.f32 %v7898_v5, %v2527_v42  ;;  %v2651_v52 = vmax.f32 %v8093_v33, 0.0  ;;  %v2557_v38 = vadd.f32 %v7898_v5, %v2525_v40  ;;  %v2558_v20 = vadd.f32 %v7898_v5, %v2526_v61  ;;  %v34_v40 = vld [vmem:[%s10236_s0 + $0x50] sm:$0xff] }
 0x5b5   :  { %v2529_v39 = vmul.f32 %v7870_v54, %v2489_v22  ;;  %v2530_v3 = vmul.f32 %v7870_v54, %v2490_v57  ;;  %v2531_v2 = vmul.f32 %v7870_v54, %v2491_v63  ;;  %v2532_v48 = vmul.f32 %v7870_v54, %v2492_v49  ;;  %v30_v54 = vld [vmem:[%s10236_s0 + $0x30] sm:$0xff] }
 0x5b6   :  { %v6211_v31 = vpop.eup %6210  ;;  %v2639_v35 = vmul.f32 %v2623_v56, %v2559_v0  ;;  %v2649_v29 = vmax.f32 %v2633_v44, 0.0  ;;  %v2560_v56 = vadd.f32 %v7898_v5, %v2528_v43 }
 0x5b7   :  { %v2561_v60 = vadd.f32 %v7876_v24, %v2529_v39  ;;  %v2562_v37 = vadd.f32 %v7876_v24, %v2530_v3  ;;  %v2563_v12 = vadd.f32 %v7876_v24, %v2531_v2  ;;  %v2493_v26 = vmul.f32 %v6211_v31, %v7956_v1  ;;  %v36_v3 = vld [vmem:[%s10236_s0 + $0x60] sm:$0xff] }
 0x5b8   :  { %v2655_v62 = vmax.f32 %v2639_v35, 0.0  ;;  %v2494_v36 = vmul.f32 %v6211_v31, %v7959_v25  ;;  %v2564_v7 = vadd.f32 %v7876_v24, %v2532_v48  ;;  %v2495_v46 = vmul.f32 %v6211_v31, %v7962_v19  ;;  %v24_v19 = vld [vmem:[%s10236_s0] sm:$0xff]  ;;  %v25_v35 = vld [vmem:[%s10236_s0 + $0x8] sm:$0xff] }
 0x5b9   :  { %v2641_v8 = vmul.f32 %v8026_v58, %v2561_v60  ;;  %v2642_v9 = vmul.f32 %v8029_v16, %v2562_v37  ;;  %v2643_v21 = vmul.f32 %v8032_v30, %v2563_v12  ;;  %v2496_v6 = vmul.f32 %v6211_v31, %v7967_v10  ;;  %v32_v10 = vld [vmem:[%s10236_s0 + $0x40] sm:$0xff] }
 0x5ba   :  { %v2533_v1 = vmul.f32 %v7884_v41, %v2493_v26  ;;  %v8131_v25 = vmul.f32 %v8055_v47, %v2564_v7  ;;  %v2534_v58 = vmul.f32 %v7884_v41, %v2494_v36  ;;  %v2637_v16 = vmul.f32 %v2621_v18, %v2557_v38 }
 0x5bb   :  { %v2657_v24 = vmax.f32 %v2641_v8, 0.0  ;;  %v2659_v30 = vmax.f32 %v2643_v21, 0.0  ;;  %v2535_v11 = vmul.f32 %v7884_v41, %v2495_v46  ;;  %v2536_v47 = vmul.f32 %v7884_v41, %v2496_v6  ;;  %v28_v41 = vld [vmem:[%s10236_s0 + $0x20] sm:$0xff] }
 0x5bc   :  { %v8143_v15 = vsub.f32 %v30_v54, %v2655_v62  ;;  %v2658_v42 = vmax.f32 %v2642_v9, 0.0  ;;  %v2565_v18 = vadd.f32 %v7878_v17, %v2533_v1  ;;  %v2566_v5 = vadd.f32 %v7878_v17, %v2534_v58  ;;  %v29_v9 = vld [vmem:[%s10236_s0 + $0x28] sm:$0xff]  ;;  %v39_v1 = vld [vmem:[%s10236_s0 + $0x78] sm:$0xff] }
 0x5bd   :  { %v2660_v61 = vmax.f32 %v8131_v25, 0.0  ;;  %v2567_v22 = vadd.f32 %v7878_v17, %v2535_v11  ;;  %v2568_v57 = vadd.f32 %v7878_v17, %v2536_v47  ;;  %v2665_v63 = vsub.f32 %v24_v19, %v2649_v29 }
 0x5be   :  { %v2673_v0 = vsub.f32 %v32_v10, %v2657_v24  ;;  %v2645_v44 = vmul.f32 %v8058_v23, %v2565_v18  ;;  %v2646_v43 = vmul.f32 %v8061_v53, %v2566_v5  ;;  %v2653_v49 = vmax.f32 %v2637_v16, 0.0  ;;  %v38_v23 = vld [vmem:[%s10236_s0 + $0x70] sm:$0xff] }
 0x5bf   :  { %v2675_v39 = vsub.f32 %v34_v40, %v2659_v30  ;;  %v2647_v31 = vmul.f32 %v8064_v50, %v2567_v22  ;;  %v2648_v17 = vmul.f32 %v8071_v28, %v2568_v57  ;;  %v8163_v38 = vmax.f32 %v2665_v63, 0.0  ;;  %v27_v50 = vld [vmem:[%s10236_s0 + $0x18] sm:$0xff]  ;;  %v33_v28 = vld [vmem:[%s10236_s0 + $0x48] sm:$0xff]  ;;  %v26_v10 = vld [vmem:[%s10236_s0 + $0x10] sm:$0xff] }
 0x5c0   :  { %v2661_v53 = vmax.f32 %v2645_v44, 0.0  ;;  %v2662_v2 = vmax.f32 %v2646_v43, 0.0  ;;  %v2669_v48 = vsub.f32 %v28_v41, %v2653_v49  ;;  %v2650_v60 = vmax.f32 %v8102_v13, 0.0  ;;  %v37_v13 = vld [vmem:[%s10236_s0 + $0x68] sm:$0xff] }
 0x5c1   :  { %10509 = vst [vmem:[#allocation24_spill] sm:$0xff] %v8163_v38  ;;  %v2663_v37 = vmax.f32 %v2647_v31, 0.0  ;;  %v2664_v62 = vmax.f32 %v2648_v17, 0.0  ;;  %3537 = vrot.lane.b32.xlu1 %v8163_v38, %s6344_s17  ;;  %v2638_v12 = vmul.f32 %v8086_v34, %v2558_v20  ;;  %v2652_v26 = vmax.f32 %v8104_v4, 0.0  ;;  %v31_v34 = vld [vmem:[%s10236_s0 + $0x38] sm:$0xff]  ;;  %v6122_v31 = vld [vmem:[%s10232_s2 + $0x10] sm:$0xff]  }
 0x5c2   :  { %v2677_v36 = vsub.f32 %v36_v3, %v2661_v53  ;;  %v8185_v7 = vmax.f32 %v2669_v48, 0.0  ;;  %v2666_v8 = vsub.f32 %v25_v35, %v2650_v60  ;;  %v2640_v46 = vmul.f32 %v8091_v55, %v2560_v56  ;;  %v35_v20 = vld [vmem:[%s10236_s0 + $0x58] sm:$0xff] }
 0x5c3   :  { %v2679_v54 = vsub.f32 %v38_v23, %v2663_v37  ;;  %v2654_v21 = vmax.f32 %v2638_v12, 0.0  ;;  %v2668_v6 = vsub.f32 %v27_v50, %v2652_v26  ;;  %v2674_v4 = vsub.f32 %v33_v28, %v2658_v42  ;;  %v6123_v17 = vld [vmem:[%s10232_s2 + $0x18] sm:$0xff]  }
 0x5c4   :  { %10510 = vst [vmem:[#allocation17_spill] sm:$0xff] %v8185_v7  ;;  %v8200_v29 = vmax.f32 %v2677_v36, 0.0  ;;  %3539 = vrot.lane.b32.xlu0 %v8185_v7, %s6344_s17  ;;  %v8204_v55 = vmax.f32 %v2666_v8, 0.0  ;;  %v2656_v25 = vmax.f32 %v2640_v46, 0.0  ;;  %v2678_v24 = vsub.f32 %v37_v13, %v2662_v2 }
 0x5c5   :  { %v8206_v58 = vmax.f32 %v2673_v0, 0.0  ;;  %v8208_v19 = vmax.f32 %v2679_v54, 0.0  ;;  %v2670_v16 = vsub.f32 %v29_v9, %v2654_v21  ;;  %v8210_v56 = vmax.f32 %v2674_v4, 0.0 }
 0x5c6   :  { %10511 = vst [vmem:[#allocation19_spill] sm:$0xff] %v8200_v29  ;;  %10512 = vst [vmem:[#allocation54_spill] sm:$0xff] %v8204_v55  ;;  %3545 = vrot.lane.b32.xlu1 %v8204_v55, %s6344_s17  ;;  %v2672_v30 = vsub.f32 %v31_v34, %v2656_v25  ;;  %v8217_v11 = vmax.f32 %v2678_v24, 0.0  ;;  %v2676_v47 = vsub.f32 %v35_v20, %v2660_v61  ;;  %v8219_v42 = vmax.f32 %v2675_v39, 0.0 }
 0x5c7   :  { %10513 = vst [vmem:[#allocation50_spill] sm:$0xff] %v8206_v58  ;;  %10514 = vst [vmem:[#allocation25_spill] sm:$0xff] %v8208_v19  ;;  %v2680_v40 = vsub.f32 %v39_v1, %v2664_v62  ;;  %v8221_v18 = vmax.f32 %v2670_v16, 0.0  ;;  %v8223_v5 = vmax.f32 %v2668_v6, 0.0  ;;  %v8227_v22 = vpack.c.bf16 %v8200_v29, %v8206_v58 }
 0x5c8   :  { %10515 = vst [vmem:[#allocation26_spill] sm:$0xff] %v8210_v56  ;;  %10516 = vst [vmem:[#allocation28_spill] sm:$0xff] %v8217_v11  ;;  %v8229_v57 = vmax.f32 %v2672_v30, 0.0  ;;  %v8233_v63 = vpack.c.bf16 %v8217_v11, %v8210_v56  ;;  %v8235_v41 = vmax.f32 %v2676_v47, 0.0  ;;  %v2667_v0 = vsub.f32 %v26_v10, %v2651_v52 }
 0x5c9   :  { %10517 = vst [vmem:[#allocation27_spill] sm:$0xff] %v8219_v42  ;;  %10518 = vst [vmem:[#allocation32_spill] sm:$0xff] %v8221_v18  ;;  %v8237_v61 = vmax.f32 %v2680_v40, 0.0  ;;  %3547 = vrot.lane.b32.xlu0 %v8221_v18, %s6344_s17  ;;  %v8245_v44 = vpack.c.bf16 %v8208_v19, %v8219_v42  ;;  %v8256_v33 = vpack.c.bf16 %v8221_v18, %v8204_v55  ;;  %v8259_v52 = vmax.f32 %v8143_v15, 0.0 }
 0x5ca   :  { %10519 = vst [vmem:[#allocation30_spill] sm:$0xff] %v8223_v5  ;;  %10520 = vst [vmem:[#allocation31_spill] sm:$0xff] %v8227_v22  ;;  %3561 = vrot.lane.b32.xlu1 %v8223_v5, %s6344_s17  ;;  %2753 = vmatprep.subr.bf16.mxu0 %v8233_v63  ;;  %v8266_v49 = vpack.c.bf16 %v8229_v57, %v8223_v5  ;;  %v8268_v39 = vmax.f32 %v2667_v0, 0.0  ;;  %v8275_v15 = vpack.c.bf16 %v8185_v7, %v8163_v38  ;;  %v6355_v37 = vmov 6  }
 0x5cb   :  { %10521 = vst [vmem:[#allocation29_spill] sm:$0xff] %v8229_v57  ;;  %10522 = vst [vmem:[#allocation33_spill] sm:$0xff] %v8233_v63  ;;  %v8252_v43 = vpack.c.bf16 %v8237_v61, %v8235_v41  ;;  %2754 = vmatpush1.bf16.msra.mxu0 %v8227_v22  ;;  %6098 = vset.pattern.permute.xlu1 %v6355_v37 }
 0x5cc   :  { %10523 = vst [vmem:[#allocation34_spill] sm:$0xff] %v8235_v41  ;;  %10524 = vst [vmem:[#allocation36_spill] sm:$0xff] %v8237_v61  ;;  %2755 = vmatprep.subr.bf16.mxu0 %v8256_v33  ;;  %v8283_v3 = vpack.c.bf16 %v8259_v52, %v8268_v39  ;;  %6099 = vset.pattern.permute.xlu0 %v6355_v37 }
 0x5cd   :  { %10525 = vst [vmem:[#allocation35_spill] sm:$0xff] %v8245_v44  ;;  %10526 = vst [vmem:[#allocation40_spill] sm:$0xff] %v8252_v43  ;;  %2806 = vmatprep.subr.bf16.mxu1 %v8252_v43  ;;  %3563 = vrot.lane.b32.xlu0 %v8229_v57, %s6344_s17 }
 0x5ce   :  { %10527 = vst [vmem:[#allocation38_spill] sm:$0xff] %v8256_v33  ;;  %10528 = vst [vmem:[#allocation39_spill] sm:$0xff] %v8259_v52  ;;  %2807 = vmatpush1.bf16.msra.mxu1 %v8245_v44  ;;  %3395 = vrot.lane.b32.xlu1 %v8163_v38, %s6345_s18 }
 0x5cf   :  { %10529 = vst [vmem:[#allocation37_spill] sm:$0xff] %v8266_v49  ;;  %10530 = vst [vmem:[#allocation42_spill] sm:$0xff] %v8268_v39  ;;  %2808 = vmatprep.subr.bf16.mxu1 %v8266_v49  ;;  %2756 = vmatpush1.bf16.msra.mxu0 %v8275_v15 }
 0x5d0   :  { %10531 = vst [vmem:[#allocation41_spill] sm:$0xff] %v8275_v15  ;;  %10532 = vst [vmem:[#allocation48_spill] sm:$0xff] %v8283_v3 }
 0x5d1   :  { %3397 = vrot.lane.b32.xlu0 %v8185_v7, %s6345_s18 }
 0x5d2   :  { %2809 = vmatpush1.bf16.msra.mxu1 %v8283_v3  ;;  %3403 = vrot.lane.b32.xlu1 %v8204_v55, %s6345_s18 }
 0x5d3   :  { %5588 = vmatmul.mubr.msk.bf16.vlgmr.msra.gmra.mxu0 %vm102_vm0, %v6122_v31 }
 0x5d4   :  { %2783 = vmatprep.mubr.bf16.mxu0 %v10455_v32 }
 0x5d5   :  { %3405 = vrot.lane.b32.xlu0 %v8221_v18, %s6345_s18  ;;  %5590 = vmatmul.mubr.msk.bf16.vlgmr.msra.gmra.mxu1 %vm102_vm0, %v6122_v31 }
 0x5d6   :  { %4161 = vrot.lane.b32.xlu1 %v8204_v55, %s6346_s19  ;;  %2836 = vmatprep.mubr.bf16.mxu1 %v10455_v32 }
 0x5d9   :  { %4163 = vrot.lane.b32.xlu0 %v8221_v18, %s6346_s19 }
 0x5da   :  { %4169 = vrot.lane.b32.xlu1 %v8268_v39, %s6346_s19 }
 0x5db   :  { %5589 = vmatmul.mubr.msk.bf16.gmra.mxu0 %vm102_vm0, %v6123_v17 }
 0x5dd   :  { %4171 = vrot.lane.b32.xlu0 %v8259_v52, %s6346_s19  ;;  %5591 = vmatmul.mubr.msk.bf16.gmra.mxu1 %vm102_vm0, %v6123_v17 }
 0x5de   :  { %3419 = vrot.lane.b32.xlu1 %v8223_v5, %s6345_s18  ;;  %4856 = vmatprep.mubr.bf16.mxu1 %v10455_v32 }
 0x5e1   :  { %3421 = vrot.lane.b32.xlu0 %v8229_v57, %s6345_s18 }
 0x5e2   :  { %4153 = vrot.lane.b32.xlu1 %v8163_v38, %s6346_s19 }
 0x5e5   :  { %4155 = vrot.lane.b32.xlu0 %v8185_v7, %s6346_s19 }
 0x5e6   :  { %3253 = vrot.lane.b32.xlu1 %v8163_v38, %s6347_s20 }
 0x5e9   :  { %3255 = vrot.lane.b32.xlu0 %v8185_v7, %s6347_s20 }
 0x5ea   :  { %3261 = vrot.lane.b32.xlu1 %v8204_v55, %s6347_s20 }
 0x5ed   :  { %3263 = vrot.lane.b32.xlu0 %v8221_v18, %s6347_s20 }
 0x5ee   :  { %3553 = vrot.lane.b32.xlu1 %v8268_v39, %s6344_s17 }
 0x5f1   :  { %3555 = vrot.lane.b32.xlu0 %v8259_v52, %s6344_s17 }
 0x5f2   :  { %3277 = vrot.lane.b32.xlu1 %v8223_v5, %s6347_s20 }
 0x5f5   :  { %3279 = vrot.lane.b32.xlu0 %v8229_v57, %s6347_s20 }
 0x5f6   :  { %3111 = vrot.lane.b32.xlu1 %v8163_v38, %s6348_s21 }
 0x5f9   :  { %3113 = vrot.lane.b32.xlu0 %v8185_v7, %s6348_s21 }
 0x5fa   :  { %3119 = vrot.lane.b32.xlu1 %v8204_v55, %s6348_s21 }
 0x5fd   :  { %3121 = vrot.lane.b32.xlu0 %v8221_v18, %s6348_s21 }
 0x5fe   :  { %3411 = vrot.lane.b32.xlu1 %v8268_v39, %s6345_s18 }
 0x601   :  { %3413 = vrot.lane.b32.xlu0 %v8259_v52, %s6345_s18 }
 0x602   :  { %3135 = vrot.lane.b32.xlu1 %v8223_v5, %s6348_s21 }
 0x605   :  { %3137 = vrot.lane.b32.xlu0 %v8229_v57, %s6348_s21 }
 0x606   :  { %3269 = vrot.lane.b32.xlu1 %v8268_v39, %s6347_s20 }
 0x609   :  { %3271 = vrot.lane.b32.xlu0 %v8259_v52, %s6347_s20 }
 0x60a   :  { %4019 = vrot.lane.b32.xlu1 %v8204_v55, %s6349_s22 }
 0x60d   :  { %4021 = vrot.lane.b32.xlu0 %v8221_v18, %s6349_s22 }
 0x60e   :  { %4027 = vrot.lane.b32.xlu1 %v8268_v39, %s6349_s22 }
 0x611   :  { %4029 = vrot.lane.b32.xlu0 %v8259_v52, %s6349_s22 }
 0x612   :  { %4011 = vrot.lane.b32.xlu1 %v8163_v38, %s6349_s22 }
 0x615   :  { %4013 = vrot.lane.b32.xlu0 %v8185_v7, %s6349_s22 }
 0x616   :  { %3127 = vrot.lane.b32.xlu1 %v8268_v39, %s6348_s21 }
 0x619   :  { %3129 = vrot.lane.b32.xlu0 %v8259_v52, %s6348_s21 }
 0x61a   :  { %3877 = vrot.lane.b32.xlu1 %v8204_v55, %s6350_s23 }
 0x61d   :  { %3879 = vrot.lane.b32.xlu0 %v8221_v18, %s6350_s23 }
 0x61e   :  { %3885 = vrot.lane.b32.xlu1 %v8268_v39, %s6350_s23 }
 0x621   :  { %3887 = vrot.lane.b32.xlu0 %v8259_v52, %s6350_s23 }
 0x622   :  { %3869 = vrot.lane.b32.xlu1 %v8163_v38, %s6350_s23 }
 0x625   :  { %3871 = vrot.lane.b32.xlu0 %v8185_v7, %s6350_s23 }
 0x626   :  { %3735 = vrot.lane.b32.xlu1 %v8204_v55, %s6351_s24 }
 0x629   :  { %3737 = vrot.lane.b32.xlu0 %v8221_v18, %s6351_s24 }
 0x62a   :  { %3743 = vrot.lane.b32.xlu1 %v8268_v39, %s6351_s24 }
 0x62d   :  { %3745 = vrot.lane.b32.xlu0 %v8259_v52, %s6351_s24 }
 0x62e   :  { %4035 = vrot.lane.b32.xlu1 %v8223_v5, %s6349_s22 }
 0x631   :  { %4037 = vrot.lane.b32.xlu0 %v8229_v57, %s6349_s22 }
 0x632   :  { %3541 = vrot.lane.b32.xlu1 %v8206_v58, %s6344_s17 }
 0x633   :  { %v8399_v35 = vpop.permute.xlu1 %3537 }
 0x635   :  { %3543 = vrot.lane.b32.xlu0 %v8200_v29, %s6344_s17 }
 0x636   :  { %3549 = vrot.lane.b32.xlu1 %v8210_v56, %s6344_s17  ;;  %v8405_v23 = vpop.permute.xlu0 %3539 }
 0x638   :  { %v8407_v53 = vpop.permute.xlu1 %3545 }
 0x639   :  { %3551 = vrot.lane.b32.xlu0 %v8217_v11, %s6344_s17 }
 0x63a   :  { %3565 = vrot.lane.b32.xlu1 %v8235_v41, %s6344_s17 }
 0x63b   :  { %v8413_v2 = vpop.permute.xlu0 %3547 }
 0x63c   :  { %v8415_v48 = vpop.permute.xlu1 %3561 }
 0x63d   :  { %3567 = vrot.lane.b32.xlu0 %v8237_v61, %s6344_s17 }
 0x63e   :  { %3399 = vrot.lane.b32.xlu1 %v8206_v58, %s6345_s18 }
 0x63f   :  { %v8421_v60 = vpop.permute.xlu0 %3563 }
 0x640   :  { %v8423_v50 = vpop.permute.xlu1 %3395 }
 0x641   :  { %3401 = vrot.lane.b32.xlu0 %v8200_v29, %s6345_s18 }
 0x642   :  { %3407 = vrot.lane.b32.xlu1 %v8210_v56, %s6345_s18 }
 0x643   :  { %v8429_v28 = vpop.permute.xlu0 %3397 }
 0x644   :  { %v8431_v62 = vpop.permute.xlu1 %3403 }
 0x645   :  { %10533 = vst [vmem:[#allocation46_spill] sm:$0xff] %v8431_v62  ;;  %3409 = vrot.lane.b32.xlu0 %v8217_v11, %s6345_s18 }
 0x646   :  { %4165 = vrot.lane.b32.xlu1 %v8210_v56, %s6346_s19 }
 0x647   :  { %v8437_v12 = vpop.permute.xlu0 %3405 }
 0x648   :  { %10534 = vst [vmem:[#allocation44_spill] sm:$0xff] %v8437_v12  ;;  %v8439_v26 = vpop.permute.xlu1 %4161 }
 0x649   :  { %4167 = vrot.lane.b32.xlu0 %v8217_v11, %s6346_s19 }
 0x64a   :  { %4173 = vrot.lane.b32.xlu1 %v8219_v42, %s6346_s19 }
 0x64b   :  { %v8445_v13 = vpop.permute.xlu0 %4163 }
 0x64c   :  { %v8447_v36 = vpop.permute.xlu1 %4169 }
 0x64d   :  { %10535 = vst [vmem:[#allocation47_spill] sm:$0xff] %v8447_v36  ;;  %4175 = vrot.lane.b32.xlu0 %v8208_v19, %s6346_s19 }
 0x64e   :  { %3423 = vrot.lane.b32.xlu1 %v8235_v41, %s6345_s18 }
 0x64f   :  { %v8453_v8 = vpop.permute.xlu0 %4171 }
 0x650   :  { %10536 = vst [vmem:[#allocation45_spill] sm:$0xff] %v8453_v8  ;;  %v8455_v9 = vpop.permute.xlu1 %3419 }
 0x651   :  { %3425 = vrot.lane.b32.xlu0 %v8237_v61, %s6345_s18 }
 0x652   :  { %4157 = vrot.lane.b32.xlu1 %v8206_v58, %s6346_s19 }
 0x653   :  { %v8461_v46 = vpop.permute.xlu0 %3421 }
 0x654   :  { %v8463_v54 = vpop.permute.xlu1 %4153 }
 0x655   :  { %4159 = vrot.lane.b32.xlu0 %v8200_v29, %s6346_s19 }
 0x656   :  { %3257 = vrot.lane.b32.xlu1 %v8206_v58, %s6347_s20 }
 0x657   :  { %v8469_v21 = vpop.permute.xlu0 %4155 }
 0x658   :  { %v8471_v6 = vpop.permute.xlu1 %3253 }
 0x659   :  { %3259 = vrot.lane.b32.xlu0 %v8200_v29, %s6347_s20 }
 0x65a   :  { %3265 = vrot.lane.b32.xlu1 %v8210_v56, %s6347_s20 }
 0x65b   :  { %v8477_v34 = vpop.permute.xlu0 %3255 }
 0x65c   :  { %v8479_v4 = vpop.permute.xlu1 %3261 }
 0x65d   :  { %3267 = vrot.lane.b32.xlu0 %v8217_v11, %s6347_s20 }
 0x65e   :  { %3557 = vrot.lane.b32.xlu1 %v8219_v42, %s6344_s17 }
 0x65f   :  { %v8485_v20 = vpop.permute.xlu0 %3263 }
 0x660   :  { %v8487_v1 = vpop.permute.xlu1 %3553 }
 0x661   :  { %3559 = vrot.lane.b32.xlu0 %v8208_v19, %s6344_s17 }
 0x662   :  { %3281 = vrot.lane.b32.xlu1 %v8235_v41, %s6347_s20 }
 0x663   :  { %v8493_v25 = vpop.permute.xlu0 %3555 }
 0x664   :  { %v8495_v24 = vpop.permute.xlu1 %3277 }
 0x665   :  { %3283 = vrot.lane.b32.xlu0 %v8237_v61, %s6347_s20 }
 0x666   :  { %3115 = vrot.lane.b32.xlu1 %v8206_v58, %s6348_s21 }
 0x667   :  { %v8501_v16 = vpop.permute.xlu0 %3279 }
 0x668   :  { %v8503_v10 = vpop.permute.xlu1 %3111 }
 0x669   :  { %3117 = vrot.lane.b32.xlu0 %v8200_v29, %s6348_s21 }
 0x66a   :  { %3123 = vrot.lane.b32.xlu1 %v8210_v56, %s6348_s21 }
 0x66b   :  { %v8509_v30 = vpop.permute.xlu0 %3113 }
 0x66c   :  { %v8511_v47 = vpop.permute.xlu1 %3119 }
 0x66d   :  { %3125 = vrot.lane.b32.xlu0 %v8217_v11, %s6348_s21 }
 0x66e   :  { %3415 = vrot.lane.b32.xlu1 %v8219_v42, %s6345_s18 }
 0x66f   :  { %v8517_v40 = vpop.permute.xlu0 %3121 }
 0x670   :  { %v8519_v0 = vpop.permute.xlu1 %3411 }
 0x671   :  { %3417 = vrot.lane.b32.xlu0 %v8208_v19, %s6345_s18 }
 0x672   :  { %3139 = vrot.lane.b32.xlu1 %v8235_v41, %s6348_s21 }
 0x673   :  { %v8525_v31 = vpop.permute.xlu0 %3413 }
 0x674   :  { %v8527_v17 = vpop.permute.xlu1 %3135 }
 0x675   :  { %10537 = vst [vmem:[#allocation43_spill] sm:$0xff] %v8527_v17  ;;  %3141 = vrot.lane.b32.xlu0 %v8237_v61, %s6348_s21 }
 0x676   :  { %3273 = vrot.lane.b32.xlu1 %v8219_v42, %s6347_s20 }
 0x677   :  { %v8533_v37 = vpop.permute.xlu0 %3137 }
 0x678   :  { %10538 = vst [vmem:[#allocation11_spill] sm:$0xff] %v8533_v37  ;;  %v8535_v52 = vpop.permute.xlu1 %3269 }
 0x679   :  { %10539 = vst [vmem:[#allocation15_spill] sm:$0xff] %v8535_v52  ;;  %3275 = vrot.lane.b32.xlu0 %v8208_v19, %s6347_s20 }
 0x67a   :  { %4023 = vrot.lane.b32.xlu1 %v8210_v56, %s6349_s22 }
 0x67b   :  { %v8541_v18 = vpop.permute.xlu0 %3271 }
 0x67c   :  { %10540 = vst [vmem:[#allocation13_spill] sm:$0xff] %v8541_v18  ;;  %v8543_v39 = vpop.permute.xlu1 %4019 }
 0x67d   :  { %10541 = vst [vmem:[#allocation14_spill] sm:$0xff] %v8543_v39  ;;  %4025 = vrot.lane.b32.xlu0 %v8217_v11, %s6349_s22 }
 0x67e   :  { %4031 = vrot.lane.b32.xlu1 %v8219_v42, %s6349_s22 }
 0x67f   :  { %v8549_v55 = vpop.permute.xlu0 %4021 }
 0x680   :  { %10542 = vst [vmem:[#allocation4_spill] sm:$0xff] %v8549_v55  ;;  %v8551_v3 = vpop.permute.xlu1 %4027  ;;  %v3582_v55 = vsel %vm961_vm1, %v8421_v60, %v8405_v23 }
 0x681   :  { %10543 = vst [vmem:[#allocation7_spill] sm:$0xff] %v8551_v3  ;;  %4033 = vrot.lane.b32.xlu0 %v8208_v19, %s6349_s22  ;;  %v8672_v3 = vld [vmem:[%s10234_s3 + $0x34] ss:$12 sps:$4 sm:$0xff]  }
 0x682   :  { %4015 = vrot.lane.b32.xlu1 %v8206_v58, %s6349_s22  ;;  %4803 = vmatprep.mubr.bf16.mxu0 %v8672_v3 }
 0x683   :  { %v8557_v49 = vpop.permute.xlu0 %4029 }
 0x684   :  { %10544 = vst [vmem:[#allocation3_spill] sm:$0xff] %v8557_v49  ;;  %v8559_v44 = vpop.permute.xlu1 %4011 }
 0x685   :  { %10545 = vst [vmem:[#allocation5_spill] sm:$0xff] %v8559_v44  ;;  %4017 = vrot.lane.b32.xlu0 %v8200_v29, %s6349_s22  ;;  %v3577_v44 = vsel %vm961_vm1, %v8399_v35, %v8407_v53 }
 0x686   :  { %3131 = vrot.lane.b32.xlu1 %v8219_v42, %s6348_s21 }
 0x687   :  { %v8565_v43 = vpop.permute.xlu0 %4013 }
 0x688   :  { %10546 = vst [vmem:[#allocation52_spill] sm:$0xff] %v8565_v43  ;;  %v8567_v15 = vpop.permute.xlu1 %3127 }
 0x689   :  { %10547 = vst [vmem:[#allocation49_spill] sm:$0xff] %v8567_v15  ;;  %3133 = vrot.lane.b32.xlu0 %v8208_v19, %s6348_s21 }
 0x68a   :  { %3881 = vrot.lane.b32.xlu1 %v8210_v56, %s6350_s23 }
 0x68b   :  { %v8573_v33 = vpop.permute.xlu0 %3129 }
 0x68c   :  { %10548 = vst [vmem:[#allocation51_spill] sm:$0xff] %v8573_v33  ;;  %v8575_v22 = vpop.permute.xlu1 %3877 }
 0x68d   :  { %10549 = vst [vmem:[#allocation53_spill] sm:$0xff] %v8575_v22  ;;  %3883 = vrot.lane.b32.xlu0 %v8217_v11, %s6350_s23 }
 0x68e   :  { %3889 = vrot.lane.b32.xlu1 %v8219_v42, %s6350_s23 }
 0x68f   :  { %v8581_v63 = vpop.permute.xlu0 %3879 }
 0x690   :  { %10550 = vst [vmem:[#allocation20_spill] sm:$0xff] %v8581_v63  ;;  %v8583_v43 = vpop.permute.xlu1 %3885 }
 0x691   :  { %10551 = vst [vmem:[#allocation12_spill] sm:$0xff] %v8583_v43  ;;  %3891 = vrot.lane.b32.xlu0 %v8208_v19, %s6350_s23 }
 0x692   :  { %3873 = vrot.lane.b32.xlu1 %v8206_v58, %s6350_s23 }
 0x693   :  { %v8589_v15 = vpop.permute.xlu0 %3887 }
 0x694   :  { %10552 = vst [vmem:[#allocation16_spill] sm:$0xff] %v8589_v15  ;;  %v8591_v33 = vpop.permute.xlu1 %3869 }
 0x695   :  { %10553 = vst [vmem:[#allocation18_spill] sm:$0xff] %v8591_v33  ;;  %3875 = vrot.lane.b32.xlu0 %v8200_v29, %s6350_s23 }
 0x696   :  { %3739 = vrot.lane.b32.xlu1 %v8210_v56, %s6351_s24 }
 0x697   :  { %v8597_v22 = vpop.permute.xlu0 %3871 }
 0x698   :  { %10554 = vst [vmem:[#allocation22_spill] sm:$0xff] %v8597_v22  ;;  %v8599_v63 = vpop.permute.xlu1 %3735 }
 0x699   :  { %10555 = vst [vmem:[#allocation21_spill] sm:$0xff] %v8599_v63  ;;  %3741 = vrot.lane.b32.xlu0 %v8217_v11, %s6351_s24  ;;  %v8630_v63 = vld [vmem:[%s10235_s4 + $0x3] ss:$8 sm:$0xf] }
 0x69a   :  { %3747 = vrot.lane.b32.xlu1 %v8219_v42, %s6351_s24  ;;  %v3590_v39 = vrot.slane %v8630_v63, %v7060_v59 }
 0x69b   :  { %v8605_v43 = vpop.permute.xlu0 %3737 }
 0x69c   :  { %10556 = vst [vmem:[#allocation23_spill] sm:$0xff] %v8605_v43  ;;  %v8607_v15 = vpop.permute.xlu1 %3743 }
 0x69d   :  { %10557 = vst [vmem:[#allocation6_spill] sm:$0xff] %v8607_v15  ;;  %3749 = vrot.lane.b32.xlu0 %v8208_v19, %s6351_s24 }
 0x69e   :  { %4039 = vrot.lane.b32.xlu1 %v8235_v41, %s6349_s22 }
 0x69f   :  { %v8613_v56 = vpop.permute.xlu0 %3745 }
 0x6a0   :  { %10558 = vst [vmem:[#allocation8_spill] sm:$0xff] %v8613_v56  ;;  %v8615_v33 = vpop.permute.xlu1 %4035 }
 0x6a1   :  { %10559 = vst [vmem:[#allocation9_spill] sm:$0xff] %v8615_v33  ;;  %4041 = vrot.lane.b32.xlu0 %v8237_v61, %s6349_s22 }
 0x6a2   :  { %3731 = vrot.lane.b32.xlu1 %v8206_v58, %s6351_s24 }
 0x6a3   :  { %v8621_v11 = vpop.permute.xlu0 %4037 }
 0x6a4   :  { %10560 = vst [vmem:[#allocation10_spill] sm:$0xff] %v8621_v11  ;;  %v3542_v42 = vpop.permute.xlu1 %3541 }
 0x6a5   :  { %3733 = vrot.lane.b32.xlu0 %v8200_v29, %s6351_s24  ;;  %v3594_v29 = vrot.slane %v8630_v63, %v7040_v27 }
 0x6a6   :  { %3727 = vrot.lane.b32.xlu1 %v8163_v38, %s6351_s24 }
 0x6a7   :  { %v3544_v19 = vpop.permute.xlu0 %3543 }
 0x6a8   :  { %v8632_v15 = vpop.permute.xlu1 %3549 }
 0x6a9   :  { %3729 = vrot.lane.b32.xlu0 %v8185_v7, %s6351_s24  ;;  %v3579_v58 = vsel %vm961_vm1, %v3542_v42, %v8632_v15  ;;  %v3578_v7 = vsel %vm961_vm1, %v8405_v23, %v8413_v2 }
 0x6aa   :  { %3897 = vrot.lane.b32.xlu1 %v8235_v41, %s6350_s23  ;;  %v3616_v56 = vmul.f32 %v3594_v29, %v3579_v58 }
 0x6ab   :  { %v8643_v38 = vpop.permute.xlu0 %3551 }
 0x6ac   :  { %v3580_v33 = vsel %vm961_vm1, %v3544_v19, %v8643_v38  ;;  %v8648_v43 = vpop.permute.xlu1 %3565 }
 0x6ad   :  { %v3620_v11 = vmul.f32 %v3594_v29, %v3580_v33  ;;  %3899 = vrot.lane.b32.xlu0 %v8237_v61, %s6350_s23  ;;  %v3583_v22 = vsel %vm961_vm1, %v8648_v43, %v3542_v42  ;;  %v3612_v42 = vmul.f32 %v3594_v29, %v3578_v7  ;;  %v3581_v7 = vsel %vm961_vm1, %v8415_v48, %v8399_v35 }
 0x6ae   :  { %3893 = vrot.lane.b32.xlu1 %v8223_v5, %s6350_s23  ;;  %v3615_v18 = vmul.f32 %v3590_v39, %v3583_v22  ;;  %v8693_v22 = vld [vmem:[%s10235_s4 + $0x2] ss:$8 sm:$0xf] }
 0x6af   :  { %v8667_v58 = vpop.permute.xlu0 %3567  ;;  %v6014_v33 = vpack.c.bf16 %v3620_v11, %v3616_v56  ;;  %v3608_v56 = vmul.f32 %v3594_v29, %v3577_v44  ;;  %v3611_v11 = vmul.f32 %v3590_v39, %v3582_v55  ;;  %v3607_v44 = vmul.f32 %v3590_v39, %v3581_v7 }
 0x6b0   :  { %v3584_v49 = vsel %vm961_vm1, %v8667_v58, %v3544_v19  ;;  %v3400_v52 = vpop.permute.xlu1 %3399  ;;  %v3448_v17 = vrot.slane %v8693_v22, %v7060_v59 }
 0x6b1   :  { %v3619_v37 = vmul.f32 %v3590_v39, %v3584_v49  ;;  %3895 = vrot.lane.b32.xlu0 %v8229_v57, %s6350_s23  ;;  %4771 = vmatprep.subr.bf16.mxu0 %v6014_v33  ;;  %v6010_v29 = vpack.c.bf16 %v3612_v42, %v3608_v56  ;;  %v6009_v55 = vpack.c.bf16 %v3611_v11, %v3607_v44 }
 0x6b2   :  { %3755 = vrot.lane.b32.xlu1 %v8235_v41, %s6351_s24 }
 0x6b3   :  { %v6013_v19 = vpack.c.bf16 %v3619_v37, %v3615_v18  ;;  %v3402_v23 = vpop.permute.xlu0 %3401  ;;  %v3452_v18 = vrot.slane %v8693_v22, %v7040_v27 }
 0x6b4   :  { %v8695_v49 = vpop.permute.xlu1 %3407 }
 0x6b5   :  { %3757 = vrot.lane.b32.xlu0 %v8237_v61, %s6351_s24  ;;  %4772 = vmatpush1.bf16.msra.mxu0 %v6013_v19  ;;  %v3437_v35 = vsel %vm817_vm2, %v3400_v52, %v8695_v49  ;;  %v8718_v19 = vld [vmem:[%s10235_s4 + $0x20] ss:$8 sm:$0xf] }
 0x6b6   :  { %3751 = vrot.lane.b32.xlu1 %v8223_v5, %s6351_s24  ;;  %4773 = vmatprep.subr.bf16.mxu0 %v6010_v29  ;;  %v3474_v42 = vmul.f32 %v3452_v18, %v3437_v35  ;;  %10562 = vst [vmem:[#allocation56_spill] sm:$0xff] %v8718_v19  ;;  %v4210_v35 = vrot.slane %v8718_v19, %v7040_v27 }
 0x6b7   :  { %v8706_v37 = vpop.permute.xlu0 %3409 }
 0x6b8   :  { %10561 = vst [vmem:[#allocation55_spill] sm:$0xff] %v8706_v37  ;;  %v3438_v39 = vsel %vm817_vm2, %v3402_v23, %v8706_v37  ;;  %v4166_v33 = vpop.permute.xlu1 %4165 }
 0x6b9   :  { %v3478_v56 = vmul.f32 %v3452_v18, %v3438_v39  ;;  %3753 = vrot.lane.b32.xlu0 %v8229_v57, %s6351_s24  ;;  %4774 = vmatpush1.bf16.msra.mxu0 %v6009_v55  ;;  %v3436_v39 = vsel %vm817_vm2, %v8429_v28, %v8437_v12 }
 0x6ba   :  { %4181 = vrot.lane.b32.xlu1 %v8235_v41, %s6346_s19 }
 0x6bb   :  { %v4168_v7 = vpop.permute.xlu0 %4167  ;;  %v6006_v11 = vpack.c.bf16 %v3478_v56, %v3474_v42 }
 0x6bc   :  { %v8720_v29 = vpop.permute.xlu1 %4173 }
 0x6bd   :  { %10563 = vst [vmem:[#allocation57_spill] sm:$0xff] %v8720_v29  ;;  %4183 = vrot.lane.b32.xlu0 %v8237_v61, %s6346_s19  ;;  %4775 = vmatprep.subr.bf16.mxu0 %v6006_v11  ;;  %v4191_v44 = vsel %vm1593_vm3, %v4166_v33, %v8720_v29  ;;  %v3435_v11 = vsel %vm817_vm2, %v8423_v50, %v8431_v62 }
 0x6be   :  { %4177 = vrot.lane.b32.xlu1 %v8223_v5, %s6346_s19  ;;  %v4232_v61 = vmul.f32 %v4210_v35, %v4191_v44  ;;  %v3470_v29 = vmul.f32 %v3452_v18, %v3436_v39 }
 0x6bf   :  { %v8731_v55 = vpop.permute.xlu0 %4175 }
 0x6c0   :  { %10564 = vst [vmem:[#allocation58_spill] sm:$0xff] %v8731_v55  ;;  %v4192_v42 = vsel %vm1593_vm3, %v4168_v7, %v8731_v55  ;;  %v8740_v56 = vpop.permute.xlu1 %3423  ;;  %v6312_v55 = vld [vmem:[%s10233_s5] sm:$0xff] }
 0x6c1   :  { %v4236_v41 = vmul.f32 %v4210_v35, %v4192_v42  ;;  %4179 = vrot.lane.b32.xlu0 %v8229_v57, %s6346_s19  ;;  %v3441_v5 = vsel %vm817_vm2, %v8740_v56, %v3400_v52  ;;  %v3466_v42 = vmul.f32 %v3452_v18, %v3435_v11  ;;  %v3440_v57 = vsel %vm817_vm2, %v8461_v46, %v8429_v28 }
 0x6c2   :  { %2710 = vperm.xlu1 %6098, %v6312_v55   ;;  %v4190_v55 = vsel %vm1593_vm3, %v8445_v13, %v8453_v8  ;;  %v3473_v39 = vmul.f32 %v3448_v17, %v3441_v5  ;;  %v4206_v28 = vrot.slane %v8718_v19, %v7060_v59  ;;  %v6314_v5 = vld [vmem:[%s10233_s5 + $0x10] sm:$0xff]  ;;  %v4189_v18 = vsel %vm1593_vm3, %v8439_v26, %v8447_v36 }
 0x6c3   :  { %v8756_v37 = vpop.permute.xlu0 %3425  ;;  %v6054_v44 = vpack.c.bf16 %v4236_v41, %v4232_v61  ;;  %v6313_v41 = vld [vmem:[%s10233_s5 + $0x8] sm:$0xff]  ;;  %v3439_v61 = vsel %vm817_vm2, %v8455_v9, %v8423_v50  ;;  %v3469_v11 = vmul.f32 %v3448_v17, %v3440_v57  ;;  %v6356_v57 = vmov 10  }
 0x6c4   :  { %v3442_v52 = vsel %vm817_vm2, %v8756_v37, %v3402_v23  ;;  %v8765_v62 = vpop.permute.xlu1 %4157 }
 0x6c5   :  { %10565 = vst [vmem:[#allocation59_spill] sm:$0xff] %v8765_v62  ;;  %v3477_v12 = vmul.f32 %v3448_v17, %v3442_v52  ;;  %2714 = vperm.xlu0 %6099, %v6313_v41   ;;  %4836 = vmatprep.subr.bf16.mxu1 %v6054_v44  ;;  %v4195_v23 = vsel %vm1593_vm3, %v8765_v62, %v4166_v33 }
 0x6c6   :  { %2718 = vperm.xlu1 %6098, %v6314_v5   ;;  %v6002_v52 = vpack.c.bf16 %v3470_v29, %v3466_v42  ;;  %v4228_v41 = vmul.f32 %v4210_v35, %v4190_v55  ;;  %v4194_v33 = vsel %vm1593_vm3, %v8469_v21, %v8445_v13  ;;  %v3465_v62 = vmul.f32 %v3448_v17, %v3439_v61  ;;  %v6315_v13 = vld [vmem:[%s10233_s5 + $0x18] sm:$0xff] }
 0x6c7   :  { %v6005_v44 = vpack.c.bf16 %v3477_v12, %v3473_v39  ;;  %v8790_v50 = vpop.permute.xlu0 %4159  ;;  %v4231_v19 = vmul.f32 %v4206_v28, %v4195_v23  ;;  %v4224_v12 = vmul.f32 %v4210_v35, %v4189_v18  ;;  %v4193_v29 = vsel %vm1593_vm3, %v8463_v54, %v8439_v26  ;;  %v8813_v35 = vld [vmem:[%s10233_s5 + $0x8] sm:$0xff] }
 0x6c8   :  { %v4196_v5 = vsel %vm1593_vm3, %v8790_v50, %v4168_v7  ;;  %v8799_v8 = vpop.permute.xlu1 %3257  ;;  %v6001_v7 = vpack.c.bf16 %v3469_v11, %v3465_v62  ;;  %v4227_v42 = vmul.f32 %v4206_v28, %v4194_v33  ;;  %v8819_v26 = vld [vmem:[%s10235_s4 + $0x1] ss:$8 sm:$0xf]  ;;  %v4223_v62 = vmul.f32 %v4206_v28, %v4193_v29 }
 0x6c9   :  { %v4235_v36 = vmul.f32 %v4206_v28, %v4196_v5  ;;  %4776 = vmatpush1.bf16.msra.mxu0 %v6005_v44  ;;  %6101 = vset.pattern.permute.xlu0 %v6356_v57  ;;  %v6050_v61 = vpack.c.bf16 %v4228_v41, %v4224_v12  ;;  %v3310_v23 = vrot.slane %v8819_v26, %v7040_v27  ;;  %v8834_v11 = vld [vmem:[%s10233_s5] sm:$0xff]  ;;  %v8840_v28 = vld [vmem:[%s10233_s5 + $0x8] sm:$0xff]  ;;  %v10369_v44 = vmov 11  }
 0x6ca   :  { %2722 = vperm.xlu1 %6098, %v6315_v13   ;;  %4777 = vmatprep.subr.bf16.mxu0 %v6002_v52  ;;  %v3570_v52 = vsel %vm961_vm1, %v8493_v25, %v8421_v60  ;;  %v8854_v5 = vld [vmem:[%s10234_s3 + $0x38] ss:$12 sps:$4 sm:$0xff]   ;;  %v3294_v13 = vsel %vm673_vm4, %v8477_v34, %v8485_v20 }
 0x6cb   :  { %v6053_v17 = vpack.c.bf16 %v4235_v36, %v4231_v19  ;;  %v8808_v55 = vpop.permute.xlu0 %3259  ;;  %2956 = vperm.xlu0 %6101, %v8813_v35   ;;  %v6049_v19 = vpack.c.bf16 %v4227_v42, %v4223_v62  ;;  %10566 = vst [vmem:[#allocation60_spill] sm:$0xff] %v8854_v5  ;;  %v3569_v42 = vsel %vm961_vm1, %v8487_v1, %v8415_v48 }
 0x6cc   :  { %v8821_v39 = vpop.permute.xlu1 %3265 }
 0x6cd   :  { %4778 = vmatpush1.bf16.msra.mxu0 %v6001_v7  ;;  %4837 = vmatpush1.bf16.msra.mxu1 %v6053_v17  ;;  %v3295_v36 = vsel %vm673_vm4, %v8799_v8, %v8821_v39  ;;  %v3598_v7 = vrot.slane %v8630_v63, %v7237_v45 }
 0x6ce   :  { %4838 = vmatprep.subr.bf16.mxu1 %v6050_v61  ;;  %6100 = vset.pattern.permute.xlu1 %v6356_v57  ;;  %v3602_v57 = vrot.slane %v8630_v63, %v7240_v14  ;;  %v3332_v12 = vmul.f32 %v3310_v23, %v3295_v36  ;;  %v8882_v63 = vld [vmem:[%s10233_s5 + $0x10] sm:$0xff] }
 0x6cf   :  { %v8829_v18 = vpop.permute.xlu0 %3267  ;;  %2952 = vperm.xlu1 %6100, %v8834_v11   ;;  %6104 = vset.pattern.permute.xlu0 %v10369_v44  ;;  %v6359_v44 = vmov 14  }
 0x6d0   :  { %v3296_v41 = vsel %vm673_vm4, %v8808_v55, %v8829_v18  ;;  %v3558_v33 = vpop.permute.xlu1 %3557  ;;  %5098 = vperm.xlu0 %6104, %v8840_v28   ;;  %v3614_v61 = vmul.f32 %v3602_v57, %v3570_v52 }
 0x6d1   :  { %v3336_v29 = vmul.f32 %v3310_v23, %v3296_v41  ;;  %v3575_v60 = vsel %vm961_vm1, %v8632_v15, %v3558_v33  ;;  %4839 = vmatpush1.bf16.msra.mxu1 %v6049_v19  ;;  %v3571_v17 = vsel %vm961_vm1, %v3558_v33, %v8648_v43  ;;  %v3574_v15 = vsel %vm961_vm1, %v8413_v2, %v8493_v25 }
 0x6d2   :  { %v3617_v48 = vmul.f32 %v3598_v7, %v3575_v60  ;;  %v10368_v25 = vmov 2   ;;  %v3618_v52 = vmul.f32 %v3602_v57, %v3571_v17  ;;  %v3573_v60 = vsel %vm961_vm1, %v8407_v53, %v8487_v1 }
 0x6d3   :  { %v3560_v62 = vpop.permute.xlu0 %3559  ;;  %v5998_v36 = vpack.c.bf16 %v3336_v29, %v3332_v12  ;;  %2960 = vperm.xlu1 %6100, %v8882_v63   ;;  %v3306_v12 = vrot.slane %v8819_v26, %v7060_v59  ;;  %v3610_v17 = vmul.f32 %v3602_v57, %v3569_v42 }
 0x6d4   :  { %v3572_v43 = vsel %vm961_vm1, %v3560_v62, %v8667_v58  ;;  %v3576_v19 = vsel %vm961_vm1, %v8643_v38, %v3560_v62  ;;  %v8891_v2 = vpop.permute.xlu1 %3281  ;;  %5765 = vmatmul.mubr.msk.bf16.vlgmr.msra.gmra.mxu1 %vm102_vm0, %v8854_v5  ;;  %6107 = vset.pattern.permute.xlu0 %v10368_v25  ;;  %v3293_v58 = vsel %vm673_vm4, %v8471_v6, %v8479_v4 }
 0x6d5   :  { %v3621_v41 = vmul.f32 %v3598_v7, %v3576_v19  ;;  %v3622_v33 = vmul.f32 %v3602_v57, %v3572_v43  ;;  %4779 = vmatprep.subr.bf16.mxu0 %v5998_v36  ;;  %4866 = vmatprep.mubr.bf16.mxu1 %v10455_v32  ;;  %v3328_v38 = vmul.f32 %v3310_v23, %v3294_v13  ;;  %v8916_v13 = vld [vmem:[%s10233_s5 + $0x18] sm:$0xff] }
 0x6d6   :  { %v3299_v29 = vsel %vm673_vm4, %v8891_v2, %v8799_v8  ;;  %v3613_v19 = vmul.f32 %v3598_v7, %v3574_v15  ;;  %v3298_v8 = vsel %vm673_vm4, %v8501_v16, %v8477_v34  ;;  %v8932_v57 = vld [vmem:[%s10234_s3 + $0x50] ss:$12 sps:$4 sm:$0xff]   ;;  %v6012_v15 = vpack.c.bf16 %v3614_v61, %v3610_v17 }
 0x6d7   :  { %v6015_v62 = vpack.c.bf16 %v3621_v41, %v3617_v48  ;;  %v8911_v36 = vpop.permute.xlu0 %3283  ;;  %v6016_v43 = vpack.c.bf16 %v3622_v33, %v3618_v52  ;;  %2964 = vperm.xlu1 %6100, %v8916_v13   ;;  %v3331_v42 = vmul.f32 %v3306_v12, %v3299_v29  ;;  %v3324_v52 = vmul.f32 %v3310_v23, %v3293_v58  ;;  %v8941_v29 = vld [vmem:[%s10235_s4] ss:$8 sm:$0xf] }
 0x6d8   :  { %v3300_v53 = vsel %vm673_vm4, %v8911_v36, %v8808_v55  ;;  %v8927_v1 = vpop.permute.xlu1 %3115  ;;  %v3609_v41 = vmul.f32 %v3598_v7, %v3573_v60  ;;  %v3297_v34 = vsel %vm673_vm4, %v8495_v24, %v8471_v6  ;;  %v3327_v55 = vmul.f32 %v3306_v12, %v3298_v8 }
 0x6d9   :  { %v3335_v48 = vmul.f32 %v3306_v12, %v3300_v53  ;;  %4877 = vmatprep.subr.bf16.mxu1 %v6016_v43  ;;  %v5994_v7 = vpack.c.bf16 %v3328_v38, %v3324_v52  ;;  %v3323_v6 = vmul.f32 %v3306_v12, %v3297_v34  ;;  %v3168_v58 = vrot.slane %v8941_v29, %v7040_v27  ;;  %v10568_v52 = vld [vmem:[#allocation46_spill] sm:$0xff] }
 0x6da   :  { %4878 = vmatpush1.bf16.msra.mxu1 %v6015_v62  ;;  %v6011_v5 = vpack.c.bf16 %v3613_v19, %v3609_v41  ;;  %v3460_v12 = vrot.slane %v8693_v22, %v7240_v14  ;;  %v3428_v17 = vsel %vm817_vm2, %v8525_v31, %v8461_v46  ;;  %v8973_v62 = vrot.slane %v8819_v26, %v7237_v45 }
 0x6db   :  { %v5997_v33 = vpack.c.bf16 %v3335_v48, %v3331_v42  ;;  %v3118_v25 = vpop.permute.xlu0 %3117  ;;  %4879 = vmatprep.subr.bf16.mxu1 %v6012_v15  ;;  %6102 = vset.pattern.permute.xlu1 %v6359_v44  ;;  %v5993_v61 = vpack.c.bf16 %v3327_v55, %v3323_v6  ;;  %v3151_v19 = vsel %vm530_vm5, %v8503_v10, %v8511_v47  ;;  %v10569_v55 = vld [vmem:[#allocation55_spill] sm:$0xff] }
 0x6dc   :  { %v8943_v23 = vpop.permute.xlu1 %3123  ;;  %2984 = vperm.xlu1 %6102, %v8834_v11   ;;  %5766 = vmatmul.mubr.msk.bf16.gmra.mxu1 %vm102_vm0, %v8932_v57  ;;  %v3456_v11 = vrot.slane %v8693_v22, %v7237_v45  ;;  %v3152_v53 = vsel %vm530_vm5, %v8509_v30, %v8517_v40  ;;  %v3427_v42 = vsel %vm817_vm2, %v8519_v0, %v8455_v9 }
 0x6dd   :  { %4780 = vmatpush1.bf16.msra.mxu0 %v5997_v33  ;;  %4909 = vmatprep.mubr.bf16.mxu1 %v8672_v3  ;;  %v3153_v44 = vsel %vm530_vm5, %v8927_v1, %v8943_v23  ;;  %v3164_v3 = vrot.slane %v8941_v29, %v7060_v59  ;;  %v3472_v41 = vmul.f32 %v3460_v12, %v3428_v17  ;;  %v10570_v17 = vld [vmem:[#allocation43_spill] sm:$0xff] }
 0x6de   :  { %4781 = vmatprep.subr.bf16.mxu0 %v5994_v7  ;;  %4880 = vmatpush1.bf16.msra.mxu1 %v6011_v5  ;;  %v3190_v22 = vmul.f32 %v3168_v58, %v3153_v44 }
 0x6df   :  { %v8955_v38 = vpop.permute.xlu0 %3125 }
 0x6e0   :  { %v3154_v60 = vsel %vm530_vm5, %v3118_v25, %v8955_v38  ;;  %v3416_v5 = vpop.permute.xlu1 %3415  ;;  %2988 = vperm.xlu1 %6102, %v8813_v35   ;;  %v8981_v35 = vrot.slane %v8819_v26, %v7240_v14  ;;  %v10567_v26 = vld [vmem:[#allocation44_spill] sm:$0xff] }
 0x6e1   :  { %v3194_v43 = vmul.f32 %v3168_v58, %v3154_v60  ;;  %4782 = vmatpush1.bf16.msra.mxu0 %v5993_v61  ;;  %v3429_v46 = vsel %vm817_vm2, %v3416_v5, %v8740_v56  ;;  %v3433_v8 = vsel %vm817_vm2, %v8695_v49, %v3416_v5  ;;  %v3432_v48 = vsel %vm817_vm2, %v10567_v26, %v8525_v31 }
 0x6e2   :  { %v3431_v49 = vsel %vm817_vm2, %v10568_v52, %v8519_v0  ;;  %v3475_v31 = vmul.f32 %v3456_v11, %v3433_v8  ;;  %v3476_v7 = vmul.f32 %v3460_v12, %v3429_v46  ;;  %v3186_v61 = vmul.f32 %v3168_v58, %v3152_v53  ;;  %v10571_v53 = vld [vmem:[#allocation11_spill] sm:$0xff] }
 0x6e3   :  { %v3418_v56 = vpop.permute.xlu0 %3417  ;;  %v5990_v15 = vpack.c.bf16 %v3194_v43, %v3190_v22  ;;  %v3468_v0 = vmul.f32 %v3460_v12, %v3427_v42  ;;  %v3471_v60 = vmul.f32 %v3456_v11, %v3432_v48  ;;  %v3182_v5 = vmul.f32 %v3168_v58, %v3151_v19  ;;  %v10573_v52 = vld [vmem:[#allocation15_spill] sm:$0xff] }
 0x6e4   :  { %v3430_v34 = vsel %vm817_vm2, %v3418_v56, %v8756_v37  ;;  %v3434_v9 = vsel %vm817_vm2, %v10569_v55, %v3418_v56  ;;  %v9011_v33 = vpop.permute.xlu1 %3139  ;;  %2992 = vperm.xlu1 %6102, %v8882_v63   ;;  %v3155_v22 = vsel %vm530_vm5, %v10570_v17, %v8503_v10  ;;  %v3467_v8 = vmul.f32 %v3456_v11, %v3431_v49  ;;  %v10572_v10 = vld [vmem:[#allocation13_spill] sm:$0xff] }
 0x6e5   :  { %v3479_v6 = vmul.f32 %v3456_v11, %v3434_v9  ;;  %v3480_v44 = vmul.f32 %v3460_v12, %v3430_v34  ;;  %4783 = vmatprep.subr.bf16.mxu0 %v5990_v15  ;;  %v3157_v37 = vsel %vm530_vm5, %v9011_v33, %v8927_v1  ;;  %v3156_v12 = vsel %vm530_vm5, %v10571_v53, %v8509_v30  ;;  %v9045_v15 = vld [vmem:[%s10233_s5] sm:$0xff] }
 0x6e6   :  { %v6004_v19 = vpack.c.bf16 %v3472_v41, %v3468_v0  ;;  %v3286_v42 = vsel %vm673_vm4, %v10572_v10, %v8501_v16  ;;  %v3189_v26 = vmul.f32 %v3164_v3, %v3157_v37  ;;  %v6003_v30 = vpack.c.bf16 %v3471_v60, %v3467_v8  ;;  %v9076_v37 = vld [vmem:[%s10233_s5 + $0x10] sm:$0xff] }
 0x6e7   :  { %v6007_v63 = vpack.c.bf16 %v3479_v6, %v3475_v31  ;;  %v9022_v43 = vpop.permute.xlu0 %3141  ;;  %v6008_v46 = vpack.c.bf16 %v3480_v44, %v3476_v7  ;;  %v3181_v56 = vmul.f32 %v3164_v3, %v3155_v22  ;;  %v3185_v16 = vmul.f32 %v3164_v3, %v3156_v12  ;;  %v9082_v22 = vld [vmem:[%s10235_s4 + $0x7] ss:$8 sm:$0xf] }
 0x6e8   :  { %v3158_v1 = vsel %vm530_vm5, %v9022_v43, %v3118_v25  ;;  %v3274_v58 = vpop.permute.xlu1 %3273  ;;  %2996 = vperm.xlu1 %6102, %v8916_v13   ;;  %v5986_v13 = vpack.c.bf16 %v3186_v61, %v3182_v5  ;;  %v3290_v49 = vsel %vm673_vm4, %v8485_v20, %v10572_v10  ;;  %v3330_v34 = vmul.f32 %v8981_v35, %v3286_v42 }
 0x6e9   :  { %v3193_v11 = vmul.f32 %v3164_v3, %v3158_v1  ;;  %v3291_v48 = vsel %vm673_vm4, %v8821_v39, %v3274_v58  ;;  %4881 = vmatprep.subr.bf16.mxu1 %v6008_v46  ;;  %v3287_v25 = vsel %vm673_vm4, %v3274_v58, %v8891_v2  ;;  %v3285_v39 = vsel %vm673_vm4, %v10573_v52, %v8495_v24  ;;  %v9098_v1 = vld [vmem:[%s10233_s5 + $0x18] sm:$0xff] }
 0x6ea   :  { %4882 = vmatpush1.bf16.msra.mxu1 %v6007_v63  ;;  %v3333_v55 = vmul.f32 %v8973_v62, %v3291_v48  ;;  %v10574_v31 = vmov 11   ;;  %v3334_v20 = vmul.f32 %v8981_v35, %v3287_v25  ;;  %v3326_v44 = vmul.f32 %v8981_v35, %v3285_v39  ;;  %v10579_v39 = vld [vmem:[#allocation5_spill] sm:$0xff] }
 0x6eb   :  { %v5989_v41 = vpack.c.bf16 %v3193_v11, %v3189_v26  ;;  %v3276_v2 = vpop.permute.xlu0 %3275  ;;  %4883 = vmatprep.subr.bf16.mxu1 %v6004_v19  ;;  %v3329_v5 = vmul.f32 %v8973_v62, %v3290_v49  ;;  %v4068_v8 = vrot.slane %v9082_v22, %v7040_v27  ;;  %v10576_v19 = vld [vmem:[#allocation4_spill] sm:$0xff] }
 0x6ec   :  { %v3288_v3 = vsel %vm673_vm4, %v3276_v2, %v8911_v36  ;;  %v3292_v24 = vsel %vm673_vm4, %v8829_v18, %v3276_v2  ;;  %v4024_v9 = vpop.permute.xlu1 %4023  ;;  %6103 = vset.pattern.permute.xlu1 %v10574_v31  ;;  %v3289_v36 = vsel %vm673_vm4, %v8479_v4, %v10573_v52  ;;  %v5985_v18 = vpack.c.bf16 %v3185_v16, %v3181_v56  ;;  %v10578_v56 = vld [vmem:[#allocation14_spill] sm:$0xff] }
 0x6ed   :  { %v3337_v7 = vmul.f32 %v8973_v62, %v3292_v24  ;;  %v3338_v6 = vmul.f32 %v8981_v35, %v3288_v3  ;;  %4784 = vmatpush1.bf16.msra.mxu0 %v5989_v41  ;;  %5093 = vperm.xlu1 %6103, %v9045_v15   ;;  %v5996_v35 = vpack.c.bf16 %v3330_v34, %v3326_v44  ;;  %v10580_v34 = vld [vmem:[#allocation52_spill] sm:$0xff] }
 0x6ee   :  { %4785 = vmatprep.subr.bf16.mxu0 %v5986_v13  ;;  %4884 = vmatpush1.bf16.msra.mxu1 %v6003_v30  ;;  %v3325_v63 = vmul.f32 %v8973_v62, %v3289_v36  ;;  %v10575_v62 = vld [vmem:[#allocation3_spill] sm:$0xff]  ;;  %v4064_v13 = vrot.slane %v9082_v22, %v7060_v59  ;;  %v4051_v49 = vsel %vm1449_vm6, %v10579_v39, %v10578_v56 }
 0x6ef   :  { %v5999_v61 = vpack.c.bf16 %v3337_v7, %v3333_v55  ;;  %v4026_v0 = vpop.permute.xlu0 %4025  ;;  %v6000_v60 = vpack.c.bf16 %v3338_v6, %v3334_v20  ;;  %v4048_v10 = vsel %vm1449_vm6, %v10576_v19, %v10575_v62  ;;  %v10577_v30 = vld [vmem:[#allocation7_spill] sm:$0xff]  ;;  %v4052_v55 = vsel %vm1449_vm6, %v10580_v34, %v10576_v19 }
 0x6f0   :  { %v9084_v4 = vpop.permute.xlu1 %4031  ;;  %v5995_v58 = vpack.c.bf16 %v3329_v5, %v3325_v63  ;;  %v4047_v25 = vsel %vm1449_vm6, %v10578_v56, %v10577_v30  ;;  %v4086_v52 = vmul.f32 %v4068_v8, %v4048_v10  ;;  %v3172_v3 = vrot.slane %v8941_v29, %v7237_v45  ;;  %v10581_v20 = vld [vmem:[#allocation51_spill] sm:$0xff] }
 0x6f1   :  { %4786 = vmatpush1.bf16.msra.mxu0 %v5985_v18  ;;  %4885 = vmatprep.subr.bf16.mxu1 %v6000_v60  ;;  %v4049_v46 = vsel %vm1449_vm6, %v4024_v9, %v9084_v4  ;;  %v4082_v31 = vmul.f32 %v4068_v8, %v4047_v25  ;;  %v3144_v7 = vsel %vm530_vm5, %v10581_v20, %v10571_v53  ;;  %v6360_v60 = vmov 15   ;;  %v10582_v53 = vld [vmem:[#allocation49_spill] sm:$0xff] }
 0x6f2   :  { %4886 = vmatpush1.bf16.msra.mxu1 %v5999_v61  ;;  %5103 = vperm.xlu1 %6103, %v9076_v37   ;;  %v4090_v11 = vmul.f32 %v4068_v8, %v4049_v46  ;;  %v4081_v18 = vmul.f32 %v4064_v13, %v4051_v49  ;;  %v3176_v44 = vrot.slane %v8941_v29, %v7240_v14 }
 0x6f3   :  { %v9093_v12 = vpop.permute.xlu0 %4033  ;;  %4887 = vmatprep.subr.bf16.mxu1 %v5996_v35  ;;  %v4085_v5 = vmul.f32 %v4064_v13, %v4052_v55  ;;  %v3143_v35 = vsel %vm530_vm5, %v10582_v53, %v10570_v17  ;;  %v3148_v29 = vsel %vm530_vm5, %v8517_v40, %v10581_v20  ;;  %v3147_v40 = vsel %vm530_vm5, %v8511_v47, %v10582_v53  ;;  %v10587_v53 = vld [vmem:[#allocation22_spill] sm:$0xff] }
 0x6f4   :  { %v4050_v42 = vsel %vm1449_vm6, %v4026_v0, %v9093_v12  ;;  %v9107_v26 = vpop.permute.xlu1 %4015  ;;  %v3183_v47 = vmul.f32 %v3172_v3, %v3147_v40 }
 0x6f5   :  { %v4094_v48 = vmul.f32 %v4068_v8, %v4050_v42  ;;  %v4053_v16 = vsel %vm1449_vm6, %v9107_v26, %v4024_v9  ;;  %v6042_v8 = vpack.c.bf16 %v4086_v52, %v4082_v31  ;;  %v10584_v31 = vld [vmem:[#allocation20_spill] sm:$0xff] }
 0x6f6   :  { %4888 = vmatpush1.bf16.msra.mxu1 %v5995_v58  ;;  %5108 = vperm.xlu1 %6103, %v9098_v1   ;;  %v4089_v6 = vmul.f32 %v4064_v13, %v4053_v16 }
 0x6f7   :  { %v9123_v41 = vpop.permute.xlu0 %4017  ;;  %v6046_v2 = vpack.c.bf16 %v4094_v48, %v4090_v11  ;;  %v3184_v48 = vmul.f32 %v3176_v44, %v3143_v35  ;;  %v3910_v35 = vsel %vm1305_vm7, %v10587_v53, %v10584_v31 }
 0x6f8   :  { %v4054_v24 = vsel %vm1449_vm6, %v9123_v41, %v4026_v0  ;;  %v3132_v9 = vpop.permute.xlu1 %3131 }
 0x6f9   :  { %v4093_v36 = vmul.f32 %v4064_v13, %v4054_v24  ;;  %4787 = vmatprep.subr.bf16.mxu0 %v6046_v2  ;;  %v3145_v61 = vsel %vm530_vm5, %v3132_v9, %v9011_v33  ;;  %v3149_v0 = vsel %vm530_vm5, %v8943_v23, %v3132_v9  ;;  %v3188_v33 = vmul.f32 %v3176_v44, %v3144_v7  ;;  %v9169_v13 = vld [vmem:[%s10235_s4 + $0x6] ss:$8 sm:$0xf] }
 0x6fa   :  { %6105 = vset.pattern.permute.xlu1 %v6360_v60  ;;  %v3191_v19 = vmul.f32 %v3172_v3, %v3149_v0  ;;  %v3192_v10 = vmul.f32 %v3176_v44, %v3145_v61  ;;  %v3922_v61 = vrot.slane %v9169_v13, %v7060_v59 }
 0x6fb   :  { %v6045_v63 = vpack.c.bf16 %v4093_v36, %v4089_v6  ;;  %v3134_v46 = vpop.permute.xlu0 %3133  ;;  %5128 = vperm.xlu1 %6105, %v9045_v15   ;;  %v6041_v15 = vpack.c.bf16 %v4085_v5, %v4081_v18  ;;  %v5988_v52 = vpack.c.bf16 %v3188_v33, %v3184_v48  ;;  %v10586_v18 = vld [vmem:[#allocation53_spill] sm:$0xff] }
 0x6fc   :  { %v3146_v23 = vsel %vm530_vm5, %v3134_v46, %v9022_v43  ;;  %v3150_v58 = vsel %vm530_vm5, %v8955_v38, %v3134_v46  ;;  %v3882_v17 = vpop.permute.xlu1 %3881  ;;  %v3187_v38 = vmul.f32 %v3172_v3, %v3148_v29 }
 0x6fd   :  { %v3195_v42 = vmul.f32 %v3172_v3, %v3150_v58  ;;  %v3196_v11 = vmul.f32 %v3176_v44, %v3146_v23  ;;  %4788 = vmatpush2.bf16.msra.mxu0 %v6045_v63  ;;  %v10583_v3 = vld [vmem:[#allocation16_spill] sm:$0xff]  ;;  %v10588_v23 = vld [vmem:[#allocation18_spill] sm:$0xff]  ;;  %v3943_v58 = vmul.f32 %v3922_v61, %v3910_v35 }
 0x6fe   :  { %4789 = vmatprep.subr.bf16.mxu0 %v6042_v8  ;;  %v5987_v55 = vpack.c.bf16 %v3187_v38, %v3183_v47  ;;  %v3906_v20 = vsel %vm1305_vm7, %v10584_v31, %v10583_v3  ;;  %v10590_v47 = vld [vmem:[#allocation10_spill] sm:$0xff] }
 0x6ff   :  { %v5991_v56 = vpack.c.bf16 %v3195_v42, %v3191_v19  ;;  %v3884_v43 = vpop.permute.xlu0 %3883  ;;  %v5992_v25 = vpack.c.bf16 %v3196_v11, %v3192_v10  ;;  %5132 = vperm.xlu1 %6105, %v8840_v28   ;;  %v3926_v28 = vrot.slane %v9169_v13, %v7040_v27  ;;  %v10589_v10 = vmov 2   ;;  %v9217_v42 = vld [vmem:[%s10235_s4 + $0x5] ss:$8 sm:$0xf] }
 0x700   :  { %v9171_v16 = vpop.permute.xlu1 %3889 }
 0x701   :  { %4790 = vmatpush2.bf16.msra.mxu0 %v6041_v15  ;;  %4889 = vmatprep.subr.bf16.mxu1 %v5992_v25  ;;  %v3907_v49 = vsel %vm1305_vm7, %v3882_v17, %v9171_v16  ;;  %v3944_v5 = vmul.f32 %v3926_v28, %v3906_v20 }
 0x702   :  { %4890 = vmatpush1.bf16.msra.mxu1 %v5991_v56  ;;  %v3948_v7 = vmul.f32 %v3926_v28, %v3907_v49  ;;  %v4056_v49 = vsel %vm1449_vm6, %v10590_v47, %v10580_v34 }
 0x703   :  { %v9178_v2 = vpop.permute.xlu0 %3891  ;;  %4891 = vmatprep.subr.bf16.mxu1 %v5988_v52  ;;  %5136 = vperm.xlu1 %6105, %v9076_v37   ;;  %v10585_v37 = vld [vmem:[#allocation12_spill] sm:$0xff] }
 0x704   :  { %v3908_v24 = vsel %vm1305_vm7, %v3884_v43, %v9178_v2  ;;  %v9184_v9 = vpop.permute.xlu1 %3873  ;;  %v3905_v44 = vsel %vm1305_vm7, %v10586_v18, %v10585_v37 }
 0x705   :  { %v3952_v6 = vmul.f32 %v3926_v28, %v3908_v24  ;;  %v3911_v36 = vsel %vm1305_vm7, %v9184_v9, %v3882_v17  ;;  %v3940_v33 = vmul.f32 %v3926_v28, %v3905_v44  ;;  %v4072_v24 = vrot.slane %v9082_v22, %v7237_v45 }
 0x706   :  { %4892 = vmatpush1.bf16.msra.mxu1 %v5987_v55  ;;  %v3947_v8 = vmul.f32 %v3922_v61, %v3911_v36  ;;  %v10593_v36 = vld [vmem:[#allocation9_spill] sm:$0xff] }
 0x707   :  { %v9199_v0 = vpop.permute.xlu0 %3875  ;;  %v6038_v60 = vpack.c.bf16 %v3952_v6, %v3948_v7  ;;  %5140 = vperm.xlu1 %6105, %v9098_v1   ;;  %v3909_v1 = vsel %vm1305_vm7, %v10588_v23, %v10586_v18  ;;  %v6034_v40 = vpack.c.bf16 %v3944_v5, %v3940_v33  ;;  %v10591_v7 = vld [vmem:[#allocation8_spill] sm:$0xff]  ;;  %v10592_v6 = vld [vmem:[#allocation23_spill] sm:$0xff]  ;;  %v4055_v18 = vsel %vm1449_vm6, %v10593_v36, %v10579_v39  ;;  %v10595_v33 = vld [vmem:[#allocation21_spill] sm:$0xff] }
 0x708   :  { %v3912_v63 = vsel %vm1305_vm7, %v9199_v0, %v3884_v43  ;;  %v3740_v46 = vpop.permute.xlu1 %3739  ;;  %v3939_v15 = vmul.f32 %v3922_v61, %v3909_v1  ;;  %v3784_v43 = vrot.slane %v9217_v42, %v7040_v27  ;;  %v4076_v27 = vrot.slane %v9082_v22, %v7240_v14 }
 0x709   :  { %v3951_v29 = vmul.f32 %v3922_v61, %v3912_v63  ;;  %4791 = vmatprep.subr.bf16.mxu0 %v6038_v60  ;;  %v3764_v34 = vsel %vm1161_vm8, %v10592_v6, %v10591_v7  ;;  %v3780_v22 = vrot.slane %v9217_v42, %v7060_v59 }
 0x70a   :  { %v6033_v56 = vpack.c.bf16 %v3943_v58, %v3939_v15  ;;  %v4084_v1 = vmul.f32 %v4076_v27, %v4055_v18 }
 0x70b   :  { %v6037_v17 = vpack.c.bf16 %v3951_v29, %v3947_v8  ;;  %v3742_v19 = vpop.permute.xlu0 %3741  ;;  %6106 = vset.pattern.permute.xlu1 %v10589_v10  ;;  %v10594_v29 = vld [vmem:[#allocation6_spill] sm:$0xff] }
 0x70c   :  { %v9219_v11 = vpop.permute.xlu1 %3747 }
 0x70d   :  { %4792 = vmatpush2.bf16.msra.mxu0 %v6037_v17  ;;  %v3765_v48 = vsel %vm1161_vm8, %v3740_v46, %v9219_v11 }
 0x70e   :  { %4793 = vmatprep.subr.bf16.mxu0 %v6034_v40  ;;  %v3806_v28 = vmul.f32 %v3784_v43, %v3765_v48  ;;  %v3802_v40 = vmul.f32 %v3784_v43, %v3764_v34 }
 0x70f   :  { %v9226_v25 = vpop.permute.xlu0 %3749 }
 0x710   :  { %v3766_v38 = vsel %vm1161_vm8, %v3742_v19, %v9226_v25  ;;  %v4040_v52 = vpop.permute.xlu1 %4039 }
 0x711   :  { %v3810_v55 = vmul.f32 %v3784_v43, %v3766_v38  ;;  %4794 = vmatpush2.bf16.msra.mxu0 %v6033_v56  ;;  %v4045_v31 = vsel %vm1449_vm6, %v9084_v4, %v4040_v52  ;;  %v4057_v20 = vsel %vm1449_vm6, %v4040_v52, %v9107_v26  ;;  %v4044_v4 = vsel %vm1449_vm6, %v10575_v62, %v10590_v47 }
 0x712   :  { %v4088_v26 = vmul.f32 %v4076_v27, %v4056_v49  ;;  %v4091_v35 = vmul.f32 %v4072_v24, %v4045_v31  ;;  %v4092_v63 = vmul.f32 %v4076_v27, %v4057_v20  ;;  %v3763_v62 = vsel %vm1161_vm8, %v10595_v33, %v10594_v29 }
 0x713   :  { %v4042_v44 = vpop.permute.xlu0 %4041  ;;  %v6030_v61 = vpack.c.bf16 %v3810_v55, %v3806_v28  ;;  %v4087_v15 = vmul.f32 %v4072_v24, %v4044_v4  ;;  %v3798_v47 = vmul.f32 %v3784_v43, %v3763_v62  ;;  %v3930_v43 = vrot.slane %v9169_v13, %v7237_v45 }
 0x714   :  { %v4046_v60 = vsel %vm1449_vm6, %v9093_v12, %v4042_v44  ;;  %v4058_v5 = vsel %vm1449_vm6, %v4042_v44, %v9123_v41  ;;  %v9265_v39 = vpop.permute.xlu1 %3731  ;;  %v4043_v41 = vsel %vm1449_vm6, %v10577_v30, %v10593_v36  ;;  %v6044_v52 = vpack.c.bf16 %v4088_v26, %v4084_v1 }
 0x715   :  { %v4095_v59 = vmul.f32 %v4072_v24, %v4046_v60  ;;  %v4096_v8 = vmul.f32 %v4076_v27, %v4058_v5  ;;  %4795 = vmatprep.subr.bf16.mxu0 %v6030_v61  ;;  %v3769_v12 = vsel %vm1161_vm8, %v9265_v39, %v3740_v46  ;;  %v4083_v49 = vmul.f32 %v4072_v24, %v4043_v41 }
 0x716   :  { %v3805_v38 = vmul.f32 %v3780_v22, %v3769_v12  ;;  %v6026_v31 = vpack.c.bf16 %v3802_v40, %v3798_v47  ;;  %v3934_v36 = vrot.slane %v9169_v13, %v7240_v14  ;;  %v10597_v40 = vld [vmem:[#allocation31_spill] sm:$0xff] }
 0x717   :  { %v6047_v58 = vpack.c.bf16 %v4095_v59, %v4091_v35  ;;  %v9278_v17 = vpop.permute.xlu0 %3733  ;;  %v6048_v10 = vpack.c.bf16 %v4096_v8, %v4092_v63  ;;  %v6043_v27 = vpack.c.bf16 %v4087_v15, %v4083_v49  ;;  %v10596_v63 = vld [vmem:[#allocation33_spill] sm:$0xff]  ;;  %v10598_v15 = vld [vmem:[#allocation38_spill] sm:$0xff] }
 0x718   :  { %v3770_v48 = vsel %vm1161_vm8, %v9278_v17, %v3742_v19  ;;  %v9283_v56 = vpop.permute.xlu1 %3727 }
 0x719   :  { %v3809_v46 = vmul.f32 %v3780_v22, %v3770_v48  ;;  %4893 = vmatprep.subr.bf16.mxu1 %v6048_v10  ;;  %v3767_v30 = vsel %vm1161_vm8, %v9283_v56, %v10595_v33 }
 0x71a   :  { %4894 = vmatpush2.bf16.msra.mxu1 %v6047_v58  ;;  %v3797_v20 = vmul.f32 %v3780_v22, %v3767_v30 }
 0x71b   :  { %v6029_v28 = vpack.c.bf16 %v3809_v46, %v3805_v38  ;;  %v9289_v55 = vpop.permute.xlu0 %3729  ;;  %4895 = vmatprep.subr.bf16.mxu1 %v6044_v52  ;;  %v9336_v38 = vpop.f32.mrf.mxu0 }
 0x71c   :  { %v3768_v19 = vsel %vm1161_vm8, %v9289_v55, %v10592_v6  ;;  %v3898_v24 = vpop.permute.xlu1 %3897 }
 0x71d   :  { %v3801_v34 = vmul.f32 %v3780_v22, %v3768_v19  ;;  %v3903_v18 = vsel %vm1305_vm7, %v9171_v16, %v3898_v24  ;;  %4796 = vmatpush2.bf16.msra.mxu0 %v6029_v28  ;;  %v3915_v44 = vsel %vm1305_vm7, %v3898_v24, %v9184_v9  ;;  %v10599_v19 = vld [vmem:[#allocation41_spill] sm:$0xff] }
 0x71e   :  { %4797 = vmatprep.subr.bf16.mxu0 %v6026_v31  ;;  %4896 = vmatpush2.bf16.msra.mxu1 %v6043_v27  ;;  %v3949_v4 = vmul.f32 %v3930_v43, %v3903_v18  ;;  %v3950_v16 = vmul.f32 %v3934_v36, %v3915_v44 }
 0x71f   :  { %v6025_v6 = vpack.c.bf16 %v3801_v34, %v3797_v20  ;;  %v3900_v61 = vpop.permute.xlu0 %3899  ;;  %v10600_v20 = vld [vmem:[#allocation56_spill] sm:$0xff] }
 0x720   :  { %v3904_v22 = vsel %vm1305_vm7, %v9178_v2, %v3900_v61  ;;  %v3916_v13 = vsel %vm1305_vm7, %v3900_v61, %v9199_v0  ;;  %v3894_v26 = vpop.permute.xlu1 %3893  ;;  %v3788_v0 = vrot.slane %v9217_v42, %v7237_v45 }
 0x721   :  { %v3953_v60 = vmul.f32 %v3930_v43, %v3904_v22  ;;  %v3954_v5 = vmul.f32 %v3934_v36, %v3916_v13  ;;  %v3901_v9 = vsel %vm1305_vm7, %v10585_v37, %v3894_v26  ;;  %4798 = vmatpush2.bf16.msra.mxu0 %v6025_v6  ;;  %v3913_v35 = vsel %vm1305_vm7, %v3894_v26, %v10588_v23  ;;  %v10601_v13 = vld [vmem:[#allocation57_spill] sm:$0xff] }
 0x722   :  { %4799 = vmatprep.subr.bf16.mxu0 %v10596_v63  ;;  %v3941_v33 = vmul.f32 %v3930_v43, %v3901_v9  ;;  %v3792_v23 = vrot.slane %v9217_v42, %v7240_v14  ;;  %v3942_v41 = vmul.f32 %v3934_v36, %v3913_v35  ;;  %v4218_v6 = vrot.slane %v10600_v20, %v7240_v14  ;;  %v10603_v63 = vld [vmem:[#allocation58_spill] sm:$0xff] }
 0x723   :  { %v6039_v2 = vpack.c.bf16 %v3953_v60, %v3949_v4  ;;  %v3896_v59 = vpop.permute.xlu0 %3895  ;;  %v6040_v8 = vpack.c.bf16 %v3954_v5, %v3950_v16 }
 0x724   :  { %v3902_v62 = vsel %vm1305_vm7, %v10583_v3, %v3896_v59  ;;  %v3914_v37 = vsel %vm1305_vm7, %v3896_v59, %v10587_v53  ;;  %v3756_v12 = vpop.permute.xlu1 %3755 }
 0x725   :  { %v3945_v1 = vmul.f32 %v3930_v43, %v3902_v62  ;;  %v3946_v58 = vmul.f32 %v3934_v36, %v3914_v37  ;;  %v3761_v10 = vsel %vm1161_vm8, %v9219_v11, %v3756_v12  ;;  %4800 = vmatpush2.bf16.msra.mxu0 %v10597_v40  ;;  %v3773_v3 = vsel %vm1161_vm8, %v3756_v12, %v9265_v39  ;;  %v9347_v39 = vld [vmem:[%s10234_s3 + $0x30] ss:$12 sps:$4 sm:$0xff]   ;;  %v9361_v43 = vld [vmem:[%s10234_s3 + $0x4c] ss:$12 sps:$4 sm:$0xff]   ;;  %v9365_v36 = vpop.f32.mrf.mxu0 }
 0x726   :  { %4897 = vmatprep.subr.bf16.mxu1 %v6040_v8  ;;  %4801 = vmatprep.subr.bf16.mxu0 %v10598_v15  ;;  %v3807_v46 = vmul.f32 %v3788_v0, %v3761_v10  ;;  %v3808_v49 = vmul.f32 %v3792_v23, %v3773_v3  ;;  %v9392_v8 = vld [vmem:[%s10234_s3 + $0x48] ss:$12 sps:$4 sm:$0xff]  }
 0x727   :  { %v6035_v53 = vpack.c.bf16 %v3945_v1, %v3941_v33  ;;  %4898 = vmatpush2.bf16.msra.mxu1 %v6039_v2  ;;  %v3758_v42 = vpop.permute.xlu0 %3757  ;;  %v6036_v48 = vpack.c.bf16 %v3946_v58, %v3942_v41  ;;  %v2779_v9 = vpop.f32.mrf.mxu0  ;;  %v10605_v15 = vld [vmem:[#allocation45_spill] sm:$0xff] }
 0x728   :  { %v3762_v11 = vsel %vm1161_vm8, %v9226_v25, %v3758_v42  ;;  %v3774_v52 = vsel %vm1161_vm8, %v3758_v42, %v9278_v17  ;;  %v3752_v47 = vpop.permute.xlu1 %3751  ;;  %v9353_v25 = vpop.f32.mrf.mxu1 }
 0x729   :  { %v3811_v30 = vmul.f32 %v3788_v0, %v3762_v11  ;;  %v3812_v28 = vmul.f32 %v3792_v23, %v3774_v52  ;;  %v3759_v27 = vsel %vm1161_vm8, %v10594_v29, %v3752_v47  ;;  %4802 = vmatpush2.bf16.msra.mxu0 %v10599_v19  ;;  %v3771_v17 = vsel %vm1161_vm8, %v3752_v47, %v9283_v56  ;;  %v2781_v40 = vpop.f32.mrf.mxu0 }
 0x72a   :  { %4899 = vmatprep.subr.bf16.mxu1 %v6036_v48  ;;  %v4214_v29 = vrot.slane %v10600_v20, %v7237_v45  ;;  %v3799_v18 = vmul.f32 %v3788_v0, %v3759_v27  ;;  %v3800_v4 = vmul.f32 %v3792_v23, %v3771_v17  ;;  %v2830_v16 = vpop.f32.mrf.mxu1  ;;  %v10606_v48 = vld [vmem:[#allocation40_spill] sm:$0xff]  ;;  %v10608_v27 = vld [vmem:[#allocation37_spill] sm:$0xff] }
 0x72b   :  { %v6031_v24 = vpack.c.bf16 %v3811_v30, %v3807_v46  ;;  %4900 = vmatpush2.bf16.msra.mxu1 %v6035_v53  ;;  %v3754_v31 = vpop.permute.xlu0 %3753  ;;  %v6032_v34 = vpack.c.bf16 %v3812_v28, %v3808_v49  ;;  %v10607_v49 = vld [vmem:[#allocation35_spill] sm:$0xff]  ;;  %v2785_v28 = vpop.f32.mrf.mxu0 }
 0x72c   :  { %v3760_v56 = vsel %vm1161_vm8, %v10591_v7, %v3754_v31  ;;  %v3772_v44 = vsel %vm1161_vm8, %v3754_v31, %v9289_v55  ;;  %v4182_v61 = vpop.permute.xlu1 %4181  ;;  %4804 = vmatmul.mubr.bf16.vlgmr.msra.gmra.mxu0 %v9347_v39  ;;  %v10602_v7 = vld [vmem:[#allocation59_spill] sm:$0xff]  ;;  %v2832_v41 = vpop.f32.mrf.mxu1 }
 0x72d   :  { %v3803_v45 = vmul.f32 %v3788_v0, %v3760_v56  ;;  %v3804_v22 = vmul.f32 %v3792_v23, %v3772_v44  ;;  %v4187_v26 = vsel %vm1593_vm3, %v10601_v13, %v4182_v61  ;;  %4901 = vmatprep.subr.bf16.mxu1 %v6032_v34  ;;  %v4199_v60 = vsel %vm1593_vm3, %v4182_v61, %v10602_v7  ;;  %v10604_v23 = vld [vmem:[#allocation47_spill] sm:$0xff]  ;;  %v2787_v19 = vpop.f32.mrf.mxu0 }
 0x72e   :  { %4813 = vmatprep.mubr.bf16.mxu0 %v9361_v43  ;;  %v4233_v35 = vmul.f32 %v4214_v29, %v4187_v26  ;;  %v4234_v33 = vmul.f32 %v4218_v6, %v4199_v60  ;;  %v2834_v52 = vpop.f32.mrf.mxu1 }
 0x72f   :  { %v6027_v55 = vpack.c.bf16 %v3803_v45, %v3799_v18  ;;  %4902 = vmatpush2.bf16.msra.mxu1 %v6031_v24  ;;  %v4184_v14 = vpop.permute.xlu0 %4183  ;;  %v6028_v5 = vpack.c.bf16 %v3804_v22, %v3800_v4  ;;  %v10610_v24 = vld [vmem:[#allocation60_spill] sm:$0xff]  ;;  %v2789_v18 = vpop.f32.mrf.mxu0 }
 0x730   :  { %v4188_v2 = vsel %vm1593_vm3, %v10603_v63, %v4184_v14  ;;  %v4200_v59 = vsel %vm1593_vm3, %v4184_v14, %v8790_v50  ;;  %v4178_v0 = vpop.permute.xlu1 %4177  ;;  %v2838_v51 = vpop.f32.mrf.mxu1 }
 0x731   :  { %v4237_v62 = vmul.f32 %v4214_v29, %v4188_v2  ;;  %v4238_v37 = vmul.f32 %v4218_v6, %v4200_v59  ;;  %v4185_v12 = vsel %vm1593_vm3, %v10604_v23, %v4178_v0  ;;  %4903 = vmatprep.subr.bf16.mxu1 %v6028_v5  ;;  %v4197_v1 = vsel %vm1593_vm3, %v4178_v0, %v8463_v54  ;;  %v2791_v13 = vpop.f32.mrf.mxu0  ;;  %v9480_v23 = vld [vmem:[%s10233_s5 + $0x8] sm:$0xff] }
 0x732   :  { %v4225_v3 = vmul.f32 %v4214_v29, %v4185_v12  ;;  %v4226_v46 = vmul.f32 %v4218_v6, %v4197_v1  ;;  %v2840_v31 = vpop.f32.mrf.mxu1 }
 0x733   :  { %v6055_v50 = vpack.c.bf16 %v4237_v62, %v4233_v35  ;;  %4904 = vmatpush2.bf16.msra.mxu1 %v6027_v55  ;;  %v4180_v58 = vpop.permute.xlu0 %4179  ;;  %v6056_v10 = vpack.c.bf16 %v4238_v37, %v4234_v33 }
 0x734   :  { %v4186_v53 = vsel %vm1593_vm3, %v10605_v15, %v4180_v58  ;;  %v4198_v42 = vsel %vm1593_vm3, %v4180_v58, %v8469_v21  ;;  %4905 = vmatprep.subr.bf16.mxu1 %v10606_v48  ;;  %4814 = vmatmul.mubr.bf16.gmra.mxu0 %v9392_v8  ;;  %v10609_v21 = vld [vmem:[#allocation48_spill] sm:$0xff] }
 0x735   :  { %v4229_v54 = vmul.f32 %v4214_v29, %v4186_v53  ;;  %v4230_v11 = vmul.f32 %v4218_v6, %v4198_v42  ;;  %4942 = vmatprep.subr.bf16.mxu0 %v6056_v10  ;;  %4962 = vmatprep.mubr.bf16.mxu0 %v10455_v32 }
 0x736   :  { %4943 = vmatpush1.bf16.msra.mxu0 %v6055_v50 }
 0x737   :  { %v6051_v47 = vpack.c.bf16 %v4229_v54, %v4225_v3  ;;  %4906 = vmatpush2.bf16.msra.mxu1 %v10607_v49  ;;  %v6052_v30 = vpack.c.bf16 %v4230_v11, %v4226_v46 }
 0x738   :  { %4907 = vmatprep.subr.bf16.mxu1 %v10608_v27 }
 0x739   :  { %4944 = vmatprep.subr.bf16.mxu0 %v6052_v30 }
 0x73a   :  { %4945 = vmatpush1.bf16.msra.mxu0 %v6051_v47 }
 0x73b   :  { %4908 = vmatpush2.bf16.msra.mxu1 %v10609_v21 }
 0x73d   :  { %v2711_v17 = vpop.permute.xlu1 %2710  ;;  %5767 = vmatmul.mubr.msk.bf16.vlgmr.msra.gmra.mxu0 %vm102_vm0, %v10610_v24 }
 0x73e   :  { %v9415_v20 = vadd.f32 %v9336_v38, %v2711_v17  ;;  %v9418_v29 = vadd.f32 %v9365_v36, %v2711_v17  ;;  %4910 = vmatmul.mubr.bf16.vlgmr.msra.gmra.mxu1 %v9347_v39  ;;  %v9422_v34 = vadd.f32 %v9353_v25, %v2711_v17  ;;  %4972 = vmatprep.mubr.bf16.mxu0 %v10455_v32  ;;  %v2842_v25 = vpop.f32.mrf.mxu1 }
 0x73f   :  { %4919 = vmatprep.mubr.bf16.mxu1 %v9361_v43  ;;  %v9428_v6 = vadd.f32 %v2830_v16, %v2711_v17 }
 0x740   :  { %v2847_v56 = vadd.f32 %v9418_v29, %v9415_v20  ;;  %v2715_v44 = vpop.permute.xlu0 %2714  ;;  %v2844_v5 = vpop.f32.mrf.mxu1 }
 0x741   :  { %v9430_v38 = vadd.f32 %v2779_v9, %v2715_v44  ;;  %v9432_v36 = vadd.f32 %v2781_v40, %v2715_v44  ;;  %v9434_v61 = vadd.f32 %v2832_v41, %v2715_v44  ;;  %v2719_v39 = vpop.permute.xlu1 %2718  ;;  %v9442_v32 = vadd.f32 %v2834_v52, %v2715_v44 }
 0x742   :  { %v9436_v4 = vadd.f32 %v2785_v28, %v2719_v39  ;;  %v9438_v45 = vadd.f32 %v2787_v19, %v2719_v39  ;;  %v9440_v43 = vadd.f32 %v2838_v51, %v2719_v39  ;;  %v2848_v26 = vadd.f32 %v2847_v56, %v9422_v34 }
 0x743   :  { %v2852_v22 = vadd.f32 %v9432_v36, %v9430_v38  ;;  %v9449_v7 = vadd.f32 %v2840_v31, %v2719_v39  ;;  %v10371_v40 = vmov 3  }
 0x744   :  { %v2857_v16 = vadd.f32 %v9438_v45, %v9436_v4  ;;  %v2849_v14 = vadd.f32 %v2848_v26, %v9428_v6 }
 0x745   :  { %v2853_v60 = vadd.f32 %v2852_v22, %v9434_v61  ;;  %v2723_v55 = vpop.permute.xlu1 %2722  ;;  %5768 = vmatmul.mubr.msk.bf16.gmra.mxu0 %vm102_vm0, %v8932_v57 }
 0x746   :  { %v2858_v9 = vadd.f32 %v2857_v16, %v9440_v43  ;;  %v9456_v35 = vadd.f32 %v2789_v18, %v2723_v55  ;;  %v9458_v63 = vadd.f32 %v2791_v13, %v2723_v55  ;;  %4920 = vmatmul.mubr.bf16.gmra.mxu1 %v9392_v8  ;;  %v9461_v2 = vadd.f32 %v2842_v25, %v2723_v55  ;;  %v9474_v8 = vld [vmem:[%s10233_s5] sm:$0xff]  ;;  %v9508_v54 = vpop.permute.xlu0 %2956 }
 0x747   :  { %v2854_v59 = vadd.f32 %v2853_v60, %v9442_v32  ;;  %2850 = vadd.xlane.f32.xlu0 %v2849_v14  ;;  %v9467_v33 = vadd.f32 %v2844_v5, %v2723_v55 }
 0x748   :  { %v2859_v0 = vadd.f32 %v2858_v9, %v9449_v7  ;;  %v2862_v57 = vadd.f32 %v9458_v63, %v9456_v35 }
 0x749   :  { %2855 = vadd.xlane.f32.xlu1 %v2854_v59 }
 0x74a   :  { %v2863_v62 = vadd.f32 %v2862_v57, %v9461_v2  ;;  %v9483_v12 = vpop.permute.xlu1 %2952 }
 0x74b   :  { %2860 = vadd.xlane.f32.xlu0 %v2859_v0  ;;  %v9512_v52 = vpop.permute.xlu0 %5098 }
 0x74c   :  { %v2864_v37 = vadd.f32 %v2863_v62, %v9467_v33  ;;  %10616 = vst [vmem:[#allocation13_spill] sm:$0xff] %v9512_v52 }
 0x74e   :  { %v9485_v41 = vpop.permute.xlu1 %2960 }
 0x74f   :  { %2865 = vadd.xlane.f32.xlu0 %v2864_v37 }
 0x752   :  { %v9487_v1 = vpop.permute.xlu1 %2964 }
 0x757   :  { %v9489_v50 = vpop.permute.xlu1 %2984 }
 0x75a   :  { %5160 = vperm.xlu1 %6106, %v9474_v8  }
 0x75b   :  { %v9491_v58 = vpop.permute.xlu1 %2988 }
 0x75f   :  { %v9493_v10 = vpop.permute.xlu1 %2992 }
 0x763   :  { %v9496_v3 = vpop.permute.xlu1 %2996 }
 0x765   :  { %5164 = vperm.xlu0 %6107, %v9480_v23  }
 0x768   :  { %v9498_v15 = vpop.permute.xlu1 %5093 }
 0x769   :  { %6108 = vset.pattern.permute.xlu0 %v10371_v40 }
 0x76d   :  { %v9500_v53 = vpop.permute.xlu1 %5103 }
 0x76e   :  { %10611 = vst [vmem:[#allocation44_spill] sm:$0xff] %v9500_v53 }
 0x771   :  { %v9502_v42 = vpop.permute.xlu1 %5108 }
 0x772   :  { %10612 = vst [vmem:[#allocation46_spill] sm:$0xff] %v9502_v42 }
 0x776   :  { %v9504_v48 = vpop.permute.xlu1 %5128 }
 0x777   :  { %10613 = vst [vmem:[#allocation55_spill] sm:$0xff] %v9504_v48 }
 0x77a   :  { %v9506_v46 = vpop.permute.xlu1 %5132 }
 0x77b   :  { %10614 = vst [vmem:[#allocation43_spill] sm:$0xff] %v9506_v46 }
 0x77e   :  { %v9510_v11 = vpop.permute.xlu1 %5136 }
 0x77f   :  { %10615 = vst [vmem:[#allocation11_spill] sm:$0xff] %v9510_v11 }
 0x782   :  { %v9514_v47 = vpop.permute.xlu1 %5140 }
 0x783   :  { %10617 = vst [vmem:[#allocation15_spill] sm:$0xff] %v9514_v47 }
 0x7d0   :  { %v2851_v49 = vpop.xlane.xlu0 %2850 }
 0x7d1   :  { %v2867_v30 = vmul.f32 0.001953125, %v2851_v49 }
 0x7d2   :  { %v2856_v28 = vpop.xlane.xlu1 %2855 }
 0x7d3   :  { %v9517_v27 = vsub.f32 %v9415_v20, %v2867_v30  ;;  %v9520_v51 = vsub.f32 %v9418_v29, %v2867_v30  ;;  %v2868_v21 = vmul.f32 0.001953125, %v2856_v28  ;;  %v9523_v19 = vsub.f32 %v9422_v34, %v2867_v30 }
 0x7d4   :  { %v2861_v17 = vpop.xlane.xlu0 %2860  ;;  %v9532_v56 = vsub.f32 %v9428_v6, %v2867_v30 }
 0x7d5   :  { %v9526_v24 = vsub.f32 %v9430_v38, %v2868_v21  ;;  %v9529_v31 = vsub.f32 %v9432_v36, %v2868_v21  ;;  %v2869_v18 = vmul.f32 0.001953125, %v2861_v17  ;;  %v2887_v20 = vmul.f32 %v9517_v27, %v9517_v27  ;;  %v4858_v17 = vpop.f32.mrf.mxu1 }
 0x7d6   :  { %v2888_v29 = vmul.f32 %v9520_v51, %v9520_v51  ;;  %v9539_v34 = vsub.f32 %v9434_v61, %v2868_v21  ;;  %v2889_v6 = vmul.f32 %v9523_v19, %v9523_v19  ;;  %v9550_v22 = vsub.f32 %v9442_v32, %v2868_v21 }
 0x7d7   :  { %v9542_v44 = vsub.f32 %v9436_v4, %v2869_v18  ;;  %v9545_v38 = vsub.f32 %v9438_v45, %v2869_v18  ;;  %v2891_v13 = vmul.f32 %v9526_v24, %v9526_v24  ;;  %v2892_v61 = vmul.f32 %v9529_v31, %v9529_v31 }
 0x7d8   :  { %v2866_v36 = vpop.xlane.xlu0 %2865  ;;  %v2903_v39 = vadd.f32 %v2888_v29, %v2887_v20  ;;  %v9557_v4 = vsub.f32 %v9440_v43, %v2869_v18  ;;  %v2890_v45 = vmul.f32 %v9532_v56, %v9532_v56  ;;  %v2893_v55 = vmul.f32 %v9539_v34, %v9539_v34 }
 0x7d9   :  { %v2870_v25 = vmul.f32 0.001953125, %v2866_v36  ;;  %v2895_v16 = vmul.f32 %v9542_v44, %v9542_v44  ;;  %v9572_v14 = vsub.f32 %v9449_v7, %v2869_v18  ;;  %v2908_v9 = vadd.f32 %v2892_v61, %v2891_v13 }
 0x7da   :  { %v2904_v26 = vadd.f32 %v2903_v39, %v2889_v6  ;;  %v2896_v59 = vmul.f32 %v9545_v38, %v9545_v38 }
 0x7db   :  { %v9564_v60 = vsub.f32 %v9456_v35, %v2870_v25  ;;  %v9567_v32 = vsub.f32 %v9458_v63, %v2870_v25  ;;  %v9575_v43 = vsub.f32 %v9461_v2, %v2870_v25  ;;  %v2894_v35 = vmul.f32 %v9550_v22, %v9550_v22 }
 0x7dc   :  { %v2905_v5 = vadd.f32 %v2904_v26, %v2890_v45  ;;  %v2909_v7 = vadd.f32 %v2908_v9, %v2893_v55  ;;  %v2897_v2 = vmul.f32 %v9557_v4, %v9557_v4  ;;  %v2913_v57 = vadd.f32 %v2896_v59, %v2895_v16 }
 0x7dd   :  { %v2899_v63 = vmul.f32 %v9564_v60, %v9564_v60  ;;  %v2900_v0 = vmul.f32 %v9567_v32, %v9567_v32  ;;  %v9588_v62 = vsub.f32 %v9467_v33, %v2870_v25  ;;  %v2898_v30 = vmul.f32 %v9572_v14, %v9572_v14  ;;  %v4860_v33 = vpop.f32.mrf.mxu1 }
 0x7de   :  { %2906 = vadd.xlane.f32.xlu1 %v2905_v5  ;;  %v2910_v49 = vadd.f32 %v2909_v7, %v2894_v35  ;;  %v2914_v28 = vadd.f32 %v2913_v57, %v2897_v2  ;;  %v2901_v21 = vmul.f32 %v9575_v43, %v9575_v43 }
 0x7df   :  { %v2918_v37 = vadd.f32 %v2900_v0, %v2899_v63  ;;  %v2902_v20 = vmul.f32 %v9588_v62, %v9588_v62  ;;  %v4862_v6 = vpop.f32.mrf.mxu1 }
 0x7e0   :  { %2911 = vadd.xlane.f32.xlu0 %v2910_v49  ;;  %v2915_v18 = vadd.f32 %v2914_v28, %v2898_v30 }
 0x7e1   :  { %v2919_v29 = vadd.f32 %v2918_v37, %v2901_v21  ;;  %v4864_v25 = vpop.f32.mrf.mxu1 }
 0x7e2   :  { %2916 = vadd.xlane.f32.xlu1 %v2915_v18 }
 0x7e3   :  { %v2920_v36 = vadd.f32 %v2919_v29, %v2902_v20  ;;  %v4868_v45 = vpop.f32.mrf.mxu1 }
 0x7e5   :  { %2921 = vadd.xlane.f32.xlu0 %v2920_v36  ;;  %v4870_v55 = vpop.f32.mrf.mxu1 }
 0x7e7   :  { %v4872_v59 = vpop.f32.mrf.mxu1 }
 0x7e9   :  { %v4874_v0 = vpop.f32.mrf.mxu1 }
 0x7ec   :  { %v4805_v39 = vpop.f32.mrf.mxu0 }
 0x7ed   :  { %v9598_v7 = vadd.f32 %v4858_v17, %v4805_v39 }
 0x7ee   :  { %v4807_v13 = vpop.f32.mrf.mxu0 }
 0x7ef   :  { %v9596_v63 = vadd.f32 %v4860_v33, %v4807_v13 }
 0x7f0   :  { %v4809_v61 = vpop.f32.mrf.mxu0 }
 0x7f1   :  { %v4983_v49 = vadd.f32 %v9596_v63, %v9598_v7  ;;  %v9606_v21 = vadd.f32 %v4862_v6, %v4809_v61 }
 0x7f2   :  { %v4811_v26 = vpop.f32.mrf.mxu0 }
 0x7f3   :  { %v9600_v57 = vadd.f32 %v4864_v25, %v4811_v26 }
 0x7f4   :  { %v4815_v16 = vpop.f32.mrf.mxu0 }
 0x7f5   :  { %v4988_v17 = vadd.f32 %v9600_v57, %v9606_v21  ;;  %v9613_v39 = vadd.f32 %v4868_v45, %v4815_v16 }
 0x7f6   :  { %v4817_v5 = vpop.f32.mrf.mxu0 }
 0x7f7   :  { %v9615_v25 = vadd.f32 %v4870_v55, %v4817_v5 }
 0x7f8   :  { %v4819_v9 = vpop.f32.mrf.mxu0 }
 0x7f9   :  { %v9624_v5 = vadd.f32 %v4872_v59, %v4819_v9 }
 0x7fa   :  { %v4821_v35 = vpop.f32.mrf.mxu0 }
 0x7fb   :  { %v9620_v40 = vadd.f32 %v4874_v0, %v4821_v35 }
 0x7fd   :  { %v4964_v2 = vpop.f32.mrf.mxu0 }
 0x7fe   :  { %v4911_v37 = vpop.f32.mrf.mxu1 }
 0x7ff   :  { %v9604_v30 = vadd.f32 %v4964_v2, %v4911_v37  ;;  %v4966_v28 = vpop.f32.mrf.mxu0 }
 0x800   :  { %v4913_v18 = vpop.f32.mrf.mxu1 }
 0x801   :  { %v4984_v20 = vadd.f32 %v4983_v49, %v9604_v30  ;;  %v9609_v29 = vadd.f32 %v4966_v28, %v4913_v18  ;;  %v4968_v36 = vpop.f32.mrf.mxu0  ;;  %v4993_v18 = vadd.f32 %v9615_v25, %v9613_v39 }
 0x802   :  { %v4915_v33 = vpop.f32.mrf.mxu1 }
 0x803   :  { %v4985_v13 = vadd.f32 %v4984_v20, %v9609_v29  ;;  %v4969_v26 = vadd.f32 %v4968_v36, %v4915_v33  ;;  %v4970_v2 = vpop.f32.mrf.mxu0 }
 0x804   :  { %v4917_v6 = vpop.f32.mrf.mxu1 }
 0x805   :  { %v4989_v61 = vadd.f32 %v4988_v17, %v4969_v26  ;;  %v4971_v37 = vadd.f32 %v4970_v2, %v4917_v6  ;;  %4986 = vadd.xlane.f32.xlu1 %v4985_v13  ;;  %v4974_v49 = vpop.f32.mrf.mxu0  ;;  %v4998_v13 = vadd.f32 %v9620_v40, %v9624_v5 }
 0x806   :  { %v4921_v28 = vpop.f32.mrf.mxu1 }
 0x807   :  { %v4990_v46 = vadd.f32 %v4989_v61, %v4971_v37  ;;  %v9622_v45 = vadd.f32 %v4974_v49, %v4921_v28  ;;  %v4976_v16 = vpop.f32.mrf.mxu0  ;;  %v9647_v49 = vld [vmem:[%s10233_s5 + $0x18] sm:$0xff]  ;;  %v10618_v28 = vmov 3  }
 0x808   :  { %v4923_v55 = vpop.f32.mrf.mxu1 }
 0x809   :  { %v4994_v20 = vadd.f32 %v4993_v18, %v9622_v45  ;;  %v9627_v36 = vadd.f32 %v4976_v16, %v4923_v55  ;;  %4991 = vadd.xlane.f32.xlu0 %v4990_v46  ;;  %v4978_v17 = vpop.f32.mrf.mxu0  ;;  %v9641_v46 = vld [vmem:[%s10233_s5 + $0x10] sm:$0xff]  ;;  %v6362_v18 = vmov 4   ;;  %v9656_v16 = vpop.permute.xlu1 %5160 }
 0x80a   :  { %v4925_v33 = vpop.f32.mrf.mxu1  ;;  %v9658_v55 = vpop.permute.xlu0 %5164 }
 0x80b   :  { %v4995_v35 = vadd.f32 %v4994_v20, %v9627_v36  ;;  %v9632_v0 = vadd.f32 %v4978_v17, %v4925_v33  ;;  %v4980_v2 = vpop.f32.mrf.mxu0 }
 0x80c   :  { %v4927_v6 = vpop.f32.mrf.mxu1 }
 0x80d   :  { %v4999_v61 = vadd.f32 %v4998_v13, %v9632_v0  ;;  %v9635_v9 = vadd.f32 %v4980_v2, %v4927_v6  ;;  %4996 = vadd.xlane.f32.xlu1 %v4995_v35 }
 0x80f   :  { %v5000_v59 = vadd.f32 %v4999_v61, %v9635_v9 }
 0x811   :  { %5001 = vadd.xlane.f32.xlu0 %v5000_v59 }
 0x81e   :  { %5168 = vperm.xlu1 %6106, %v9641_v46  }
 0x822   :  { %5172 = vperm.xlu1 %6106, %v9647_v49  }
 0x826   :  { %6109 = vset.pattern.permute.xlu1 %v10618_v28 }
 0x827   :  { %5196 = vperm.xlu1 %6109, %v9480_v23   ;;  %5192 = vperm.xlu0 %6108, %v9474_v8  }
 0x82b   :  { %5200 = vperm.xlu1 %6109, %v9641_v46   ;;  %5204 = vperm.xlu0 %6108, %v9647_v49  }
 0x82f   :  { %6110 = vset.pattern.permute.xlu1 %v6362_v18  ;;  %6111 = vset.pattern.permute.xlu0 %v6362_v18 }
 0x830   :  { %5240 = vperm.xlu1 %6110, %v9474_v8  }
 0x867   :  { %v2907_v20 = vpop.xlane.xlu1 %2906 }
 0x869   :  { %v9660_v17 = vpop.xlane.xlu0 %2911 }
 0x86b   :  { %v2917_v33 = vpop.xlane.xlu1 %2916 }
 0x86e   :  { %v9662_v13 = vpop.xlane.xlu0 %2921 }
 0x88e   :  { %v4987_v35 = vpop.xlane.xlu1 %4986 }
 0x88f   :  { %v5003_v2 = vmul.f32 0.001953125, %v4987_v35 }
 0x891   :  { %v9665_v6 = vsub.f32 %v9598_v7, %v5003_v2  ;;  %v9668_v61 = vsub.f32 %v9596_v63, %v5003_v2  ;;  %v9671_v8 = vsub.f32 %v9604_v30, %v5003_v2  ;;  %v9676_v47 = vsub.f32 %v9609_v29, %v5003_v2 }
 0x892   :  { %v4992_v59 = vpop.xlane.xlu0 %4991 }
 0x893   :  { %v5004_v28 = vmul.f32 0.001953125, %v4992_v59  ;;  %v5023_v18 = vmul.f32 %v9665_v6, %v9665_v6  ;;  %v5024_v35 = vmul.f32 %v9668_v61, %v9668_v61  ;;  %v5025_v59 = vmul.f32 %v9671_v8, %v9671_v8 }
 0x895   :  { %v9681_v7 = vsub.f32 %v9606_v21, %v5004_v28  ;;  %v9684_v63 = vsub.f32 %v9600_v57, %v5004_v28  ;;  %v9686_v42 = vsub.f32 %v4969_v26, %v5004_v28  ;;  %v5039_v11 = vadd.f32 %v5024_v35, %v5023_v18 }
 0x896   :  { %v4997_v30 = vpop.xlane.xlu1 %4996  ;;  %v9690_v52 = vsub.f32 %v4971_v37, %v5004_v28  ;;  %v5026_v57 = vmul.f32 %v9676_v47, %v9676_v47 }
 0x897   :  { %10619 = vst [vmem:[#allocation3_spill] sm:$0xff] %v9681_v7  ;;  %10620 = vst [vmem:[#allocation4_spill] sm:$0xff] %v9684_v63  ;;  %v5005_v53 = vmul.f32 0.001953125, %v4997_v30  ;;  %v5027_v29 = vmul.f32 %v9681_v7, %v9681_v7  ;;  %v5028_v21 = vmul.f32 %v9684_v63, %v9684_v63  ;;  %v5040_v2 = vadd.f32 %v5039_v11, %v5025_v59 }
 0x898   :  { %v5029_v28 = vmul.f32 %v9686_v42, %v9686_v42  ;;  %v5030_v63 = vmul.f32 %v9690_v52, %v9690_v52 }
 0x899   :  { %v9699_v26 = vsub.f32 %v9613_v39, %v5005_v53  ;;  %v9702_v48 = vsub.f32 %v9615_v25, %v5005_v53  ;;  %v5044_v18 = vadd.f32 %v5028_v21, %v5027_v29  ;;  %v5041_v37 = vadd.f32 %v5040_v2, %v5026_v57 }
 0x89a   :  { %v5002_v35 = vpop.xlane.xlu0 %5001  ;;  %v9707_v30 = vsub.f32 %v9622_v45, %v5005_v53  ;;  %v9716_v59 = vsub.f32 %v9627_v36, %v5005_v53 }
 0x89b   :  { %v5006_v7 = vmul.f32 0.001953125, %v5002_v35  ;;  %5042 = vadd.xlane.f32.xlu1 %v5041_v37  ;;  %v5045_v11 = vadd.f32 %v5044_v18, %v5029_v28  ;;  %v5031_v39 = vmul.f32 %v9699_v26, %v9699_v26  ;;  %v5032_v25 = vmul.f32 %v9702_v48, %v9702_v48 }
 0x89c   :  { %v5033_v2 = vmul.f32 %v9707_v30, %v9707_v30 }
 0x89d   :  { %v9719_v29 = vsub.f32 %v9624_v5, %v5006_v7  ;;  %v9722_v45 = vsub.f32 %v9620_v40, %v5006_v7  ;;  %v9725_v21 = vsub.f32 %v9632_v0, %v5006_v7  ;;  %v5046_v57 = vadd.f32 %v5045_v11, %v5030_v63 }
 0x89e   :  { %v5049_v18 = vadd.f32 %v5032_v25, %v5031_v39  ;;  %v9730_v35 = vsub.f32 %v9635_v9, %v5006_v7  ;;  %v5034_v40 = vmul.f32 %v9716_v59, %v9716_v59  ;;  %v2923_v11 = vmul.f32 0.001953125, %v2907_v20 }
 0x89f   :  { %10621 = vst [vmem:[#allocation7_spill] sm:$0xff] %v9719_v29  ;;  %10622 = vst [vmem:[#allocation14_spill] sm:$0xff] %v9722_v45  ;;  %5047 = vadd.xlane.f32.xlu0 %v5046_v57  ;;  %v5035_v53 = vmul.f32 %v9719_v29, %v9719_v29  ;;  %v5036_v5 = vmul.f32 %v9722_v45, %v9722_v45  ;;  %v5037_v0 = vmul.f32 %v9725_v21, %v9725_v21 }
 0x8a0   :  { %10623 = vst [vmem:[#allocation5_spill] sm:$0xff] %v9725_v21  ;;  %10624 = vst [vmem:[#allocation52_spill] sm:$0xff] %v9730_v35  ;;  %v5050_v36 = vadd.f32 %v5049_v18, %v5033_v2  ;;  %v5038_v28 = vmul.f32 %v9730_v35, %v9730_v35  ;;  %v2927_v39 = vadd.f32 0.001, %v2923_v11  ;;  %v2925_v25 = vmul.f32 0.001953125, %v2917_v33 }
 0x8a1   :  { %v5054_v63 = vadd.f32 %v5036_v5, %v5035_v53  ;;  %v2926_v2 = vmul.f32 0.001953125, %v9662_v13  ;;  %v2924_v53 = vmul.f32 0.001953125, %v9660_v17 }
 0x8a2   :  { %v5051_v37 = vadd.f32 %v5050_v36, %v5034_v40  ;;  %6212 = vrsqrt.f32 %v2927_v39  ;;  %v2929_v57 = vadd.f32 0.001, %v2925_v25 }
 0x8a3   :  { %v5055_v9 = vadd.f32 %v5054_v63, %v5037_v0  ;;  %v2930_v18 = vadd.f32 0.001, %v2926_v2  ;;  %v2928_v5 = vadd.f32 0.001, %v2924_v53 }
 0x8a4   :  { %5052 = vadd.xlane.f32.xlu1 %v5051_v37  ;;  %6214 = vrsqrt.f32 %v2929_v57 }
 0x8a5   :  { %v5056_v7 = vadd.f32 %v5055_v9, %v5038_v28  ;;  %6216 = vrsqrt.f32 %v2930_v18 }
 0x8a6   :  { %6218 = vrsqrt.f32 %v2928_v5 }
 0x8a7   :  { %5057 = vadd.xlane.f32.xlu0 %v5056_v7 }
 0x8af   :  { %v6213_v40 = vpop.eup %6212 }
 0x8b0   :  { %v2937_v20 = vmul.f32 %v6213_v40, %v9523_v19  ;;  %v2938_v33 = vmul.f32 %v6213_v40, %v9532_v56 }
 0x8b2   :  { %v2969_v37 = vmul.f32 %v9483_v12, %v2937_v20  ;;  %v2970_v28 = vmul.f32 %v9483_v12, %v2938_v33 }
 0x8b4   :  { %v3001_v39 = vadd.f32 %v9489_v50, %v2969_v37 }
 0x8b5   :  { %5248 = vperm.xlu1 %6110, %v9641_v46   ;;  %v2935_v46 = vmul.f32 %v6213_v40, %v9517_v27 }
 0x8b7   :  { %v2967_v36 = vmul.f32 %v9483_v12, %v2935_v46  ;;  %v5594_v46 = vmul.f32 -1.442695, %v3001_v39 }
 0x8b9   :  { %5252 = vperm.xlu1 %6110, %v9647_v49   ;;  %v6215_v49 = vpop.eup %6214  ;;  %v2999_v19 = vadd.f32 %v9489_v50, %v2967_v36 }
 0x8ba   :  { %v2943_v13 = vmul.f32 %v6215_v49, %v9542_v44  ;;  %v6217_v0 = vpop.eup %6216  ;;  %v2944_v63 = vmul.f32 %v6215_v49, %v9545_v38  ;;  %v2945_v27 = vmul.f32 %v6215_v49, %v9557_v4 }
 0x8bb   :  { %v2947_v9 = vmul.f32 %v6217_v0, %v9564_v60  ;;  %v2948_v38 = vmul.f32 %v6217_v0, %v9567_v32  ;;  %v6219_v11 = vpop.eup %6218  ;;  %v2950_v57 = vmul.f32 %v6217_v0, %v9588_v62  ;;  %v5592_v60 = vmul.f32 -1.442695, %v2999_v19 }
 0x8bc   :  { %v2975_v56 = vmul.f32 %v9485_v41, %v2943_v13  ;;  %v2976_v7 = vmul.f32 %v9485_v41, %v2944_v63  ;;  %v2977_v4 = vmul.f32 %v9485_v41, %v2945_v27  ;;  %v2941_v20 = vmul.f32 %v6219_v11, %v9539_v34 }
 0x8bd   :  { %5244 = vperm.xlu0 %6111, %v9480_v23   ;;  %v2936_v23 = vmul.f32 %v6213_v40, %v9520_v51  ;;  %v2946_v51 = vmul.f32 %v6215_v49, %v9572_v14  ;;  %v3002_v14 = vadd.f32 %v9489_v50, %v2970_v28  ;;  %v2979_v18 = vmul.f32 %v9487_v1, %v2947_v9  ;;  %v9793_v9 = vpop.permute.xlu1 %5168 }
 0x8be   :  { %v3007_v2 = vadd.f32 %v9493_v10, %v2975_v56  ;;  %v3008_v32 = vadd.f32 %v9493_v10, %v2976_v7  ;;  %v2980_v5 = vmul.f32 %v9487_v1, %v2948_v38  ;;  %v2939_v40 = vmul.f32 %v6219_v11, %v9526_v24 }
 0x8bf   :  { %v2968_v17 = vmul.f32 %v9483_v12, %v2936_v23  ;;  %v2949_v12 = vmul.f32 %v6217_v0, %v9575_v43  ;;  %v2978_v25 = vmul.f32 %v9485_v41, %v2946_v51  ;;  %v3009_v43 = vadd.f32 %v9493_v10, %v2977_v4 }
 0x8c0   :  { %v2940_v41 = vmul.f32 %v6219_v11, %v9529_v31  ;;  %v5595_v62 = vmul.f32 -1.442695, %v3002_v14  ;;  %v2982_v23 = vmul.f32 %v9487_v1, %v2950_v57  ;;  %6220 = vpow2.f32 %v5592_v60 }
 0x8c1   :  { %v3000_v44 = vadd.f32 %v9489_v50, %v2968_v17  ;;  %v2981_v50 = vmul.f32 %v9487_v1, %v2949_v12  ;;  %v3010_v49 = vadd.f32 %v9493_v10, %v2978_v25  ;;  %v5600_v33 = vmul.f32 -1.442695, %v3007_v2  ;;  %v9797_v12 = vpop.permute.xlu1 %5172 }
 0x8c2   :  { %v3011_v36 = vadd.f32 %v9496_v3, %v2979_v18  ;;  %v2942_v24 = vmul.f32 %v6219_v11, %v9550_v22  ;;  %v5601_v13 = vmul.f32 -1.442695, %v3008_v32  ;;  %v3012_v0 = vadd.f32 %v9496_v3, %v2980_v5 }
 0x8c3   :  { %v5593_v53 = vmul.f32 -1.442695, %v3000_v44  ;;  %v2971_v17 = vmul.f32 %v9508_v54, %v2939_v40  ;;  %v5602_v31 = vmul.f32 -1.442695, %v3009_v43  ;;  %v3013_v10 = vadd.f32 %v9496_v3, %v2981_v50 }
 0x8c4   :  { %v2972_v1 = vmul.f32 %v9508_v54, %v2940_v41  ;;  %v5603_v34 = vmul.f32 -1.442695, %v3010_v49  ;;  %v3014_v63 = vadd.f32 %v9496_v3, %v2982_v23  ;;  %v2973_v37 = vmul.f32 %v9508_v54, %v2941_v20 }
 0x8c5   :  { %6222 = vpow2.f32 %v5593_v53  ;;  %v5604_v22 = vmul.f32 -1.442695, %v3011_v36  ;;  %v2974_v27 = vmul.f32 %v9508_v54, %v2942_v24  ;;  %v5605_v28 = vmul.f32 -1.442695, %v3012_v0  ;;  %v9799_v40 = vpop.permute.xlu1 %5196 }
 0x8c6   :  { %6224 = vpow2.f32 %v5594_v46  ;;  %v3003_v51 = vadd.f32 %v9491_v58, %v2971_v17  ;;  %v5606_v19 = vmul.f32 -1.442695, %v3013_v10  ;;  %v3004_v56 = vadd.f32 %v9491_v58, %v2972_v1  ;;  %10625 = vst [vmem:[#allocation51_spill] sm:$0xff] %v9799_v40 }
 0x8c7   :  { %6226 = vpow2.f32 %v5595_v62  ;;  %v5607_v44 = vmul.f32 -1.442695, %v3014_v63  ;;  %v3005_v3 = vadd.f32 %v9491_v58, %v2973_v37  ;;  %v3006_v7 = vadd.f32 %v9491_v58, %v2974_v27  ;;  %v9803_v63 = vpop.permute.xlu0 %5192 }
 0x8c8   :  { %6228 = vpow2.f32 %v5600_v33  ;;  %v5596_v38 = vmul.f32 -1.442695, %v3003_v51  ;;  %v5597_v54 = vmul.f32 -1.442695, %v3004_v56 }
 0x8c9   :  { %6230 = vpow2.f32 %v5601_v13  ;;  %v5598_v11 = vmul.f32 -1.442695, %v3005_v3  ;;  %v5599_v39 = vmul.f32 -1.442695, %v3006_v7  ;;  %v9801_v24 = vpop.permute.xlu1 %5200 }
 0x8ca   :  { %6232 = vpow2.f32 %v5602_v31 }
 0x8cb   :  { %6234 = vpow2.f32 %v5603_v34  ;;  %v9813_v3 = vpop.permute.xlu0 %5204 }
 0x8cc   :  { %6236 = vpow2.f32 %v5604_v22  ;;  %10626 = vst [vmem:[#allocation49_spill] sm:$0xff] %v9813_v3  ;;  %v10659_v3 = vld [vmem:[#allocation25_spill] sm:$0xff] }
 0x8cd   :  { %6238 = vpow2.f32 %v5605_v28  ;;  %v6221_v4 = vpop.eup %6220  ;;  %v9805_v27 = vpop.permute.xlu1 %5240 }
 0x8ce   :  { %6240 = vpow2.f32 %v5606_v19  ;;  %v3063_v60 = vadd.f32 1.0, %v6221_v4  ;;  %v10629_v4 = vld [vmem:[#allocation24_spill] sm:$0xff] }
 0x8cf   :  { %6242 = vpow2.f32 %v5607_v44 }
 0x8d0   :  { %6244 = vpow2.f32 %v5596_v38 }
 0x8d1   :  { %6246 = vpow2.f32 %v5597_v54 }
 0x8d2   :  { %v6223_v14 = vpop.eup %6222  ;;  %6248 = vpow2.f32 %v5598_v11 }
 0x8d3   :  { %v6225_v25 = vpop.eup %6224  ;;  %6250 = vpow2.f32 %v5599_v39  ;;  %v3064_v58 = vadd.f32 1.0, %v6223_v14  ;;  %v9823_v14 = vmul.f32 %v9656_v16, %v10629_v4 }
 0x8d4   :  { %v6227_v57 = vpop.eup %6226  ;;  %v3065_v53 = vadd.f32 1.0, %v6225_v25  ;;  %6252 = vrcp.f32 %v3063_v60  ;;  %v10630_v25 = vld [vmem:[#allocation54_spill] sm:$0xff] }
 0x8d5   :  { %v6229_v2 = vpop.eup %6228  ;;  %v3066_v5 = vadd.f32 1.0, %v6227_v57  ;;  %6254 = vrcp.f32 %v3064_v58  ;;  %v9827_v57 = vmul.f32 %v9656_v16, %v10630_v25  ;;  %v10632_v58 = vld [vmem:[#allocation42_spill] sm:$0xff] }
 0x8d6   :  { %v6231_v18 = vpop.eup %6230  ;;  %v3071_v43 = vadd.f32 1.0, %v6229_v2  ;;  %6256 = vrcp.f32 %v3065_v53  ;;  %v10633_v53 = vld [vmem:[#allocation30_spill] sm:$0xff] }
 0x8d7   :  { %v6233_v32 = vpop.eup %6232  ;;  %v3072_v41 = vadd.f32 1.0, %v6231_v18  ;;  %6258 = vrcp.f32 %v3066_v5  ;;  %v9833_v18 = vmul.f32 %v9656_v16, %v10632_v58  ;;  %v10634_v5 = vld [vmem:[#allocation17_spill] sm:$0xff] }
 0x8d8   :  { %v6235_v46 = vpop.eup %6234  ;;  %v3073_v49 = vadd.f32 1.0, %v6233_v32  ;;  %6260 = vrcp.f32 %v3071_v43  ;;  %v9837_v32 = vmul.f32 %v9656_v16, %v10633_v53  ;;  %v10636_v43 = vld [vmem:[#allocation32_spill] sm:$0xff] }
 0x8d9   :  { %v6237_v50 = vpop.eup %6236  ;;  %v3074_v20 = vadd.f32 1.0, %v6235_v46  ;;  %6262 = vrcp.f32 %v3072_v41  ;;  %v9841_v46 = vmul.f32 %v9658_v55, %v10634_v5 }
 0x8da   :  { %v6239_v62 = vpop.eup %6238  ;;  %v3075_v36 = vadd.f32 1.0, %v6237_v50  ;;  %6264 = vrcp.f32 %v3073_v49  ;;  %v9845_v50 = vmul.f32 %v9658_v55, %v10636_v43  ;;  %v10639_v49 = vld [vmem:[#allocation39_spill] sm:$0xff] }
 0x8db   :  { %v6241_v23 = vpop.eup %6240  ;;  %v3076_v13 = vadd.f32 1.0, %v6239_v62  ;;  %6266 = vrcp.f32 %v3074_v20  ;;  %10635 = vst [vmem:[#allocation53_spill] sm:$0xff] %v9841_v46 }
 0x8dc   :  { %v6243_v33 = vpop.eup %6242  ;;  %v3077_v17 = vadd.f32 1.0, %v6241_v23  ;;  %6268 = vrcp.f32 %v3075_v36  ;;  %10637 = vst [vmem:[#allocation22_spill] sm:$0xff] %v9845_v50  ;;  %v9851_v23 = vmul.f32 %v9658_v55, %v10639_v49  ;;  %v10642_v36 = vld [vmem:[#allocation29_spill] sm:$0xff] }
 0x8dd   :  { %v6245_v0 = vpop.eup %6244  ;;  %v3078_v10 = vadd.f32 1.0, %v6243_v33  ;;  %6270 = vrcp.f32 %v3076_v13  ;;  %v9858_v13 = vmul.f32 %v9658_v55, %v10642_v36  ;;  %v10651_v55 = vld [vmem:[#allocation34_spill] sm:$0xff] }
 0x8de   :  { %v6247_v31 = vpop.eup %6246  ;;  %v3067_v37 = vadd.f32 1.0, %v6245_v0  ;;  %6272 = vrcp.f32 %v3077_v17  ;;  %10640 = vst [vmem:[#allocation10_spill] sm:$0xff] %v9851_v23  ;;  %v10644_v0 = vld [vmem:[#allocation50_spill] sm:$0xff] }
 0x8df   :  { %v6249_v1 = vpop.eup %6248  ;;  %v3068_v22 = vadd.f32 1.0, %v6247_v31  ;;  %6274 = vrcp.f32 %v3078_v10  ;;  %10643 = vst [vmem:[#allocation23_spill] sm:$0xff] %v9858_v13  ;;  %v9862_v17 = vmul.f32 %v9793_v9, %v10644_v0  ;;  %v10656_v13 = vld [vmem:[#allocation28_spill] sm:$0xff] }
 0x8e0   :  { %v6251_v34 = vpop.eup %6250  ;;  %v3069_v28 = vadd.f32 1.0, %v6249_v1  ;;  %6276 = vrcp.f32 %v3067_v37  ;;  %v9888_v23 = vmul.f32 %v9797_v12, %v10656_v13 }
 0x8e1   :  { %v3070_v51 = vadd.f32 1.0, %v6251_v34  ;;  %v9807_v19 = vpop.eup %6252  ;;  %6278 = vrcp.f32 %v3068_v22  ;;  %10645 = vst [vmem:[#allocation9_spill] sm:$0xff] %v9862_v17  ;;  %v10647_v34 = vld [vmem:[#allocation26_spill] sm:$0xff]  ;;  %v10649_v22 = vld [vmem:[#allocation27_spill] sm:$0xff] }
 0x8e2   :  { %v9809_v56 = vpop.eup %6254  ;;  %6280 = vrcp.f32 %v3069_v28  ;;  %v5319_v20 = vsub.f32 1.0, %v9807_v19  ;;  %v9870_v37 = vmul.f32 %v9793_v9, %v10647_v34  ;;  %v9874_v28 = vmul.f32 %v9793_v9, %v10649_v22  ;;  %10657 = vst [vmem:[#allocation56_spill] sm:$0xff] %v9888_v23  ;;  %v6325_v23 = vld [vmem:[%s10231_s1 + $0x8] sm:$0xff] }
 0x8e3   :  { %v9811_v44 = vpop.eup %6256  ;;  %6282 = vrcp.f32 %v3070_v51  ;;  %v5320_v31 = vsub.f32 1.0, %v9809_v56  ;;  %v9878_v51 = vmul.f32 %v9793_v9, %v10651_v55  ;;  %v9896_v9 = vmul.f32 %v9797_v12, %v10659_v3 }
 0x8e4   :  { %v9815_v38 = vpop.eup %6258  ;;  %v5321_v10 = vsub.f32 1.0, %v9811_v44  ;;  %10648 = vst [vmem:[#allocation21_spill] sm:$0xff] %v9870_v37  ;;  %10650 = vst [vmem:[#allocation33_spill] sm:$0xff] %v9874_v28  ;;  %v9942_v28 = vmul.f32 %v9805_v27, %v10629_v4 }
 0x8e5   :  { %v9817_v11 = vpop.eup %6260  ;;  %10652 = vst [vmem:[#allocation31_spill] sm:$0xff] %v9878_v51  ;;  %v5322_v50 = vsub.f32 1.0, %v9815_v38  ;;  %10660 = vst [vmem:[#allocation59_spill] sm:$0xff] %v9896_v9  ;;  %v6326_v9 = vld [vmem:[%s10231_s1 + $0x10] sm:$0xff] }
 0x8e6   :  { %10627 = vst [vmem:[#allocation16_spill] sm:$0xff] %v9817_v11  ;;  %v9819_v39 = vpop.eup %6262  ;;  %v5327_v46 = vsub.f32 1.0, %v9817_v11  ;;  %v9910_v11 = vmul.f32 %v6325_v23, %v5320_v31  ;;  %v9915_v45 = vmul.f32 %v6326_v9, %v5321_v10  ;;  %v6327_v10 = vld [vmem:[%s10231_s1 + $0x18] sm:$0xff] }
 0x8e7   :  { %10628 = vst [vmem:[#allocation20_spill] sm:$0xff] %v9819_v39  ;;  %v9829_v2 = vpop.eup %6264  ;;  %v9929_v9 = vmul.f32 %v6327_v10, %v5322_v50  ;;  %v9946_v50 = vmul.f32 %v9805_v27, %v10630_v25  ;;  %v6330_v25 = vld [vmem:[%s10231_s1 + $0x50] sm:$0xff] }
 0x8e8   :  { %10631 = vst [vmem:[#allocation12_spill] sm:$0xff] %v9829_v2  ;;  %v9847_v62 = vpop.eup %6266  ;;  %v5329_v29 = vsub.f32 1.0, %v9829_v2  ;;  %v6328_v2 = vld [vmem:[%s10231_s1 + $0x40] sm:$0xff] }
 0x8e9   :  { %10638 = vst [vmem:[#allocation18_spill] sm:$0xff] %v9847_v62  ;;  %v9854_v33 = vpop.eup %6268 }
 0x8ea   :  { %10641 = vst [vmem:[#allocation8_spill] sm:$0xff] %v9854_v33  ;;  %v9866_v1 = vpop.eup %6270  ;;  %v5331_v51 = vsub.f32 1.0, %v9854_v33 }
 0x8eb   :  { %10646 = vst [vmem:[#allocation6_spill] sm:$0xff] %v9866_v1  ;;  %v5332_v23 = vsub.f32 1.0, %v9866_v1 }
 0x924   :  { %v5043_v7 = vpop.xlane.xlu1 %5042 }
 0x925   :  { %v5059_v54 = vmul.f32 0.001953125, %v5043_v7 }
 0x927   :  { %v5063_v60 = vadd.f32 0.001, %v5059_v54  ;;  %v9880_v54 = vpop.eup %6272 }
 0x928   :  { %v5048_v41 = vpop.xlane.xlu0 %5047  ;;  %10653 = vst [vmem:[#allocation38_spill] sm:$0xff] %v9880_v54  ;;  %v9892_v40 = vpop.eup %6274 }
 0x929   :  { %6284 = vrsqrt.f32 %v5063_v60  ;;  %v5060_v16 = vmul.f32 0.001953125, %v5048_v41  ;;  %v10654_v60 = vld [vmem:[#allocation19_spill] sm:$0xff]  ;;  %10658 = vst [vmem:[#allocation57_spill] sm:$0xff] %v9892_v40  ;;  %v5334_v33 = vsub.f32 1.0, %v9892_v40  ;;  %v6329_v40 = vld [vmem:[%s10231_s1 + $0x48] sm:$0xff] }
 0x92a   :  { %v9884_v41 = vmul.f32 %v9797_v12, %v10654_v60 }
 0x92b   :  { %v5064_v7 = vadd.f32 0.001, %v5060_v16  ;;  %v10661_v16 = vld [vmem:[#allocation36_spill] sm:$0xff] }
 0x92c   :  { %10655 = vst [vmem:[#allocation41_spill] sm:$0xff] %v9884_v41  ;;  %v9900_v35 = vmul.f32 %v9797_v12, %v10661_v16  ;;  %v6324_v41 = vld [vmem:[%s10231_s1] sm:$0xff] }
 0x92d   :  { %v9905_v21 = vmul.f32 %v6324_v41, %v5319_v20  ;;  %6286 = vrsqrt.f32 %v5064_v7  ;;  %v5053_v12 = vpop.xlane.xlu1 %5052  ;;  %v9919_v20 = vpop.eup %6276  ;;  %v5330_v41 = vsub.f32 1.0, %v9847_v62  ;;  %v5333_v62 = vsub.f32 1.0, %v9880_v54 }
 0x92e   :  { %10662 = vst [vmem:[#allocation58_spill] sm:$0xff] %v9900_v35  ;;  %v5328_v35 = vsub.f32 1.0, %v9819_v39  ;;  %10663 = vst [vmem:[#allocation47_spill] sm:$0xff] %v9919_v20  ;;  %v5061_v7 = vmul.f32 0.001953125, %v5053_v12  ;;  %v9924_v31 = vpop.eup %6278  ;;  %v9934_v39 = vmul.f32 %v6328_v2, %v5327_v46  ;;  %v5257_v2 = vmul.f32 %v9805_v27, %v10632_v58  ;;  %v6331_v58 = vld [vmem:[%s10231_s1 + $0x58] sm:$0xff] }
 0x92f   :  { %10664 = vst [vmem:[#allocation45_spill] sm:$0xff] %v9924_v31  ;;  %v9938_v1 = vpop.eup %6280  ;;  %v5258_v46 = vmul.f32 %v9805_v27, %v10633_v53  ;;  %v9967_v54 = vmul.f32 %v6331_v58, %v5330_v41  ;;  %v6332_v27 = vld [vmem:[%s10231_s1 + $0x60] sm:$0xff]  ;;  %v6335_v41 = vld [vmem:[%s10231_s1 + $0x78] sm:$0xff]  ;;  %v10671_v31 = vld [vmem:[#allocation13_spill] sm:$0xff] }
 0x930   :  { %v5058_v12 = vpop.xlane.xlu0 %5057  ;;  %10665 = vst [vmem:[#allocation40_spill] sm:$0xff] %v9938_v1  ;;  %v5065_v10 = vadd.f32 0.001, %v5061_v7  ;;  %v9948_v17 = vpop.eup %6282  ;;  %v9957_v4 = vmul.f32 %v6329_v40, %v5328_v35  ;;  %v9962_v7 = vmul.f32 %v6330_v25, %v5329_v29  ;;  %v9972_v35 = vmul.f32 %v6332_v27, %v5331_v51  ;;  %v6333_v40 = vld [vmem:[%s10231_s1 + $0x68] sm:$0xff] }
 0x931   :  { %v5062_v37 = vmul.f32 0.001953125, %v5058_v12  ;;  %10666 = vst [vmem:[#allocation35_spill] sm:$0xff] %v9948_v17  ;;  %v5249_v12 = vpop.permute.xlu1 %5248  ;;  %v9977_v29 = vmul.f32 %v6333_v40, %v5332_v23  ;;  %v9987_v58 = vmul.f32 %v6335_v41, %v5334_v33 }
 0x932   :  { %6288 = vrsqrt.f32 %v5065_v10  ;;  %v6334_v10 = vld [vmem:[%s10231_s1 + $0x70] sm:$0xff]  ;;  %v9991_v27 = vmul.f32 %v5249_v12, %v10644_v0  ;;  %v10003_v33 = vmul.f32 %v5249_v12, %v10651_v55 }
 0x933   :  { %10667 = vst [vmem:[#allocation37_spill] sm:$0xff] %v9977_v29  ;;  %v5066_v53 = vadd.f32 0.001, %v5062_v37  ;;  %v9982_v25 = vmul.f32 %v6334_v10, %v5333_v62  ;;  %v9997_v62 = vmul.f32 %v5249_v12, %v10647_v34  ;;  %v10000_v10 = vmul.f32 %v5249_v12, %v10649_v22 }
 0x935   :  { %6290 = vrsqrt.f32 %v5066_v53  ;;  %v5253_v41 = vpop.permute.xlu1 %5252  ;;  %v10668_v53 = vld [vmem:[#allocation55_spill] sm:$0xff] }
 0x936   :  { %v6285_v29 = vpop.eup %6284  ;;  %v10010_v51 = vmul.f32 %v5253_v41, %v10654_v60  ;;  %v10013_v34 = vmul.f32 %v5253_v41, %v10656_v13  ;;  %v10016_v22 = vmul.f32 %v5253_v41, %v10659_v3  ;;  %v10019_v55 = vmul.f32 %v5253_v41, %v10661_v16 }
 0x937   :  { %v5071_v0 = vmul.f32 %v6285_v29, %v9665_v6  ;;  %v5072_v23 = vmul.f32 %v6285_v29, %v9668_v61  ;;  %v5073_v37 = vmul.f32 %v6285_v29, %v9671_v8  ;;  %v5074_v40 = vmul.f32 %v6285_v29, %v9676_v47 }
 0x938   :  { %v5245_v12 = vpop.permute.xlu0 %5244 }
 0x939   :  { %v5111_v6 = vmul.f32 %v9498_v15, %v5071_v0  ;;  %v5112_v61 = vmul.f32 %v9498_v15, %v5072_v23  ;;  %v5113_v8 = vmul.f32 %v9498_v15, %v5073_v37  ;;  %v5114_v47 = vmul.f32 %v9498_v15, %v5074_v40  ;;  %v10669_v40 = vld [vmem:[#allocation3_spill] sm:$0xff]  ;;  %v10670_v0 = vld [vmem:[#allocation4_spill] sm:$0xff] }
 0x93a   :  { %v6287_v60 = vpop.eup %6286  ;;  %v10026_v29 = vmul.f32 %v5245_v12, %v10634_v5  ;;  %v10029_v13 = vmul.f32 %v5245_v12, %v10636_v43  ;;  %v10032_v3 = vmul.f32 %v5245_v12, %v10639_v49  ;;  %v10035_v16 = vmul.f32 %v5245_v12, %v10642_v36 }
 0x93b   :  { %v5143_v41 = vadd.f32 %v10668_v53, %v5111_v6  ;;  %v5144_v23 = vadd.f32 %v10668_v53, %v5112_v61  ;;  %v5145_v37 = vadd.f32 %v10668_v53, %v5113_v8  ;;  %v5146_v15 = vadd.f32 %v10668_v53, %v5114_v47 }
 0x93c   :  { %v5075_v5 = vmul.f32 %v6287_v60, %v10669_v40  ;;  %v5076_v17 = vmul.f32 %v6287_v60, %v10670_v0  ;;  %v5077_v43 = vmul.f32 %v6287_v60, %v9686_v42  ;;  %v5078_v49 = vmul.f32 %v6287_v60, %v9690_v52 }
 0x93d   :  { %v5207_v1 = vmul.f32 %v9803_v63, %v5143_v41  ;;  %v5208_v36 = vmul.f32 %v9803_v63, %v5144_v23  ;;  %v5209_v12 = vmul.f32 %v9803_v63, %v5145_v37  ;;  %v5210_v6 = vmul.f32 %v9803_v63, %v5146_v15 }
 0x93e   :  { %v5271_v61 = vmul.f32 %v9942_v28, %v5143_v41  ;;  %v5272_v8 = vmul.f32 %v9946_v50, %v5144_v23  ;;  %v5273_v47 = vmul.f32 %v5257_v2, %v5145_v37  ;;  %v5274_v53 = vmul.f32 %v5258_v46, %v5146_v15 }
 0x93f   :  { %v5223_v40 = vadd.f32 %v5207_v1, %v9823_v14  ;;  %v5224_v42 = vadd.f32 %v5208_v36, %v9827_v57  ;;  %v5225_v52 = vadd.f32 %v5209_v12, %v9833_v18  ;;  %v5226_v60 = vadd.f32 %v5210_v6, %v9837_v32  ;;  %v6289_v0 = vpop.eup %6288  ;;  %v10673_v6 = vld [vmem:[#allocation11_spill] sm:$0xff] }
 0x940   :  { %v10056_v20 = vmul.f32 %v10671_v31, %v5075_v5  ;;  %v10059_v63 = vmul.f32 %v10671_v31, %v5076_v17  ;;  %v10062_v28 = vmul.f32 %v10671_v31, %v5077_v43  ;;  %v10065_v50 = vmul.f32 %v10671_v31, %v5078_v49  ;;  %v10672_v43 = vld [vmem:[#allocation44_spill] sm:$0xff] }
 0x941   :  { %v5287_v14 = vadd.f32 %v5271_v61, %v5223_v40  ;;  %v5288_v1 = vadd.f32 %v5272_v8, %v5224_v42  ;;  %v5289_v57 = vadd.f32 %v5273_v47, %v5225_v52  ;;  %v5290_v2 = vadd.f32 %v5274_v53, %v5226_v60 }
 0x942   :  { %v5079_v18 = vmul.f32 %v6289_v0, %v9699_v26  ;;  %v5080_v32 = vmul.f32 %v6289_v0, %v9702_v48  ;;  %v5081_v46 = vmul.f32 %v6289_v0, %v9707_v30  ;;  %v5082_v41 = vmul.f32 %v6289_v0, %v9716_v59  ;;  %v6291_v17 = vpop.eup %6290 }
 0x943   :  { %v5303_v23 = vmax.f32 %v5287_v14, 0.0  ;;  %v5304_v37 = vmax.f32 %v5288_v1, 0.0  ;;  %v5305_v15 = vmax.f32 %v5289_v57, 0.0  ;;  %v5306_v5 = vmax.f32 %v5290_v2, 0.0  ;;  %v10675_v14 = vld [vmem:[#allocation21_spill] sm:$0xff] }
 0x944   :  { %v5119_v31 = vmul.f32 %v10672_v43, %v5079_v18  ;;  %v5120_v49 = vmul.f32 %v10672_v43, %v5080_v32  ;;  %v5121_v36 = vmul.f32 %v10672_v43, %v5081_v46  ;;  %v5122_v12 = vmul.f32 %v10672_v43, %v5082_v41  ;;  %v10676_v57 = vld [vmem:[#allocation33_spill] sm:$0xff]  ;;  %v10677_v18 = vld [vmem:[#allocation31_spill] sm:$0xff] }
 0x945   :  { %v5351_v26 = vmul.f32 %v9807_v19, %v5303_v23  ;;  %v5352_v48 = vmul.f32 %v9809_v56, %v5304_v37  ;;  %v5353_v30 = vmul.f32 %v9811_v44, %v5305_v15  ;;  %v5354_v59 = vmul.f32 %v9815_v38, %v5306_v5  ;;  %v10678_v46 = vld [vmem:[#allocation7_spill] sm:$0xff]  ;;  %v10679_v23 = vld [vmem:[#allocation14_spill] sm:$0xff]  ;;  %v10680_v15 = vld [vmem:[#allocation5_spill] sm:$0xff] }
 0x946   :  { %v5151_v61 = vadd.f32 %v10673_v6, %v5119_v31  ;;  %v5152_v8 = vadd.f32 %v10673_v6, %v5120_v49  ;;  %v5153_v47 = vadd.f32 %v10673_v6, %v5121_v36  ;;  %v5154_v53 = vadd.f32 %v10673_v6, %v5122_v12  ;;  %v10681_v5 = vld [vmem:[#allocation52_spill] sm:$0xff]  ;;  %v10682_v49 = vld [vmem:[#allocation46_spill] sm:$0xff] }
 0x947   :  { %v5367_v40 = vadd.f32 %v5351_v26, %v9905_v21  ;;  %v5368_v42 = vadd.f32 %v5352_v48, %v9910_v11  ;;  %v5369_v19 = vadd.f32 %v5353_v30, %v9915_v45  ;;  %v5370_v56 = vadd.f32 %v5354_v59, %v9929_v9  ;;  %v10674_v9 = vld [vmem:[#allocation9_spill] sm:$0xff] }
 0x948   :  { %v5215_v44 = vmul.f32 %v9801_v24, %v5151_v61  ;;  %v5216_v38 = vmul.f32 %v9801_v24, %v5152_v8  ;;  %v5217_v52 = vmul.f32 %v9801_v24, %v5153_v47  ;;  %v5218_v60 = vmul.f32 %v9801_v24, %v5154_v53 }
 0x949   :  { %5383 = vst [vmem:[%s10237_s6] sm:$0xff] %v5367_v40  ;;  %5384 = vst [vmem:[%s10237_s6 + $0x8] sm:$0xff] %v5368_v42  ;;  %v5279_v45 = vmul.f32 %v9991_v27, %v5151_v61  ;;  %v5280_v21 = vmul.f32 %v9997_v62, %v5152_v8  ;;  %v5281_v24 = vmul.f32 %v10000_v10, %v5153_v47  ;;  %v10683_v8 = vld [vmem:[#allocation15_spill] sm:$0xff]  ;;  %v10684_v42 = vld [vmem:[#allocation16_spill] sm:$0xff] }
 0x94a   :  { %5385 = vst [vmem:[%s10237_s6 + $0x10] sm:$0xff] %v5369_v19  ;;  %5386 = vst [vmem:[%s10237_s6 + $0x18] sm:$0xff] %v5370_v56  ;;  %v5282_v11 = vmul.f32 %v10003_v33, %v5154_v53  ;;  %v5231_v0 = vadd.f32 %v5215_v44, %v10674_v9  ;;  %v5232_v1 = vadd.f32 %v5216_v38, %v10675_v14  ;;  %v10685_v56 = vld [vmem:[#allocation20_spill] sm:$0xff] }
 0x94b   :  { %v5233_v2 = vadd.f32 %v5217_v52, %v10676_v57  ;;  %v5234_v32 = vadd.f32 %v5218_v60, %v10677_v18  ;;  %v5083_v41 = vmul.f32 %v6291_v17, %v10678_v46  ;;  %v5084_v37 = vmul.f32 %v6291_v17, %v10679_v23  ;;  %v10686_v38 = vld [vmem:[#allocation12_spill] sm:$0xff]  ;;  %v10687_v60 = vld [vmem:[#allocation18_spill] sm:$0xff]  ;;  %v10689_v18 = vld [vmem:[#allocation41_spill] sm:$0xff] }
 0x94c   :  { %v5085_v27 = vmul.f32 %v6291_v17, %v10680_v15  ;;  %v5086_v62 = vmul.f32 %v6291_v17, %v10681_v5  ;;  %v5295_v43 = vadd.f32 %v5279_v45, %v5231_v0  ;;  %v5296_v10 = vadd.f32 %v5280_v21, %v5232_v1  ;;  %v10688_v21 = vld [vmem:[#allocation49_spill] sm:$0xff]  ;;  %v10690_v46 = vld [vmem:[#allocation56_spill] sm:$0xff]  ;;  %v10691_v23 = vld [vmem:[#allocation59_spill] sm:$0xff] }
 0x94d   :  { %v5297_v31 = vadd.f32 %v5281_v24, %v5233_v2  ;;  %v5298_v33 = vadd.f32 %v5282_v11, %v5234_v32  ;;  %v5123_v36 = vmul.f32 %v10682_v49, %v5083_v41  ;;  %v5124_v12 = vmul.f32 %v10682_v49, %v5084_v37  ;;  %v10692_v15 = vld [vmem:[#allocation58_spill] sm:$0xff]  ;;  %v10693_v5 = vld [vmem:[#allocation43_spill] sm:$0xff] }
 0x94e   :  { %v5125_v26 = vmul.f32 %v10682_v49, %v5085_v27  ;;  %v5126_v48 = vmul.f32 %v10682_v49, %v5086_v62  ;;  %v5311_v30 = vmax.f32 %v5295_v43, 0.0  ;;  %v5312_v59 = vmax.f32 %v5296_v10, 0.0 }
 0x94f   :  { %v5313_v6 = vmax.f32 %v5297_v31, 0.0  ;;  %v5314_v61 = vmax.f32 %v5298_v33, 0.0  ;;  %v5155_v47 = vadd.f32 %v10683_v8, %v5123_v36  ;;  %v5156_v17 = vadd.f32 %v10683_v8, %v5124_v12  ;;  %v10694_v36 = vld [vmem:[#allocation51_spill] sm:$0xff] }
 0x950   :  { %v5157_v53 = vadd.f32 %v10683_v8, %v5125_v26  ;;  %v5158_v40 = vadd.f32 %v10683_v8, %v5126_v48  ;;  %v5359_v19 = vmul.f32 %v10684_v42, %v5311_v30  ;;  %v5360_v44 = vmul.f32 %v10685_v56, %v5312_v59  ;;  %v10700_v42 = vld [vmem:[#allocation6_spill] sm:$0xff] }
 0x951   :  { %v5361_v52 = vmul.f32 %v10686_v38, %v5313_v6  ;;  %v5362_v45 = vmul.f32 %v10687_v60, %v5314_v61  ;;  %v5219_v24 = vmul.f32 %v10688_v21, %v5155_v47  ;;  %v5220_v11 = vmul.f32 %v10688_v21, %v5156_v17  ;;  %v10696_v6 = vld [vmem:[#allocation22_spill] sm:$0xff]  ;;  %v10702_v38 = vld [vmem:[#allocation57_spill] sm:$0xff] }
 0x952   :  { %v5221_v9 = vmul.f32 %v10688_v21, %v5157_v53  ;;  %v5222_v0 = vmul.f32 %v10688_v21, %v5158_v40  ;;  %v5375_v14 = vadd.f32 %v5359_v19, %v9934_v39  ;;  %v5376_v1 = vadd.f32 %v5360_v44, %v9957_v4  ;;  %v10697_v61 = vld [vmem:[#allocation10_spill] sm:$0xff] }
 0x953   :  { %v5377_v57 = vadd.f32 %v5361_v52, %v9962_v7  ;;  %v5378_v2 = vadd.f32 %v5362_v45, %v9967_v54  ;;  %v5235_v32 = vadd.f32 %v5219_v24, %v10689_v18  ;;  %v5236_v41 = vadd.f32 %v5220_v11, %v10690_v46  ;;  %v10701_v56 = vld [vmem:[#allocation38_spill] sm:$0xff] }
 0x954   :  { %v5237_v37 = vadd.f32 %v5221_v9, %v10691_v23  ;;  %v5238_v27 = vadd.f32 %v5222_v0, %v10692_v15  ;;  %5391 = vst [vmem:[%s10237_s6 + $0x40] sm:$0xff] %v5375_v14  ;;  %5392 = vst [vmem:[%s10237_s6 + $0x48] sm:$0xff] %v5376_v1  ;;  %v5283_v39 = vmul.f32 %v10010_v51, %v5155_v47  ;;  %v10698_v47 = vld [vmem:[#allocation23_spill] sm:$0xff]  ;;  %v10703_v9 = vld [vmem:[#allocation37_spill] sm:$0xff] }
 0x955   :  { %5393 = vst [vmem:[%s10237_s6 + $0x50] sm:$0xff] %v5377_v57  ;;  %5394 = vst [vmem:[%s10237_s6 + $0x58] sm:$0xff] %v5378_v2  ;;  %v5284_v54 = vmul.f32 %v10013_v34, %v5156_v17  ;;  %v5285_v4 = vmul.f32 %v10016_v22, %v5157_v53  ;;  %v5286_v7 = vmul.f32 %v10019_v55, %v5158_v40  ;;  %v10699_v53 = vld [vmem:[#allocation8_spill] sm:$0xff]  ;;  %v10706_v23 = vld [vmem:[#allocation45_spill] sm:$0xff] }
 0x956   :  { %v5147_v62 = vadd.f32 %v10693_v5, %v10056_v20  ;;  %v5148_v43 = vadd.f32 %v10693_v5, %v10059_v63  ;;  %v5149_v10 = vadd.f32 %v10693_v5, %v10062_v28  ;;  %v5150_v31 = vadd.f32 %v10693_v5, %v10065_v50  ;;  %v10695_v28 = vld [vmem:[#allocation53_spill] sm:$0xff]  ;;  %v10710_v5 = vld [vmem:[#allocation35_spill] sm:$0xff] }
 0x957   :  { %v5299_v33 = vadd.f32 %v5283_v39, %v5235_v32  ;;  %v5300_v51 = vadd.f32 %v5284_v54, %v5236_v41  ;;  %v5301_v49 = vadd.f32 %v5285_v4, %v5237_v37  ;;  %v5302_v34 = vadd.f32 %v5286_v7, %v5238_v27  ;;  %v6337_v41 = vld [vmem:[%s10231_s1 + $0x28] sm:$0xff]  ;;  %v6338_v27 = vld [vmem:[%s10231_s1 + $0x30] sm:$0xff]  ;;  %v6339_v7 = vld [vmem:[%s10231_s1 + $0x38] sm:$0xff] }
 0x958   :  { %v5211_v22 = vmul.f32 %v10694_v36, %v5147_v62  ;;  %v5212_v55 = vmul.f32 %v10694_v36, %v5148_v43  ;;  %v5213_v12 = vmul.f32 %v10694_v36, %v5149_v10  ;;  %v5214_v20 = vmul.f32 %v10694_v36, %v5150_v31  ;;  %v10708_v39 = vld [vmem:[#allocation40_spill] sm:$0xff] }
 0x959   :  { %v5315_v26 = vmax.f32 %v5299_v33, 0.0  ;;  %v5316_v63 = vmax.f32 %v5300_v51, 0.0  ;;  %v5317_v48 = vmax.f32 %v5301_v49, 0.0  ;;  %v5318_v30 = vmax.f32 %v5302_v34, 0.0 }
 0x95a   :  { %v5227_v59 = vadd.f32 %v5211_v22, %v10695_v28  ;;  %v5228_v50 = vadd.f32 %v5212_v55, %v10696_v6  ;;  %v5229_v8 = vadd.f32 %v5213_v12, %v10697_v61  ;;  %v5230_v17 = vadd.f32 %v5214_v20, %v10698_v47 }
 0x95b   :  { %v5363_v40 = vmul.f32 %v10699_v53, %v5315_v26  ;;  %v5364_v19 = vmul.f32 %v10700_v42, %v5316_v63  ;;  %v5365_v44 = vmul.f32 %v10701_v56, %v5317_v48  ;;  %v5366_v52 = vmul.f32 %v10702_v38, %v5318_v30 }
 0x95c   :  { %v5275_v60 = vmul.f32 %v10026_v29, %v5147_v62  ;;  %v5276_v45 = vmul.f32 %v10029_v13, %v5148_v43  ;;  %v5277_v21 = vmul.f32 %v10032_v3, %v5149_v10  ;;  %v5278_v24 = vmul.f32 %v10035_v16, %v5150_v31  ;;  %v6336_v13 = vld [vmem:[%s10231_s1 + $0x20] sm:$0xff] }
 0x95d   :  { %v5379_v11 = vadd.f32 %v5363_v40, %v9972_v35  ;;  %v5380_v0 = vadd.f32 %v5364_v19, %v10703_v9  ;;  %v5381_v14 = vadd.f32 %v5365_v44, %v9982_v25  ;;  %v5382_v1 = vadd.f32 %v5366_v52, %v9987_v58  ;;  %v10704_v3 = vld [vmem:[#allocation47_spill] sm:$0xff] }
 0x95e   :  { %v5291_v57 = vadd.f32 %v5275_v60, %v5227_v59  ;;  %v5292_v2 = vadd.f32 %v5276_v45, %v5228_v50  ;;  %v5293_v18 = vadd.f32 %v5277_v21, %v5229_v8  ;;  %v5294_v32 = vadd.f32 %v5278_v24, %v5230_v17 }
 0x95f   :  { %5395 = vst [vmem:[%s10237_s6 + $0x60] sm:$0xff] %v5379_v11  ;;  %5396 = vst [vmem:[%s10237_s6 + $0x68] sm:$0xff] %v5380_v0  ;;  %v10705_v16 = vsub.f32 1.0, %v10704_v3  ;;  %v10707_v37 = vsub.f32 1.0, %v10706_v23  ;;  %v10709_v54 = vsub.f32 1.0, %v10708_v39  ;;  %v10711_v62 = vsub.f32 1.0, %v10710_v5 }
 0x960   :  { %5397 = vst [vmem:[%s10237_s6 + $0x70] sm:$0xff] %v5381_v14  ;;  %5398 = vst [vmem:[%s10237_s6 + $0x78] sm:$0xff] %v5382_v1  ;;  %v5307_v35 = vmax.f32 %v5291_v57, 0.0  ;;  %v5308_v25 = vmax.f32 %v5292_v2, 0.0  ;;  %v5309_v58 = vmax.f32 %v5293_v18, 0.0  ;;  %v5310_v29 = vmax.f32 %v5294_v32, 0.0 }
 0x961   :  { %v5339_v46 = vmul.f32 %v6336_v13, %v10705_v16  ;;  %v5340_v15 = vmul.f32 %v6337_v41, %v10707_v37  ;;  %v5341_v4 = vmul.f32 %v6338_v27, %v10709_v54  ;;  %v5342_v43 = vmul.f32 %v6339_v7, %v10711_v62 }
 0x962   :  { %v5355_v10 = vmul.f32 %v10704_v3, %v5307_v35  ;;  %v5356_v31 = vmul.f32 %v10706_v23, %v5308_v25  ;;  %v5357_v33 = vmul.f32 %v10708_v39, %v5309_v58  ;;  %v5358_v51 = vmul.f32 %v10710_v5, %v5310_v29 }
 0x964   :  { %v5371_v49 = vadd.f32 %v5355_v10, %v5339_v46  ;;  %v5372_v34 = vadd.f32 %v5356_v31, %v5340_v15  ;;  %v5373_v36 = vadd.f32 %v5357_v33, %v5341_v4  ;;  %v5374_v22 = vadd.f32 %v5358_v51, %v5342_v43 }
 0x966   :  { %5387 = vst [vmem:[%s10237_s6 + $0x20] sm:$0xff] %v5371_v49  ;;  %5388 = vst [vmem:[%s10237_s6 + $0x28] sm:$0xff] %v5372_v34 }
 0x967   :  { %5389 = vst [vmem:[%s10237_s6 + $0x30] sm:$0xff] %v5373_v36  ;;  %5390 = vst [vmem:[%s10237_s6 + $0x38] sm:$0xff] %v5374_v22 }

</bundles_post_ra>
